<compile_context>
chip_gen: v7x
topology: tpu7x:2x2x1
jax: 0.10.0
libtpu: 0.0.40
codegen_flags: <defaults>
</compile_context>

<pallas_src>
import functools

import jax
import jax.numpy as jnp
import numpy as np
from jax.experimental import pallas as pl
from jax.experimental.pallas import tpu as pltpu

BN_EPS = 1e-5
LANE = 128
# Safe cap on every generation (v7x has 64 MiB physical VMEM); the kernels
# below use ~6 MiB per grid step with these tile sizes.
VMEM_LIMIT = 48 * 1024 * 1024


def _round_up(x, m):
    return ((x + m - 1) // m) * m


def _largest_tile(dim, target, quantum):
    """Largest multiple of `quantum` that divides `dim` and is <= target."""
    if dim % quantum != 0:
        return dim  # fall back to a single full-extent block
    best = quantum
    t = quantum
    while t <= min(dim, target):
        if dim % t == 0:
            best = t
        t += quantum
    return best


# ----------------------------------------------------------------------------
# Pallas kernels
# ----------------------------------------------------------------------------
def _matmul_bias_relu_kernel(p_ref, w_ref, b_ref, o_ref, acc_ref):
    # p_ref: (tm, tk) bf16 patches, w_ref: (tk, tn) bf16 (BN scale pre-folded),
    # b_ref: (1, tn) f32 folded bias, o_ref: (tm, tn) bf16, acc_ref: f32 scratch.
    k = pl.program_id(2)

    @pl.when(k == 0)
    def _init():
        acc_ref[...] = jnp.zeros_like(acc_ref)

    acc_ref[...] += jnp.dot(p_ref[...], w_ref[...],
                            preferred_element_type=jnp.float32)

    @pl.when(k == pl.num_programs(2) - 1)
    def _finalize():
        o_ref[...] = jnp.maximum(acc_ref[...] + b_ref[...], 0.0).astype(o_ref.dtype)


def _maxpool_3x3_s2_kernel(x0_ref, x1_ref, x2_ref, o_ref):
    # x*_ref: (1, H, Wo, tc) — column-phase j in {0,1,2} of the 3x3 window
    #         (W already stride-2 subsampled in the wrapper).
    # o_ref : (1, Ho, Wo, tc).  Row taps reduced here via leading-dim reshapes
    #         (no (9,M,C) tensor, no strided in-kernel loads).
    ho, wo, tc = o_ref.shape[1], o_ref.shape[2], o_ref.shape[3]
    m = None
    for ref in (x0_ref, x1_ref, x2_ref):
        a = ref[0, 0:2 * ho, :, :].reshape(ho, 2, wo, tc)       # rows 0..2ho-1
        b = ref[0, 1:2 * ho + 1, :, :].reshape(ho, 2, wo, tc)   # rows 1..2ho
        cand = jnp.maximum(jnp.maximum(a[:, 0], a[:, 1]), b[:, 1])  # taps 0,1,2
        m = cand if m is None else jnp.maximum(m, cand)
    o_ref[0] = m


# ----------------------------------------------------------------------------
# Glue: BN folding, weight prep, im2col (plain JAX)
# ----------------------------------------------------------------------------
def _fold_bn(p):
    scale = p["gamma"] * jax.lax.rsqrt(p["var"] + BN_EPS)
    bias = (p["b"] - p["mean"]) * scale + p["beta"]
    return scale, bias


def _prep_weight(p, cin_padded, cout_padded):
    """PyTorch (Cout,Cin,k,k) -> bf16 (k*k*cin_padded, cout_padded) matrix with
    the folded BN scale absorbed, plus the f32 (1, cout_padded) folded bias."""
    w = p["w"]
    cout, cin, kh, kw = w.shape
    scale, bias = _fold_bn(p)
    w = jnp.transpose(w, (2, 3, 1, 0)) * scale[None, None, None, :]   # (k,k,Cin,Cout)
    w = jnp.pad(w, ((0, 0), (0, 0), (0, cin_padded - cin), (0, cout_padded - cout)))
    w_mat = w.reshape(kh * kw * cin_padded, cout_padded).astype(jnp.bfloat16)
    bias = jnp.pad(bias, (0, cout_padded - cout)).astype(jnp.float32)
    return w_mat, bias.reshape(1, cout_padded)


def _extract_patches(x_nhwc, k, stride, padding):
    """im2col: ((N*Ho*Wo, k*k*C) patches, Ho, Wo); patch order = (kh, kw, C)."""
    if padding > 0:
        x_nhwc = jnp.pad(
            x_nhwc, ((0, 0), (padding, padding), (padding, padding), (0, 0)))
    N, H, W, C = x_nhwc.shape
    Ho = (H - k) // stride + 1
    Wo = (W - k) // stride + 1
    if k == 1 and stride == 1:
        return x_nhwc.reshape(N * Ho * Wo, C), Ho, Wo
    views = []
    for i in range(k):
        for j in range(k):
            views.append(x_nhwc[:, i:i + stride * (Ho - 1) + 1:stride,
                                j:j + stride * (Wo - 1) + 1:stride, :])
    p = jnp.stack(views, axis=3)                      # (N, Ho, Wo, k*k, C)
    return p.reshape(N * Ho * Wo, k * k * C), Ho, Wo


# ----------------------------------------------------------------------------
# Pallas-backed building blocks
# ----------------------------------------------------------------------------
def conv_bn_relu(x_nhwc, params, k, stride, padding):
    """Fused Conv2d + BN(inference) + ReLU.

    `x_nhwc` may carry zero-padded trailing channels.  The output has Cout
    padded up to a multiple of 128 (extra channels are exactly zero) so stores
    stay lane-dense; returns (y_nhwc bf16, actual_cout)."""
    N, H, W, cin_p = x_nhwc.shape
    cout = params["w"].shape[0]
    cout_p = _round_up(cout, LANE)

    w_mat, bias = _prep_weight(params, cin_p, cout_p)
    patches, Ho, Wo = _extract_patches(
        x_nhwc.astype(jnp.bfloat16), k, stride, padding)
    M, K = patches.shape

    # ---- tiling -------------------------------------------------------------
    tm = min(512, _round_up(M, 16))
    m_pad = _round_up(M, tm)
    if m_pad != M:
        patches = jnp.pad(patches, ((0, m_pad - M), (0, 0)))
    tk = _largest_tile(K, 1024, LANE)          # K is a multiple of 128
    tn = _largest_tile(cout_p, 512, LANE)
    grid = (m_pad // tm, cout_p // tn, K // tk)

    out = pl.pallas_call(
        _matmul_bias_relu_kernel,
        out_shape=jax.ShapeDtypeStruct((m_pad, cout_p), jnp.bfloat16),
        grid=grid,
        in_specs=[
            pl.BlockSpec((tm, tk), lambda i, j, kk: (i, kk)),
            pl.BlockSpec((tk, tn), lambda i, j, kk: (kk, j)),
            pl.BlockSpec((1, tn), lambda i, j, kk: (0, j)),
        ],
        out_specs=pl.BlockSpec((tm, tn), lambda i, j, kk: (i, j)),
        scratch_shapes=[pltpu.VMEM((tm, tn), jnp.float32)],
        compiler_params=pltpu.CompilerParams(
            dimension_semantics=("parallel", "parallel", "arbitrary"),
            vmem_limit_bytes=VMEM_LIMIT),
    )(patches, w_mat, bias)

    y = out[:M].reshape(N, Ho, Wo, cout_p)
    return y, cout


def maxpool_3x3_s2(x_nhwc):
    N, H, W, C = x_nhwc.shape
    Ho = (H - 3) // 2 + 1
    Wo = (W - 3) // 2 + 1
    # Only 3 column-phase strided views (instead of a 9x stacked tensor);
    # row taps are reduced inside the kernel from the VMEM-resident block.
    cols = [x_nhwc[:, :, j:j + 2 * (Wo - 1) + 1:2, :] for j in range(3)]
    tc = LANE if C % LANE == 0 else C
    imap = lambda n, c: (n, 0, 0, c)
    return pl.pallas_call(
        _maxpool_3x3_s2_kernel,
        out_shape=jax.ShapeDtypeStruct((N, Ho, Wo, C), x_nhwc.dtype),
        grid=(N, C // tc),
        in_specs=[pl.BlockSpec((1, H, Wo, tc), imap)] * 3,
        out_specs=pl.BlockSpec((1, Ho, Wo, tc), imap),
        compiler_params=pltpu.CompilerParams(
            dimension_semantics=("parallel", "parallel"),
            vmem_limit_bytes=VMEM_LIMIT),
    )(*cols)


# ----------------------------------------------------------------------------
# ReductionA forward (NCHW in/out, like the PyTorch module)
# ----------------------------------------------------------------------------
def reduction_a_forward(x_nchw, params):
    x = jnp.transpose(x_nchw, (0, 2, 3, 1))  # NCHW -> NHWC
    # TODO(synk): write branches straight into channel-offset slices of one
    # preallocated NHWC buffer and keep NHWC end-to-end to drop the concat and
    # the two full-tensor transposes.
    b1 = maxpool_3x3_s2(x)                                       # 384 ch, f32
    b2, c2 = conv_bn_relu(x, params["branch2"], 3, 2, 0)         # 384 ch
    t, _ = conv_bn_relu(x, params["branch3_0"], 1, 1, 0)         # 192 -> pad 256
    t, _ = conv_bn_relu(t, params["branch3_1"], 3, 1, 1)         # 224 -> pad 256
    b3, c3 = conv_bn_relu(t, params["branch3_2"], 3, 2, 0)       # 256 ch

    out = jnp.concatenate(
        [b1.astype(jnp.float32),
         b2[..., :c2].astype(jnp.float32),
         b3[..., :c3].astype(jnp.float32)], axis=-1)
    return jnp.transpose(out, (0, 3, 1, 2))                      # NHWC -> NCHW


# ----------------------------------------------------------------------------
# Pure-JAX (XLA) reference — independent algorithm for a sanity check
# ----------------------------------------------------------------------------
def _conv_bn_relu_ref(x_nhwc, p, stride, padding):
    w = jnp.transpose(p["w"], (2, 3, 1, 0))  # HWIO
    y = jax.lax.conv_general_dilated(
        x_nhwc, w, (stride, stride), [(padding, padding)] * 2,
        dimension_numbers=("NHWC", "HWIO", "NHWC"))
    scale, bias = _fold_bn(p)
    return jnp.maximum(y * scale + bias, 0.0)


def _reduction_a_ref(x_nchw, params):
    x = jnp.transpose(x_nchw, (0, 2, 3, 1))
    b1 = jax.lax.reduce_window(x, -jnp.inf, jax.lax.max,
                               (1, 3, 3, 1), (1, 2, 2, 1), "VALID")
    b2 = _conv_bn_relu_ref(x, params["branch2"], 2, 0)
    t = _conv_bn_relu_ref(x, params["branch3_0"], 1, 0)
    t = _conv_bn_relu_ref(t, params["branch3_1"], 1, 1)
    b3 = _conv_bn_relu_ref(t, params["branch3_2"], 2, 0)
    out = jnp.concatenate([b1, b2, b3], axis=-1)
    return jnp.transpose(out, (0, 3, 1, 2))


# ----------------------------------------------------------------------------
# Deterministic parameter construction (conv_block = Conv2d + BN2d + ReLU)
# ----------------------------------------------------------------------------
def _init_conv_block(key, cin, cout, k):
    ks = jax.random.split(key, 6)
    fan_in = cin * k * k
    return dict(
        w=jax.random.normal(ks[0], (cout, cin, k, k), jnp.float32) / np.sqrt(fan_in),
        b=0.1 * jax.random.normal(ks[1], (cout,), jnp.float32),
        gamma=1.0 + 0.1 * jax.random.normal(ks[2], (cout,), jnp.float32),
        beta=0.1 * jax.random.normal(ks[3], (cout,), jnp.float32),
        mean=0.1 * jax.random.normal(ks[4], (cout,), jnp.float32),
        var=0.5 + jax.random.uniform(ks[5], (cout,), jnp.float32),
    )


def init_reduction_a_params(key):
    k2, k30, k31, k32 = jax.random.split(key, 4)
    return {
        "branch2": _init_conv_block(k2, 384, 384, 3),
        "branch3_0": _init_conv_block(k30, 384, 192, 1),
        "branch3_1": _init_conv_block(k31, 192, 224, 3),
        "branch3_2": _init_conv_block(k32, 224, 256, 3),
    }


# ----------------------------------------------------------------------------
if __name__ == "__main__":
    key = jax.random.PRNGKey(0)
    kx, kp = jax.random.split(key)

    # Input: NCHW, 384 channels required by the module; small 9x9 spatial.
    x = jax.random.normal(kx, (2, 384, 9, 9), jnp.float32)
    params = init_reduction_a_params(kp)

    fwd = jax.jit(functools.partial(reduction_a_forward, params=params))
    out = jax.block_until_ready(fwd(x))

    assert out.shape == (2, 384 + 384 + 256, 4, 4), out.shape

    ref = jax.block_until_ready(_reduction_a_ref(x, params))
    err = float(jnp.max(jnp.abs(out - ref)))
    assert jnp.allclose(out, ref, atol=0.2, rtol=0.1), err

    print("KERNEL_OK")
</pallas_src>

<mosaic_0001>
module attributes {stable_mosaic.version = 11 : i64} {
  func.func @_matmul_bias_relu_kernel(%arg0: i32, %arg1: i32, %arg2: i32, %arg3: memref<176x384xbf16, #tpu.memory_space<vmem>>, %arg4: memref<384x256xbf16, #tpu.memory_space<vmem>>, %arg5: memref<1x256xf32, #tpu.memory_space<vmem>>, %arg6: memref<176x256xbf16, #tpu.memory_space<vmem>>, %arg7: memref<176x256xf32, #tpu.memory_space<vmem>>) attributes {dimension_semantics = [#tpu.dimension_semantics<parallel>, #tpu.dimension_semantics<parallel>, #tpu.dimension_semantics<arbitrary>], iteration_bounds = array<i64: 1, 1, 1>, scalar_prefetch = 0 : i64, scratch_operands = 1 : i64, tpu.core_type = #tpu.core_type<tc>, window_params = [{transform_indices = @transform_0, window_bounds = array<i64: 176, 384>}, {transform_indices = @transform_1, window_bounds = array<i64: 384, 256>}, {transform_indices = @transform_2, window_bounds = array<i64: 1, 256>}, {transform_indices = @transform_3, window_bounds = array<i64: 176, 256>}]} {
    %c0_i32 = arith.constant 0 : i32
    %0 = arith.cmpi eq, %arg2, %c0_i32 : i32
    %1 = arith.extui %0 : i1 to i32
    %c0_i32_0 = arith.constant 0 : i32
    %2 = arith.cmpi ne, %1, %c0_i32_0 : i32
    scf.if %2 {
      %cst_10 = arith.constant 0.000000e+00 : f32
      %12 = vector.broadcast %cst_10 : f32 to vector<176x256xf32>
      %c0_11 = arith.constant 0 : index
      %c0_12 = arith.constant 0 : index
      %13 = vector.load %arg7[%c0_11, %c0_12] : memref<176x256xf32, #tpu.memory_space<vmem>>, vector<176x256xf32>
      tpu.vector_store %arg7[%c0_11, %c0_12], %12 {strides = array<i32>} : memref<176x256xf32, #tpu.memory_space<vmem>>, vector<176x256xf32>,
    } else {
    }
    %c0 = arith.constant 0 : index
    %c0_1 = arith.constant 0 : index
    %3 = vector.load %arg7[%c0, %c0_1] : memref<176x256xf32, #tpu.memory_space<vmem>>, vector<176x256xf32>
    %c0_2 = arith.constant 0 : index
    %c0_3 = arith.constant 0 : index
    %4 = vector.load %arg3[%c0_2, %c0_3] : memref<176x384xbf16, #tpu.memory_space<vmem>>, vector<176x384xbf16>
    %c0_4 = arith.constant 0 : index
    %c0_5 = arith.constant 0 : index
    %5 = vector.load %arg4[%c0_4, %c0_5] : memref<384x256xbf16, #tpu.memory_space<vmem>>, vector<384x256xbf16>
    %cst = arith.constant dense<0.000000e+00> : vector<176x256xf32>
    %6 = tpu.matmul %4, %5, %cst {dimension_numbers = #tpu.dot_dimension_numbers<[1], [0], [0], [1], [0, 0, 1, 1], [], []>} : vector<176x384xbf16>, vector<384x256xbf16>, vector<176x256xf32> -> vector<176x256xf32>
    %7 = arith.addf %3, %6 : vector<176x256xf32>
    %c0_6 = arith.constant 0 : index
    %c0_7 = arith.constant 0 : index
    %8 = vector.load %arg7[%c0_6, %c0_7] : memref<176x256xf32, #tpu.memory_space<vmem>>, vector<176x256xf32>
    tpu.vector_store %arg7[%c0_6, %c0_7], %7 {strides = array<i32>} : memref<176x256xf32, #tpu.memory_space<vmem>>, vector<176x256xf32>,
    %c0_i32_8 = arith.constant 0 : i32
    %9 = arith.cmpi eq, %arg2, %c0_i32_8 : i32
    %10 = arith.extui %9 : i1 to i32
    %c0_i32_9 = arith.constant 0 : i32
    %11 = arith.cmpi ne, %10, %c0_i32_9 : i32
    scf.if %11 {
      %c0_10 = arith.constant 0 : index
      %c0_11 = arith.constant 0 : index
      %12 = vector.load %arg7[%c0_10, %c0_11] : memref<176x256xf32, #tpu.memory_space<vmem>>, vector<176x256xf32>
      %c0_12 = arith.constant 0 : index
      %c0_13 = arith.constant 0 : index
      %13 = vector.load %arg5[%c0_12, %c0_13] : memref<1x256xf32, #tpu.memory_space<vmem>>, vector<1x256xf32>
      %14 = vector.broadcast %13 : vector<1x256xf32> to vector<176x256xf32>
      %15 = arith.addf %12, %14 : vector<176x256xf32>
      %cst_14 = arith.constant 0.000000e+00 : f32
      %16 = vector.broadcast %cst_14 : f32 to vector<176x256xf32>
      %17 = arith.maximumf %15, %16 : vector<176x256xf32>
      %18 = arith.truncf %17 : vector<176x256xf32> to vector<176x256xbf16>
      %c0_15 = arith.constant 0 : index
      %c0_16 = arith.constant 0 : index
      %19 = vector.load %arg6[%c0_15, %c0_16] : memref<176x256xbf16, #tpu.memory_space<vmem>>, vector<176x256xbf16>
      tpu.vector_store %arg6[%c0_15, %c0_16], %18 {strides = array<i32>} : memref<176x256xbf16, #tpu.memory_space<vmem>>, vector<176x256xbf16>,
    } else {
    }
    return
  }
  func.func @transform_0(%arg0: i32, %arg1: i32, %arg2: i32) -> (i32, i32) {
    %c0_i32 = arith.constant 0 : i32
    return %arg0, %arg2 : i32, i32
  }
  func.func @transform_1(%arg0: i32, %arg1: i32, %arg2: i32) -> (i32, i32) {
    %c0_i32 = arith.constant 0 : i32
    return %arg2, %arg1 : i32, i32
  }
  func.func @transform_2(%arg0: i32, %arg1: i32, %arg2: i32) -> (i32, i32) {
    %c0_i32 = arith.constant 0 : i32
    %c0_i32_0 = arith.constant 0 : i32
    return %c0_i32, %arg1 : i32, i32
  }
  func.func @transform_3(%arg0: i32, %arg1: i32, %arg2: i32) -> (i32, i32) {
    %c0_i32 = arith.constant 0 : i32
    return %arg0, %arg1 : i32, i32
  }
}

module attributes {stable_mosaic.version = 11 : i64} {
  func.func @_matmul_bias_relu_kernel(%arg0: i32, %arg1: i32, %arg2: i32, %arg3: memref<176x768xbf16, #tpu.memory_space<vmem>>, %arg4: memref<768x256xbf16, #tpu.memory_space<vmem>>, %arg5: memref<1x256xf32, #tpu.memory_space<vmem>>, %arg6: memref<176x256xbf16, #tpu.memory_space<vmem>>, %arg7: memref<176x256xf32, #tpu.memory_space<vmem>>) attributes {dimension_semantics = [#tpu.dimension_semantics<parallel>, #tpu.dimension_semantics<parallel>, #tpu.dimension_semantics<arbitrary>], iteration_bounds = array<i64: 1, 1, 3>, scalar_prefetch = 0 : i64, scratch_operands = 1 : i64, tpu.core_type = #tpu.core_type<tc>, window_params = [{transform_indices = @transform_0, window_bounds = array<i64: 176, 768>}, {transform_indices = @transform_1, window_bounds = array<i64: 768, 256>}, {transform_indices = @transform_2, window_bounds = array<i64: 1, 256>}, {transform_indices = @transform_3, window_bounds = array<i64: 176, 256>}]} {
    %c0_i32 = arith.constant 0 : i32
    %0 = arith.cmpi eq, %arg2, %c0_i32 : i32
    %1 = arith.extui %0 : i1 to i32
    %c0_i32_0 = arith.constant 0 : i32
    %2 = arith.cmpi ne, %1, %c0_i32_0 : i32
    scf.if %2 {
      %cst_9 = arith.constant 0.000000e+00 : f32
      %12 = vector.broadcast %cst_9 : f32 to vector<176x256xf32>
      %c0_10 = arith.constant 0 : index
      %c0_11 = arith.constant 0 : index
      %13 = vector.load %arg7[%c0_10, %c0_11] : memref<176x256xf32, #tpu.memory_space<vmem>>, vector<176x256xf32>
      tpu.vector_store %arg7[%c0_10, %c0_11], %12 {strides = array<i32>} : memref<176x256xf32, #tpu.memory_space<vmem>>, vector<176x256xf32>,
    } else {
    }
    %c0 = arith.constant 0 : index
    %c0_1 = arith.constant 0 : index
    %3 = vector.load %arg7[%c0, %c0_1] : memref<176x256xf32, #tpu.memory_space<vmem>>, vector<176x256xf32>
    %c0_2 = arith.constant 0 : index
    %c0_3 = arith.constant 0 : index
    %4 = vector.load %arg3[%c0_2, %c0_3] : memref<176x768xbf16, #tpu.memory_space<vmem>>, vector<176x768xbf16>
    %c0_4 = arith.constant 0 : index
    %c0_5 = arith.constant 0 : index
    %5 = vector.load %arg4[%c0_4, %c0_5] : memref<768x256xbf16, #tpu.memory_space<vmem>>, vector<768x256xbf16>
    %cst = arith.constant dense<0.000000e+00> : vector<176x256xf32>
    %6 = tpu.matmul %4, %5, %cst {dimension_numbers = #tpu.dot_dimension_numbers<[1], [0], [0], [1], [0, 0, 1, 1], [], []>} : vector<176x768xbf16>, vector<768x256xbf16>, vector<176x256xf32> -> vector<176x256xf32>
    %7 = arith.addf %3, %6 : vector<176x256xf32>
    %c0_6 = arith.constant 0 : index
    %c0_7 = arith.constant 0 : index
    %8 = vector.load %arg7[%c0_6, %c0_7] : memref<176x256xf32, #tpu.memory_space<vmem>>, vector<176x256xf32>
    tpu.vector_store %arg7[%c0_6, %c0_7], %7 {strides = array<i32>} : memref<176x256xf32, #tpu.memory_space<vmem>>, vector<176x256xf32>,
    %c2_i32 = arith.constant 2 : i32
    %9 = arith.cmpi eq, %arg2, %c2_i32 : i32
    %10 = arith.extui %9 : i1 to i32
    %c0_i32_8 = arith.constant 0 : i32
    %11 = arith.cmpi ne, %10, %c0_i32_8 : i32
    scf.if %11 {
      %c0_9 = arith.constant 0 : index
      %c0_10 = arith.constant 0 : index
      %12 = vector.load %arg7[%c0_9, %c0_10] : memref<176x256xf32, #tpu.memory_space<vmem>>, vector<176x256xf32>
      %c0_11 = arith.constant 0 : index
      %c0_12 = arith.constant 0 : index
      %13 = vector.load %arg5[%c0_11, %c0_12] : memref<1x256xf32, #tpu.memory_space<vmem>>, vector<1x256xf32>
      %14 = vector.broadcast %13 : vector<1x256xf32> to vector<176x256xf32>
      %15 = arith.addf %12, %14 : vector<176x256xf32>
      %cst_13 = arith.constant 0.000000e+00 : f32
      %16 = vector.broadcast %cst_13 : f32 to vector<176x256xf32>
      %17 = arith.maximumf %15, %16 : vector<176x256xf32>
      %18 = arith.truncf %17 : vector<176x256xf32> to vector<176x256xbf16>
      %c0_14 = arith.constant 0 : index
      %c0_15 = arith.constant 0 : index
      %19 = vector.load %arg6[%c0_14, %c0_15] : memref<176x256xbf16, #tpu.memory_space<vmem>>, vector<176x256xbf16>
      tpu.vector_store %arg6[%c0_14, %c0_15], %18 {strides = array<i32>} : memref<176x256xbf16, #tpu.memory_space<vmem>>, vector<176x256xbf16>,
    } else {
    }
    return
  }
  func.func @transform_0(%arg0: i32, %arg1: i32, %arg2: i32) -> (i32, i32) {
    %c0_i32 = arith.constant 0 : i32
    return %arg0, %arg2 : i32, i32
  }
  func.func @transform_1(%arg0: i32, %arg1: i32, %arg2: i32) -> (i32, i32) {
    %c0_i32 = arith.constant 0 : i32
    return %arg2, %arg1 : i32, i32
  }
  func.func @transform_2(%arg0: i32, %arg1: i32, %arg2: i32) -> (i32, i32) {
    %c0_i32 = arith.constant 0 : i32
    %c0_i32_0 = arith.constant 0 : i32
    return %c0_i32, %arg1 : i32, i32
  }
  func.func @transform_3(%arg0: i32, %arg1: i32, %arg2: i32) -> (i32, i32) {
    %c0_i32 = arith.constant 0 : i32
    return %arg0, %arg1 : i32, i32
  }
}

module attributes {stable_mosaic.version = 11 : i64} {
  func.func @_matmul_bias_relu_kernel(%arg0: i32, %arg1: i32, %arg2: i32, %arg3: memref<32x768xbf16, #tpu.memory_space<vmem>>, %arg4: memref<768x256xbf16, #tpu.memory_space<vmem>>, %arg5: memref<1x256xf32, #tpu.memory_space<vmem>>, %arg6: memref<32x256xbf16, #tpu.memory_space<vmem>>, %arg7: memref<32x256xf32, #tpu.memory_space<vmem>>) attributes {dimension_semantics = [#tpu.dimension_semantics<parallel>, #tpu.dimension_semantics<parallel>, #tpu.dimension_semantics<arbitrary>], iteration_bounds = array<i64: 1, 1, 3>, scalar_prefetch = 0 : i64, scratch_operands = 1 : i64, tpu.core_type = #tpu.core_type<tc>, window_params = [{transform_indices = @transform_0, window_bounds = array<i64: 32, 768>}, {transform_indices = @transform_1, window_bounds = array<i64: 768, 256>}, {transform_indices = @transform_2, window_bounds = array<i64: 1, 256>}, {transform_indices = @transform_3, window_bounds = array<i64: 32, 256>}]} {
    %c0_i32 = arith.constant 0 : i32
    %0 = arith.cmpi eq, %arg2, %c0_i32 : i32
    %1 = arith.extui %0 : i1 to i32
    %c0_i32_0 = arith.constant 0 : i32
    %2 = arith.cmpi ne, %1, %c0_i32_0 : i32
    scf.if %2 {
      %cst_9 = arith.constant 0.000000e+00 : f32
      %12 = vector.broadcast %cst_9 : f32 to vector<32x256xf32>
      %c0_10 = arith.constant 0 : index
      %c0_11 = arith.constant 0 : index
      %13 = vector.load %arg7[%c0_10, %c0_11] : memref<32x256xf32, #tpu.memory_space<vmem>>, vector<32x256xf32>
      tpu.vector_store %arg7[%c0_10, %c0_11], %12 {strides = array<i32>} : memref<32x256xf32, #tpu.memory_space<vmem>>, vector<32x256xf32>,
    } else {
    }
    %c0 = arith.constant 0 : index
    %c0_1 = arith.constant 0 : index
    %3 = vector.load %arg7[%c0, %c0_1] : memref<32x256xf32, #tpu.memory_space<vmem>>, vector<32x256xf32>
    %c0_2 = arith.constant 0 : index
    %c0_3 = arith.constant 0 : index
    %4 = vector.load %arg3[%c0_2, %c0_3] : memref<32x768xbf16, #tpu.memory_space<vmem>>, vector<32x768xbf16>
    %c0_4 = arith.constant 0 : index
    %c0_5 = arith.constant 0 : index
    %5 = vector.load %arg4[%c0_4, %c0_5] : memref<768x256xbf16, #tpu.memory_space<vmem>>, vector<768x256xbf16>
    %cst = arith.constant dense<0.000000e+00> : vector<32x256xf32>
    %6 = tpu.matmul %4, %5, %cst {dimension_numbers = #tpu.dot_dimension_numbers<[1], [0], [0], [1], [0, 0, 1, 1], [], []>} : vector<32x768xbf16>, vector<768x256xbf16>, vector<32x256xf32> -> vector<32x256xf32>
    %7 = arith.addf %3, %6 : vector<32x256xf32>
    %c0_6 = arith.constant 0 : index
    %c0_7 = arith.constant 0 : index
    %8 = vector.load %arg7[%c0_6, %c0_7] : memref<32x256xf32, #tpu.memory_space<vmem>>, vector<32x256xf32>
    tpu.vector_store %arg7[%c0_6, %c0_7], %7 {strides = array<i32>} : memref<32x256xf32, #tpu.memory_space<vmem>>, vector<32x256xf32>,
    %c2_i32 = arith.constant 2 : i32
    %9 = arith.cmpi eq, %arg2, %c2_i32 : i32
    %10 = arith.extui %9 : i1 to i32
    %c0_i32_8 = arith.constant 0 : i32
    %11 = arith.cmpi ne, %10, %c0_i32_8 : i32
    scf.if %11 {
      %c0_9 = arith.constant 0 : index
      %c0_10 = arith.constant 0 : index
      %12 = vector.load %arg7[%c0_9, %c0_10] : memref<32x256xf32, #tpu.memory_space<vmem>>, vector<32x256xf32>
      %c0_11 = arith.constant 0 : index
      %c0_12 = arith.constant 0 : index
      %13 = vector.load %arg5[%c0_11, %c0_12] : memref<1x256xf32, #tpu.memory_space<vmem>>, vector<1x256xf32>
      %14 = vector.broadcast %13 : vector<1x256xf32> to vector<32x256xf32>
      %15 = arith.addf %12, %14 : vector<32x256xf32>
      %cst_13 = arith.constant 0.000000e+00 : f32
      %16 = vector.broadcast %cst_13 : f32 to vector<32x256xf32>
      %17 = arith.maximumf %15, %16 : vector<32x256xf32>
      %18 = arith.truncf %17 : vector<32x256xf32> to vector<32x256xbf16>
      %c0_14 = arith.constant 0 : index
      %c0_15 = arith.constant 0 : index
      %19 = vector.load %arg6[%c0_14, %c0_15] : memref<32x256xbf16, #tpu.memory_space<vmem>>, vector<32x256xbf16>
      tpu.vector_store %arg6[%c0_14, %c0_15], %18 {strides = array<i32>} : memref<32x256xbf16, #tpu.memory_space<vmem>>, vector<32x256xbf16>,
    } else {
    }
    return
  }
  func.func @transform_0(%arg0: i32, %arg1: i32, %arg2: i32) -> (i32, i32) {
    %c0_i32 = arith.constant 0 : i32
    return %arg0, %arg2 : i32, i32
  }
  func.func @transform_1(%arg0: i32, %arg1: i32, %arg2: i32) -> (i32, i32) {
    %c0_i32 = arith.constant 0 : i32
    return %arg2, %arg1 : i32, i32
  }
  func.func @transform_2(%arg0: i32, %arg1: i32, %arg2: i32) -> (i32, i32) {
    %c0_i32 = arith.constant 0 : i32
    %c0_i32_0 = arith.constant 0 : i32
    return %c0_i32, %arg1 : i32, i32
  }
  func.func @transform_3(%arg0: i32, %arg1: i32, %arg2: i32) -> (i32, i32) {
    %c0_i32 = arith.constant 0 : i32
    return %arg0, %arg1 : i32, i32
  }
}

module attributes {stable_mosaic.version = 11 : i64} {
  func.func @_matmul_bias_relu_kernel(%arg0: i32, %arg1: i32, %arg2: i32, %arg3: memref<32x384xbf16, #tpu.memory_space<vmem>>, %arg4: memref<384x384xbf16, #tpu.memory_space<vmem>>, %arg5: memref<1x384xf32, #tpu.memory_space<vmem>>, %arg6: memref<32x384xbf16, #tpu.memory_space<vmem>>, %arg7: memref<32x384xf32, #tpu.memory_space<vmem>>) attributes {dimension_semantics = [#tpu.dimension_semantics<parallel>, #tpu.dimension_semantics<parallel>, #tpu.dimension_semantics<arbitrary>], iteration_bounds = array<i64: 1, 1, 9>, scalar_prefetch = 0 : i64, scratch_operands = 1 : i64, tpu.core_type = #tpu.core_type<tc>, window_params = [{transform_indices = @transform_0, window_bounds = array<i64: 32, 384>}, {transform_indices = @transform_1, window_bounds = array<i64: 384, 384>}, {transform_indices = @transform_2, window_bounds = array<i64: 1, 384>}, {transform_indices = @transform_3, window_bounds = array<i64: 32, 384>}]} {
    %c0_i32 = arith.constant 0 : i32
    %0 = arith.cmpi eq, %arg2, %c0_i32 : i32
    %1 = arith.extui %0 : i1 to i32
    %c0_i32_0 = arith.constant 0 : i32
    %2 = arith.cmpi ne, %1, %c0_i32_0 : i32
    scf.if %2 {
      %cst_9 = arith.constant 0.000000e+00 : f32
      %12 = vector.broadcast %cst_9 : f32 to vector<32x384xf32>
      %c0_10 = arith.constant 0 : index
      %c0_11 = arith.constant 0 : index
      %13 = vector.load %arg7[%c0_10, %c0_11] : memref<32x384xf32, #tpu.memory_space<vmem>>, vector<32x384xf32>
      tpu.vector_store %arg7[%c0_10, %c0_11], %12 {strides = array<i32>} : memref<32x384xf32, #tpu.memory_space<vmem>>, vector<32x384xf32>,
    } else {
    }
    %c0 = arith.constant 0 : index
    %c0_1 = arith.constant 0 : index
    %3 = vector.load %arg7[%c0, %c0_1] : memref<32x384xf32, #tpu.memory_space<vmem>>, vector<32x384xf32>
    %c0_2 = arith.constant 0 : index
    %c0_3 = arith.constant 0 : index
    %4 = vector.load %arg3[%c0_2, %c0_3] : memref<32x384xbf16, #tpu.memory_space<vmem>>, vector<32x384xbf16>
    %c0_4 = arith.constant 0 : index
    %c0_5 = arith.constant 0 : index
    %5 = vector.load %arg4[%c0_4, %c0_5] : memref<384x384xbf16, #tpu.memory_space<vmem>>, vector<384x384xbf16>
    %cst = arith.constant dense<0.000000e+00> : vector<32x384xf32>
    %6 = tpu.matmul %4, %5, %cst {dimension_numbers = #tpu.dot_dimension_numbers<[1], [0], [0], [1], [0, 0, 1, 1], [], []>} : vector<32x384xbf16>, vector<384x384xbf16>, vector<32x384xf32> -> vector<32x384xf32>
    %7 = arith.addf %3, %6 : vector<32x384xf32>
    %c0_6 = arith.constant 0 : index
    %c0_7 = arith.constant 0 : index
    %8 = vector.load %arg7[%c0_6, %c0_7] : memref<32x384xf32, #tpu.memory_space<vmem>>, vector<32x384xf32>
    tpu.vector_store %arg7[%c0_6, %c0_7], %7 {strides = array<i32>} : memref<32x384xf32, #tpu.memory_space<vmem>>, vector<32x384xf32>,
    %c8_i32 = arith.constant 8 : i32
    %9 = arith.cmpi eq, %arg2, %c8_i32 : i32
    %10 = arith.extui %9 : i1 to i32
    %c0_i32_8 = arith.constant 0 : i32
    %11 = arith.cmpi ne, %10, %c0_i32_8 : i32
    scf.if %11 {
      %c0_9 = arith.constant 0 : index
      %c0_10 = arith.constant 0 : index
      %12 = vector.load %arg7[%c0_9, %c0_10] : memref<32x384xf32, #tpu.memory_space<vmem>>, vector<32x384xf32>
      %c0_11 = arith.constant 0 : index
      %c0_12 = arith.constant 0 : index
      %13 = vector.load %arg5[%c0_11, %c0_12] : memref<1x384xf32, #tpu.memory_space<vmem>>, vector<1x384xf32>
      %14 = vector.broadcast %13 : vector<1x384xf32> to vector<32x384xf32>
      %15 = arith.addf %12, %14 : vector<32x384xf32>
      %cst_13 = arith.constant 0.000000e+00 : f32
      %16 = vector.broadcast %cst_13 : f32 to vector<32x384xf32>
      %17 = arith.maximumf %15, %16 : vector<32x384xf32>
      %18 = arith.truncf %17 : vector<32x384xf32> to vector<32x384xbf16>
      %c0_14 = arith.constant 0 : index
      %c0_15 = arith.constant 0 : index
      %19 = vector.load %arg6[%c0_14, %c0_15] : memref<32x384xbf16, #tpu.memory_space<vmem>>, vector<32x384xbf16>
      tpu.vector_store %arg6[%c0_14, %c0_15], %18 {strides = array<i32>} : memref<32x384xbf16, #tpu.memory_space<vmem>>, vector<32x384xbf16>,
    } else {
    }
    return
  }
  func.func @transform_0(%arg0: i32, %arg1: i32, %arg2: i32) -> (i32, i32) {
    %c0_i32 = arith.constant 0 : i32
    return %arg0, %arg2 : i32, i32
  }
  func.func @transform_1(%arg0: i32, %arg1: i32, %arg2: i32) -> (i32, i32) {
    %c0_i32 = arith.constant 0 : i32
    return %arg2, %arg1 : i32, i32
  }
  func.func @transform_2(%arg0: i32, %arg1: i32, %arg2: i32) -> (i32, i32) {
    %c0_i32 = arith.constant 0 : i32
    %c0_i32_0 = arith.constant 0 : i32
    return %c0_i32, %arg1 : i32, i32
  }
  func.func @transform_3(%arg0: i32, %arg1: i32, %arg2: i32) -> (i32, i32) {
    %c0_i32 = arith.constant 0 : i32
    return %arg0, %arg1 : i32, i32
  }
}

module attributes {stable_mosaic.version = 11 : i64} {
  func.func @_maxpool_3x3_s2_kernel(%arg0: i32, %arg1: i32, %arg2: memref<1x9x4x128xf32, #tpu.memory_space<vmem>>, %arg3: memref<1x9x4x128xf32, #tpu.memory_space<vmem>>, %arg4: memref<1x9x4x128xf32, #tpu.memory_space<vmem>>, %arg5: memref<1x4x4x128xf32, #tpu.memory_space<vmem>>) attributes {dimension_semantics = [#tpu.dimension_semantics<parallel>, #tpu.dimension_semantics<parallel>], iteration_bounds = array<i64: 2, 3>, scalar_prefetch = 0 : i64, scratch_operands = 0 : i64, tpu.core_type = #tpu.core_type<tc>, window_params = [{transform_indices = @transform_0, window_bounds = array<i64: 1, 9, 4, 128>}, {transform_indices = @transform_1, window_bounds = array<i64: 1, 9, 4, 128>}, {transform_indices = @transform_2, window_bounds = array<i64: 1, 9, 4, 128>}, {transform_indices = @transform_3, window_bounds = array<i64: 1, 4, 4, 128>}]} {
    %c0 = arith.constant 0 : index
    %c0_0 = arith.constant 0 : index
    %c0_1 = arith.constant 0 : index
    %c0_2 = arith.constant 0 : index
    %0 = vector.load %arg2[%c0, %c0_0, %c0_1, %c0_2] : memref<1x9x4x128xf32, #tpu.memory_space<vmem>>, vector<1x8x4x128xf32>
    %1 = vector.shape_cast %0 : vector<1x8x4x128xf32> to vector<8x4x128xf32>
    %2 = vector.shape_cast %1 : vector<8x4x128xf32> to vector<4x2x4x128xf32>
    %c0_3 = arith.constant 0 : index
    %c1 = arith.constant 1 : index
    %c0_4 = arith.constant 0 : index
    %c0_5 = arith.constant 0 : index
    %3 = vector.load %arg2[%c0_3, %c1, %c0_4, %c0_5] : memref<1x9x4x128xf32, #tpu.memory_space<vmem>>, vector<1x8x4x128xf32>
    %4 = vector.shape_cast %3 : vector<1x8x4x128xf32> to vector<8x4x128xf32>
    %5 = vector.shape_cast %4 : vector<8x4x128xf32> to vector<4x2x4x128xf32>
    %6 = vector.extract_strided_slice %2 {offsets = [0, 0, 0, 0], sizes = [4, 1, 4, 128], strides = [1, 1, 1, 1]} : vector<4x2x4x128xf32> to vector<4x1x4x128xf32>
    %7 = vector.shape_cast %6 : vector<4x1x4x128xf32> to vector<4x4x128xf32>
    %8 = vector.extract_strided_slice %2 {offsets = [0, 1, 0, 0], sizes = [4, 1, 4, 128], strides = [1, 1, 1, 1]} : vector<4x2x4x128xf32> to vector<4x1x4x128xf32>
    %9 = vector.shape_cast %8 : vector<4x1x4x128xf32> to vector<4x4x128xf32>
    %10 = arith.maximumf %7, %9 : vector<4x4x128xf32>
    %11 = vector.extract_strided_slice %5 {offsets = [0, 1, 0, 0], sizes = [4, 1, 4, 128], strides = [1, 1, 1, 1]} : vector<4x2x4x128xf32> to vector<4x1x4x128xf32>
    %12 = vector.shape_cast %11 : vector<4x1x4x128xf32> to vector<4x4x128xf32>
    %13 = arith.maximumf %10, %12 : vector<4x4x128xf32>
    %c0_6 = arith.constant 0 : index
    %c0_7 = arith.constant 0 : index
    %c0_8 = arith.constant 0 : index
    %c0_9 = arith.constant 0 : index
    %14 = vector.load %arg3[%c0_6, %c0_7, %c0_8, %c0_9] : memref<1x9x4x128xf32, #tpu.memory_space<vmem>>, vector<1x8x4x128xf32>
    %15 = vector.shape_cast %14 : vector<1x8x4x128xf32> to vector<8x4x128xf32>
    %16 = vector.shape_cast %15 : vector<8x4x128xf32> to vector<4x2x4x128xf32>
    %c0_10 = arith.constant 0 : index
    %c1_11 = arith.constant 1 : index
    %c0_12 = arith.constant 0 : index
    %c0_13 = arith.constant 0 : index
    %17 = vector.load %arg3[%c0_10, %c1_11, %c0_12, %c0_13] : memref<1x9x4x128xf32, #tpu.memory_space<vmem>>, vector<1x8x4x128xf32>
    %18 = vector.shape_cast %17 : vector<1x8x4x128xf32> to vector<8x4x128xf32>
    %19 = vector.shape_cast %18 : vector<8x4x128xf32> to vector<4x2x4x128xf32>
    %20 = vector.extract_strided_slice %16 {offsets = [0, 0, 0, 0], sizes = [4, 1, 4, 128], strides = [1, 1, 1, 1]} : vector<4x2x4x128xf32> to vector<4x1x4x128xf32>
    %21 = vector.shape_cast %20 : vector<4x1x4x128xf32> to vector<4x4x128xf32>
    %22 = vector.extract_strided_slice %16 {offsets = [0, 1, 0, 0], sizes = [4, 1, 4, 128], strides = [1, 1, 1, 1]} : vector<4x2x4x128xf32> to vector<4x1x4x128xf32>
    %23 = vector.shape_cast %22 : vector<4x1x4x128xf32> to vector<4x4x128xf32>
    %24 = arith.maximumf %21, %23 : vector<4x4x128xf32>
    %25 = vector.extract_strided_slice %19 {offsets = [0, 1, 0, 0], sizes = [4, 1, 4, 128], strides = [1, 1, 1, 1]} : vector<4x2x4x128xf32> to vector<4x1x4x128xf32>
    %26 = vector.shape_cast %25 : vector<4x1x4x128xf32> to vector<4x4x128xf32>
    %27 = arith.maximumf %24, %26 : vector<4x4x128xf32>
    %28 = arith.maximumf %13, %27 : vector<4x4x128xf32>
    %c0_14 = arith.constant 0 : index
    %c0_15 = arith.constant 0 : index
    %c0_16 = arith.constant 0 : index
    %c0_17 = arith.constant 0 : index
    %29 = vector.load %arg4[%c0_14, %c0_15, %c0_16, %c0_17] : memref<1x9x4x128xf32, #tpu.memory_space<vmem>>, vector<1x8x4x128xf32>
    %30 = vector.shape_cast %29 : vector<1x8x4x128xf32> to vector<8x4x128xf32>
    %31 = vector.shape_cast %30 : vector<8x4x128xf32> to vector<4x2x4x128xf32>
    %c0_18 = arith.constant 0 : index
    %c1_19 = arith.constant 1 : index
    %c0_20 = arith.constant 0 : index
    %c0_21 = arith.constant 0 : index
    %32 = vector.load %arg4[%c0_18, %c1_19, %c0_20, %c0_21] : memref<1x9x4x128xf32, #tpu.memory_space<vmem>>, vector<1x8x4x128xf32>
    %33 = vector.shape_cast %32 : vector<1x8x4x128xf32> to vector<8x4x128xf32>
    %34 = vector.shape_cast %33 : vector<8x4x128xf32> to vector<4x2x4x128xf32>
    %35 = vector.extract_strided_slice %31 {offsets = [0, 0, 0, 0], sizes = [4, 1, 4, 128], strides = [1, 1, 1, 1]} : vector<4x2x4x128xf32> to vector<4x1x4x128xf32>
    %36 = vector.shape_cast %35 : vector<4x1x4x128xf32> to vector<4x4x128xf32>
    %37 = vector.extract_strided_slice %31 {offsets = [0, 1, 0, 0], sizes = [4, 1, 4, 128], strides = [1, 1, 1, 1]} : vector<4x2x4x128xf32> to vector<4x1x4x128xf32>
    %38 = vector.shape_cast %37 : vector<4x1x4x128xf32> to vector<4x4x128xf32>
    %39 = arith.maximumf %36, %38 : vector<4x4x128xf32>
    %40 = vector.extract_strided_slice %34 {offsets = [0, 1, 0, 0], sizes = [4, 1, 4, 128], strides = [1, 1, 1, 1]} : vector<4x2x4x128xf32> to vector<4x1x4x128xf32>
    %41 = vector.shape_cast %40 : vector<4x1x4x128xf32> to vector<4x4x128xf32>
    %42 = arith.maximumf %39, %41 : vector<4x4x128xf32>
    %43 = arith.maximumf %28, %42 : vector<4x4x128xf32>
    %c0_22 = arith.constant 0 : index
    %c0_23 = arith.constant 0 : index
    %c0_24 = arith.constant 0 : index
    %c0_25 = arith.constant 0 : index
    %44 = vector.load %arg5[%c0_22, %c0_23, %c0_24, %c0_25] : memref<1x4x4x128xf32, #tpu.memory_space<vmem>>, vector<1x4x4x128xf32>
    %45 = vector.shape_cast %44 : vector<1x4x4x128xf32> to vector<4x4x128xf32>
    %46 = vector.shape_cast %43 : vector<4x4x128xf32> to vector<1x4x4x128xf32>
    tpu.vector_store %arg5[%c0_22, %c0_23, %c0_24, %c0_25], %46 {strides = array<i32>} : memref<1x4x4x128xf32, #tpu.memory_space<vmem>>, vector<1x4x4x128xf32>,
    return
  }
  func.func @transform_0(%arg0: i32, %arg1: i32) -> (i32, i32, i32, i32) {
    %c0_i32 = arith.constant 0 : i32
    %c0_i32_0 = arith.constant 0 : i32
    %c0_i32_1 = arith.constant 0 : i32
    return %arg0, %c0_i32, %c0_i32_0, %arg1 : i32, i32, i32, i32
  }
  func.func @transform_1(%arg0: i32, %arg1: i32) -> (i32, i32, i32, i32) {
    %c0_i32 = arith.constant 0 : i32
    %c0_i32_0 = arith.constant 0 : i32
    %c0_i32_1 = arith.constant 0 : i32
    return %arg0, %c0_i32, %c0_i32_0, %arg1 : i32, i32, i32, i32
  }
  func.func @transform_2(%arg0: i32, %arg1: i32) -> (i32, i32, i32, i32) {
    %c0_i32 = arith.constant 0 : i32
    %c0_i32_0 = arith.constant 0 : i32
    %c0_i32_1 = arith.constant 0 : i32
    return %arg0, %c0_i32, %c0_i32_0, %arg1 : i32, i32, i32, i32
  }
  func.func @transform_3(%arg0: i32, %arg1: i32) -> (i32, i32, i32, i32) {
    %c0_i32 = arith.constant 0 : i32
    %c0_i32_0 = arith.constant 0 : i32
    %c0_i32_1 = arith.constant 0 : i32
    return %arg0, %c0_i32, %c0_i32_0, %arg1 : i32, i32, i32, i32
  }
}

</mosaic_0001>

<bundles_post_ra>
// kernel: reduction_a_forward.7
= control target key start
LH: loop header
LB: loop body
LE: loop exit
PB: predicated region body
PF: predicated region fallthrough
CT: control target
= control target key end

     0   :  { %v1580_v1 = vmov 0   ;;  %s2044_s1 = inlined_call_operand.vmem [shape: bf16[384,256], index: 1, kind: input, shape index: {}]   ;;  %s2045_s0 = inlined_call_operand.vmem [shape: bf16[176,384], index: 0, kind: input, shape index: {}]   ;;  %s2046_s2 = inlined_call_operand.vmem [shape: f32[1,256], index: 2, kind: input, shape index: {}]   ;;  %s2047_s3 = inlined_call_operand.vmem [shape: bf16[176,256], index: 3, kind: output, shape index: {}]  }
   0x1   :  { %v1464_v0 = vld [vmem:[%s2044_s1 + $0x4] ss:$8 sps:$4 sm:$0xff]   ;;  %790 = vmatprep.mubr.bf16.mxu0 %v1580_v1  ;;  %v1466_v2 = vld [vmem:[%s2044_s1] ss:$8 sps:$4 sm:$0xff]   ;;  %v1467_v3 = vld [vmem:[%s2044_s1 + $0x14] ss:$8 sps:$4 sm:$0xff]  }
   0x2   :  { %615 = vmatprep.subr.bf16.mxu1 %v1464_v0  ;;  %v1469_v4 = vld [vmem:[%s2044_s1 + $0x10] ss:$8 sps:$4 sm:$0xff]   ;;  %v1470_v5 = vld [vmem:[%s2044_s1 + $0x24] ss:$8 sps:$4 sm:$0xff]   ;;  %v1472_v6 = vld [vmem:[%s2044_s1 + $0x20] ss:$8 sps:$4 sm:$0xff]  }
   0x3   :  { %616 = vmatpush1.bf16.msra.mxu1 %v1466_v2  ;;  %v1473_v7 = vld [vmem:[%s2044_s1 + $0x34] ss:$8 sps:$4 sm:$0xff]   ;;  %v1475_v8 = vld [vmem:[%s2044_s1 + $0x30] ss:$8 sps:$4 sm:$0xff]   ;;  %v1488_v9 = vld [vmem:[%s2044_s1 + $0x104] ss:$8 sps:$4 sm:$0xff]  }
   0x4   :  { %617 = vmatprep.subr.bf16.mxu1 %v1467_v3  ;;  %v1490_v10 = vld [vmem:[%s2044_s1 + $0x100] ss:$8 sps:$4 sm:$0xff]   ;;  %v1476_v11 = vld [vmem:[%s2044_s1 + $0x44] ss:$8 sps:$4 sm:$0xff]   ;;  %758 = vmatprep.subr.bf16.mxu0 %v1488_v9  ;;  %v1494_v12 = vld [vmem:[%s2044_s1 + $0x114] ss:$8 sps:$4 sm:$0xff]  }
   0x5   :  { %759 = vmatpush1.bf16.msra.mxu0 %v1490_v10  ;;  %v1496_v13 = vld [vmem:[%s2044_s1 + $0x110] ss:$8 sps:$4 sm:$0xff]   ;;  %v1478_v14 = vld [vmem:[%s2044_s1 + $0x40] ss:$8 sps:$4 sm:$0xff]   ;;  %v1479_v15 = vld [vmem:[%s2044_s1 + $0x54] ss:$8 sps:$4 sm:$0xff]  }
   0x6   :  { %760 = vmatprep.subr.bf16.mxu0 %v1494_v12  ;;  %v1500_v16 = vld [vmem:[%s2044_s1 + $0x124] ss:$8 sps:$4 sm:$0xff]   ;;  %v1502_v17 = vld [vmem:[%s2044_s1 + $0x120] ss:$8 sps:$4 sm:$0xff]   ;;  %v1481_v18 = vld [vmem:[%s2044_s1 + $0x50] ss:$8 sps:$4 sm:$0xff]  }
   0x7   :  { %618 = vmatpush1.bf16.msra.mxu1 %v1469_v4  ;;  %v1506_v19 = vld [vmem:[%s2044_s1 + $0x134] ss:$8 sps:$4 sm:$0xff]   ;;  %v1482_v20 = vld [vmem:[%s2044_s1 + $0x64] ss:$8 sps:$4 sm:$0xff]   ;;  %v1508_v21 = vld [vmem:[%s2044_s1 + $0x130] ss:$8 sps:$4 sm:$0xff]  }
   0x8   :  { %619 = vmatprep.subr.bf16.mxu1 %v1470_v5  ;;  %v1484_v22 = vld [vmem:[%s2044_s1 + $0x60] ss:$8 sps:$4 sm:$0xff]   ;;  %v1512_v23 = vld [vmem:[%s2044_s1 + $0x144] ss:$8 sps:$4 sm:$0xff]   ;;  %v1485_v24 = vld [vmem:[%s2044_s1 + $0x74] ss:$8 sps:$4 sm:$0xff]  }
   0x9   :  { %761 = vmatpush1.bf16.msra.mxu0 %v1496_v13  ;;  %v1514_v25 = vld [vmem:[%s2044_s1 + $0x140] ss:$8 sps:$4 sm:$0xff]   ;;  %v1487_v26 = vld [vmem:[%s2044_s1 + $0x70] ss:$8 sps:$4 sm:$0xff]   ;;  %v1518_v27 = vld [vmem:[%s2044_s1 + $0x154] ss:$8 sps:$4 sm:$0xff]  }
   0xa   :  { %762 = vmatprep.subr.bf16.mxu0 %v1500_v16  ;;  %v1491_v28 = vld [vmem:[%s2044_s1 + $0x84] ss:$8 sps:$4 sm:$0xff]   ;;  %v1520_v29 = vld [vmem:[%s2044_s1 + $0x150] ss:$8 sps:$4 sm:$0xff]   ;;  %v1493_v30 = vld [vmem:[%s2044_s1 + $0x80] ss:$8 sps:$4 sm:$0xff]  }
   0xb   :  { %620 = vmatpush1.bf16.msra.mxu1 %v1472_v6  ;;  %v1524_v31 = vld [vmem:[%s2044_s1 + $0x164] ss:$8 sps:$4 sm:$0xff]   ;;  %v1497_v32 = vld [vmem:[%s2044_s1 + $0x94] ss:$8 sps:$4 sm:$0xff]   ;;  %v1499_v33 = vld [vmem:[%s2044_s1 + $0x90] ss:$8 sps:$4 sm:$0xff]  }
   0xc   :  { %621 = vmatprep.subr.bf16.mxu1 %v1473_v7  ;;  %v1526_v34 = vld [vmem:[%s2044_s1 + $0x160] ss:$8 sps:$4 sm:$0xff]   ;;  %v1539_v35 = vld [vmem:[%s2045_s0 + $0x4] ss:$12 sps:$4 sm:$0xff]   ;;  %v1530_v36 = vld [vmem:[%s2044_s1 + $0x174] ss:$8 sps:$4 sm:$0xff]  }
   0xd   :  { %763 = vmatpush1.bf16.msra.mxu0 %v1502_v17  ;;  %v1503_v37 = vld [vmem:[%s2044_s1 + $0xa4] ss:$8 sps:$4 sm:$0xff]   ;;  %647 = vmatprep.mubr.bf16.mxu1 %v1539_v35  ;;  %v1532_v38 = vld [vmem:[%s2044_s1 + $0x170] ss:$8 sps:$4 sm:$0xff]   ;;  %v1505_v39 = vld [vmem:[%s2044_s1 + $0xa0] ss:$8 sps:$4 sm:$0xff]  }
   0xe   :  { %764 = vmatprep.subr.bf16.mxu0 %v1506_v19  ;;  %v1509_v40 = vld [vmem:[%s2044_s1 + $0xb4] ss:$8 sps:$4 sm:$0xff]   ;;  %v1511_v42 = vld [vmem:[%s2044_s1 + $0xb0] ss:$8 sps:$4 sm:$0xff]   ;;  %v1515_v43 = vld [vmem:[%s2044_s1 + $0xc4] ss:$8 sps:$4 sm:$0xff]  }
   0xf   :  { %622 = vmatpush1.bf16.msra.mxu1 %v1475_v8  ;;  %v1536_v41 = vld [vmem:[%s2045_s0 + $0x8] ss:$12 sps:$4 sm:$0xff]   ;;  %v1540_v46 = vld [vmem:[%s2045_s0 + $0x20] ss:$12 sps:$4 sm:$0xff]   ;;  %v1523_v47 = vld [vmem:[%s2044_s1 + $0xd0] ss:$8 sps:$4 sm:$0xff]  }
  0x10   :  { %623 = vmatprep.subr.bf16.mxu1 %v1476_v11  ;;  %v1517_v44 = vld [vmem:[%s2044_s1 + $0xc0] ss:$8 sps:$4 sm:$0xff]   ;;  %v1521_v45 = vld [vmem:[%s2044_s1 + $0xd4] ss:$8 sps:$4 sm:$0xff]   ;;  %v1527_v48 = vld [vmem:[%s2044_s1 + $0xe4] ss:$8 sps:$4 sm:$0xff]  }
  0x11   :  { %765 = vmatpush1.bf16.msra.mxu0 %v1508_v21  ;;  %v1529_v49 = vld [vmem:[%s2044_s1 + $0xe0] ss:$8 sps:$4 sm:$0xff]   ;;  %v1533_v50 = vld [vmem:[%s2044_s1 + $0xf4] ss:$8 sps:$4 sm:$0xff]   ;;  %v1544_v51 = vld [vmem:[%s2045_s0 + $0x38] ss:$12 sps:$4 sm:$0xff]  }
  0x12   :  { %766 = vmatprep.subr.bf16.mxu0 %v1512_v23  ;;  %v1535_v52 = vld [vmem:[%s2044_s1 + $0xf0] ss:$8 sps:$4 sm:$0xff]   ;;  %v1537_v53 = vld [vmem:[%s2045_s0] ss:$12 sps:$4 sm:$0xff]   ;;  %v1541_v54 = vld [vmem:[%s2045_s0 + $0x1c] ss:$12 sps:$4 sm:$0xff]  }
  0x13   :  { %624 = vmatpush1.bf16.msra.mxu1 %v1478_v14  ;;  %v1548_v55 = vld [vmem:[%s2045_s0 + $0x50] ss:$12 sps:$4 sm:$0xff]   ;;  %v1543_v56 = vld [vmem:[%s2045_s0 + $0x18] ss:$12 sps:$4 sm:$0xff]   ;;  %v1545_v57 = vld [vmem:[%s2045_s0 + $0x34] ss:$12 sps:$4 sm:$0xff]  }
  0x14   :  { %625 = vmatprep.subr.bf16.mxu1 %v1479_v15  ;;  %v1552_v58 = vld [vmem:[%s2045_s0 + $0x68] ss:$12 sps:$4 sm:$0xff]   ;;  %v1547_v59 = vld [vmem:[%s2045_s0 + $0x30] ss:$12 sps:$4 sm:$0xff]   ;;  %v1549_v60 = vld [vmem:[%s2045_s0 + $0x4c] ss:$12 sps:$4 sm:$0xff]  }
  0x15   :  { %767 = vmatpush1.bf16.msra.mxu0 %v1514_v25  ;;  %v1556_v61 = vld [vmem:[%s2045_s0 + $0x80] ss:$12 sps:$4 sm:$0xff]   ;;  %v1551_v62 = vld [vmem:[%s2045_s0 + $0x48] ss:$12 sps:$4 sm:$0xff]   ;;  %v1553_v63 = vld [vmem:[%s2045_s0 + $0x64] ss:$12 sps:$4 sm:$0xff]  }
  0x16   :  { %768 = vmatprep.subr.bf16.mxu0 %v1518_v27  ;;  %v1560_v0 = vld [vmem:[%s2045_s0 + $0x98] ss:$12 sps:$4 sm:$0xff]   ;;  %v1555_v2 = vld [vmem:[%s2045_s0 + $0x60] ss:$12 sps:$4 sm:$0xff]   ;;  %v1557_v3 = vld [vmem:[%s2045_s0 + $0x7c] ss:$12 sps:$4 sm:$0xff]  }
  0x17   :  { %626 = vmatpush1.bf16.msra.mxu1 %v1481_v18  ;;  %v1564_v4 = vld [vmem:[%s2045_s0 + $0xb0] ss:$12 sps:$4 sm:$0xff]   ;;  %v1559_v5 = vld [vmem:[%s2045_s0 + $0x78] ss:$12 sps:$4 sm:$0xff]   ;;  %v1561_v6 = vld [vmem:[%s2045_s0 + $0x94] ss:$12 sps:$4 sm:$0xff]  }
  0x18   :  { %627 = vmatprep.subr.bf16.mxu1 %v1482_v20  ;;  %v1568_v7 = vld [vmem:[%s2045_s0 + $0xc8] ss:$12 sps:$4 sm:$0xff]   ;;  %v1563_v8 = vld [vmem:[%s2045_s0 + $0x90] ss:$12 sps:$4 sm:$0xff]   ;;  %v1565_v9 = vld [vmem:[%s2045_s0 + $0xac] ss:$12 sps:$4 sm:$0xff]  }
  0x19   :  { %769 = vmatpush1.bf16.msra.mxu0 %v1520_v29  ;;  %v1572_v10 = vld [vmem:[%s2045_s0 + $0xe0] ss:$12 sps:$4 sm:$0xff]   ;;  %v1567_v11 = vld [vmem:[%s2045_s0 + $0xa8] ss:$12 sps:$4 sm:$0xff]   ;;  %v1569_v12 = vld [vmem:[%s2045_s0 + $0xc4] ss:$12 sps:$4 sm:$0xff]  }
  0x1a   :  { %770 = vmatprep.subr.bf16.mxu0 %v1524_v31  ;;  %v1576_v13 = vld [vmem:[%s2045_s0 + $0xf8] ss:$12 sps:$4 sm:$0xff]   ;;  %v1571_v14 = vld [vmem:[%s2045_s0 + $0xc0] ss:$12 sps:$4 sm:$0xff]   ;;  %v1573_v15 = vld [vmem:[%s2045_s0 + $0xdc] ss:$12 sps:$4 sm:$0xff]  }
  0x1b   :  { %628 = vmatpush1.bf16.msra.mxu1 %v1484_v22  ;;  %v1577_v16 = vld [vmem:[%s2045_s0 + $0xf4] ss:$12 sps:$4 sm:$0xff]   ;;  %v1579_v17 = vld [vmem:[%s2045_s0 + $0xf0] ss:$12 sps:$4 sm:$0xff]   ;;  %v1038_v22 = vlaneseq }
  0x1c   :  { %629 = vmatprep.subr.bf16.mxu1 %v1485_v24 }
  0x1d   :  { %771 = vmatpush1.bf16.msra.mxu0 %v1526_v34  ;;  %v1039_v27 = vshrl.u32 %v1038_v22, 7 }
  0x1e   :  { %772 = vmatprep.subr.bf16.mxu0 %v1530_v36 }
  0x1f   :  { %630 = vmatpush1.bf16.msra.mxu1 %v1487_v26  ;;  %v1044_v31 = vsub.s32 1, %v1039_v27 }
  0x20   :  { %631 = vmatprep.subr.bf16.mxu1 %v1491_v28  ;;  %v1040_v28 = vsub.s32 0, %v1039_v27 }
  0x21   :  { %773 = vmatpush1.bf16.msra.mxu0 %v1532_v38 }
  0x23   :  { %632 = vmatpush1.bf16.msra.mxu1 %v1493_v30  ;;  %v1036_v30 = vld [vmem:[%s2046_s2] sm:$0x3] }
  0x24   :  { %633 = vmatprep.subr.bf16.mxu1 %v1497_v32  ;;  %791 = vmatmul.mubr.bf16.vlgmr.msra.gmra.mrb[0].mxu0 %v1536_v41  ;;  %v1858_v35 = vrot.slane %v1036_v30, %v1040_v28 }
  0x25   :  { %800 = vmatprep.mubr.bf16.mxu0 %v1580_v1 }
  0x27   :  { %634 = vmatpush1.bf16.msra.mxu1 %v1499_v33 }
  0x28   :  { %635 = vmatprep.subr.bf16.mxu1 %v1503_v37  ;;  %v1860_v37 = vrot.slane %v1036_v30, %v1044_v31 }
  0x2b   :  { %636 = vmatpush1.bf16.msra.mxu1 %v1505_v39 }
  0x2c   :  { %637 = vmatprep.subr.bf16.mxu1 %v1509_v40  ;;  %801 = vmatmul.mubr.bf16.gmra.mrb[4].mxu0 %v1540_v46 }
  0x2d   :  { %810 = vmatprep.mubr.bf16.mxu0 %v1580_v1 }
  0x2f   :  { %638 = vmatpush1.bf16.msra.mxu1 %v1511_v42 }
  0x30   :  { %639 = vmatprep.subr.bf16.mxu1 %v1515_v43 }
  0x33   :  { %640 = vmatpush1.bf16.msra.mxu1 %v1517_v44 }
  0x34   :  { %641 = vmatprep.subr.bf16.mxu1 %v1521_v45  ;;  %811 = vmatmul.mubr.bf16.gmra.mrb[8].mxu0 %v1544_v51 }
  0x35   :  { %820 = vmatprep.mubr.bf16.mxu0 %v1580_v1 }
  0x37   :  { %642 = vmatpush1.bf16.msra.mxu1 %v1523_v47 }
  0x38   :  { %643 = vmatprep.subr.bf16.mxu1 %v1527_v48 }
  0x3b   :  { %644 = vmatpush1.bf16.msra.mxu1 %v1529_v49 }
  0x3c   :  { %645 = vmatprep.subr.bf16.mxu1 %v1533_v50  ;;  %821 = vmatmul.mubr.bf16.gmra.mrb[12].mxu0 %v1548_v55 }
  0x3d   :  { %830 = vmatprep.mubr.bf16.mxu0 %v1580_v1 }
  0x3f   :  { %646 = vmatpush1.bf16.msra.mxu1 %v1535_v52 }
  0x42   :  { %648 = vmatmul.mubr.bf16.vlgmr.msra.gmra.mrb[0].mxu1 %v1537_v53 }
  0x43   :  { %657 = vmatprep.mubr.bf16.mxu1 %v1541_v54 }
  0x44   :  { %831 = vmatmul.mubr.bf16.gmra.mrb[16].mxu0 %v1552_v58 }
  0x45   :  { %840 = vmatprep.mubr.bf16.mxu0 %v1580_v1 }
  0x4a   :  { %658 = vmatmul.mubr.bf16.gmra.mrb[4].mxu1 %v1543_v56 }
  0x4b   :  { %667 = vmatprep.mubr.bf16.mxu1 %v1545_v57 }
  0x4c   :  { %841 = vmatmul.mubr.bf16.gmra.mrb[20].mxu0 %v1556_v61 }
  0x4d   :  { %850 = vmatprep.mubr.bf16.mxu0 %v1580_v1 }
  0x52   :  { %668 = vmatmul.mubr.bf16.gmra.mrb[8].mxu1 %v1547_v59 }
  0x53   :  { %677 = vmatprep.mubr.bf16.mxu1 %v1549_v60 }
  0x54   :  { %851 = vmatmul.mubr.bf16.gmra.mrb[24].mxu0 %v1560_v0 }
  0x55   :  { %860 = vmatprep.mubr.bf16.mxu0 %v1580_v1 }
  0x5a   :  { %678 = vmatmul.mubr.bf16.gmra.mrb[12].mxu1 %v1551_v62 }
  0x5b   :  { %687 = vmatprep.mubr.bf16.mxu1 %v1553_v63 }
  0x5c   :  { %861 = vmatmul.mubr.bf16.gmra.mrb[28].mxu0 %v1564_v4 }
  0x5d   :  { %870 = vmatprep.mubr.bf16.mxu0 %v1580_v1 }
  0x62   :  { %688 = vmatmul.mubr.bf16.gmra.mrb[16].mxu1 %v1555_v2 }
  0x63   :  { %697 = vmatprep.mubr.bf16.mxu1 %v1557_v3 }
  0x64   :  { %871 = vmatmul.mubr.bf16.gmra.mrb[32].mxu0 %v1568_v7 }
  0x65   :  { %880 = vmatprep.mubr.bf16.mxu0 %v1580_v1 }
  0x6a   :  { %698 = vmatmul.mubr.bf16.gmra.mrb[20].mxu1 %v1559_v5 }
  0x6b   :  { %707 = vmatprep.mubr.bf16.mxu1 %v1561_v6 }
  0x6c   :  { %881 = vmatmul.mubr.bf16.gmra.mrb[36].mxu0 %v1572_v10 }
  0x6d   :  { %890 = vmatprep.mubr.bf16.mxu0 %v1580_v1  ;;  %v1575_v1 = vld [vmem:[%s2045_s0 + $0xd8] ss:$12 sps:$4 sm:$0xff]  }
  0x72   :  { %708 = vmatmul.mubr.bf16.gmra.mrb[24].mxu1 %v1563_v8 }
  0x73   :  { %717 = vmatprep.mubr.bf16.mxu1 %v1565_v9 }
  0x74   :  { %891 = vmatmul.mubr.bf16.gmra.mrb[40].mxu0 %v1576_v13 }
  0x7a   :  { %718 = vmatmul.mubr.bf16.gmra.mrb[28].mxu1 %v1567_v11 }
  0x7b   :  { %727 = vmatprep.mubr.bf16.mxu1 %v1569_v12 }
  0x82   :  { %728 = vmatmul.mubr.bf16.gmra.mrb[32].mxu1 %v1571_v14 }
  0x83   :  { %737 = vmatprep.mubr.bf16.mxu1 %v1573_v15 }
  0x8a   :  { %738 = vmatmul.mubr.bf16.gmra.mrb[36].mxu1 %v1575_v1 }
  0x8b   :  { %747 = vmatprep.mubr.bf16.mxu1 %v1577_v16 }
  0x92   :  { %748 = vmatmul.mubr.bf16.gmra.mrb[40].mxu1 %v1579_v17 }
  0xf7   :  { %v792_v18 = vpop.f32.mrb[0].mxu0 }
  0xf8   :  { %v794_v19 = vpop.f32.mrb[1].mxu0 }
  0xf9   :  { %v796_v20 = vpop.f32.mrb[2].mxu0 }
  0xfa   :  { %v798_v21 = vpop.f32.mrb[3].mxu0 }
  0xff   :  { %v802_v23 = vpop.f32.mrb[4].mxu0 }
 0x100   :  { %v804_v24 = vpop.f32.mrb[5].mxu0 }
 0x101   :  { %v806_v25 = vpop.f32.mrb[6].mxu0 }
 0x102   :  { %v808_v26 = vpop.f32.mrb[7].mxu0 }
 0x107   :  { %v812_v29 = vpop.f32.mrb[8].mxu0 }
 0x108   :  { %v814_v32 = vpop.f32.mrb[9].mxu0 }
 0x109   :  { %v816_v33 = vpop.f32.mrb[10].mxu0 }
 0x10a   :  { %v818_v34 = vpop.f32.mrb[11].mxu0 }
 0x10f   :  { %v1863_v45 = vpop.f32.mrb[12].mxu0 }
 0x110   :  { %v1866_v48 = vpop.f32.mrb[13].mxu0 }
 0x111   :  { %v1869_v51 = vpop.f32.mrb[14].mxu0 }
 0x112   :  { %v1872_v54 = vpop.f32.mrb[15].mxu0 }
 0x115   :  { %v649_v36 = vpop.f32.mrb[0].mxu1 }
 0x116   :  { %v793_v38 = vadd.f32 %v792_v18, %v649_v36  ;;  %v651_v39 = vpop.f32.mrb[1].mxu1 }
 0x117   :  { %v795_v40 = vadd.f32 %v794_v19, %v651_v39  ;;  %v653_v41 = vpop.f32.mrb[2].mxu1  ;;  %v1878_v4 = vpop.f32.mrb[16].mxu0 }
 0x118   :  { %v1048_v42 = vadd.f32 %v1858_v35, %v793_v38  ;;  %v797_v43 = vadd.f32 %v796_v20, %v653_v41  ;;  %v655_v44 = vpop.f32.mrb[3].mxu1  ;;  %v1884_v7 = vpop.f32.mrb[17].mxu0 }
 0x119   :  { %v1049_v46 = vadd.f32 %v1860_v37, %v795_v40  ;;  %v799_v47 = vadd.f32 %v798_v21, %v655_v44  ;;  %v1887_v10 = vpop.f32.mrb[18].mxu0 }
 0x11a   :  { %v1092_v49 = vmax.f32 %v1048_v42, 0.0  ;;  %v1050_v50 = vadd.f32 %v1858_v35, %v797_v43  ;;  %v1890_v13 = vpop.f32.mrb[19].mxu0 }
 0x11b   :  { %v1093_v52 = vmax.f32 %v1049_v46, 0.0  ;;  %v1051_v53 = vadd.f32 %v1860_v37, %v799_v47 }
 0x11c   :  { %v1094_v55 = vmax.f32 %v1050_v50, 0.0 }
 0x11d   :  { %v1397_v56 = vpack.c.bf16 %v1093_v52, %v1092_v49  ;;  %v1095_v57 = vmax.f32 %v1051_v53, 0.0  ;;  %v659_v58 = vpop.f32.mrb[4].mxu1 }
 0x11e   :  { %v803_v59 = vadd.f32 %v802_v23, %v659_v58  ;;  %v661_v60 = vpop.f32.mrb[5].mxu1 }
 0x11f   :  { %1268 = vst [vmem:[%s2047_s3] sm:$0xff] %v1397_v56  ;;  %v1398_v61 = vpack.c.bf16 %v1095_v57, %v1094_v55  ;;  %v805_v62 = vadd.f32 %v804_v24, %v661_v60  ;;  %v663_v63 = vpop.f32.mrb[6].mxu1 }
 0x120   :  { %v1052_v0 = vadd.f32 %v1858_v35, %v803_v59  ;;  %v807_v2 = vadd.f32 %v806_v25, %v663_v63  ;;  %v665_v3 = vpop.f32.mrb[7].mxu1  ;;  %v1896_v25 = vpop.f32.mrb[20].mxu0 }
 0x121   :  { %1269 = vst [vmem:[%s2047_s3 + $0x8] sm:$0xff] %v1398_v61  ;;  %v1053_v5 = vadd.f32 %v1860_v37, %v805_v62  ;;  %v809_v6 = vadd.f32 %v808_v26, %v665_v3  ;;  %v1902_v28 = vpop.f32.mrb[21].mxu0 }
 0x122   :  { %v1096_v8 = vmax.f32 %v1052_v0, 0.0  ;;  %v1054_v9 = vadd.f32 %v1858_v35, %v807_v2  ;;  %v1905_v31 = vpop.f32.mrb[22].mxu0 }
 0x123   :  { %v1097_v11 = vmax.f32 %v1053_v5, 0.0  ;;  %v1055_v12 = vadd.f32 %v1860_v37, %v809_v6  ;;  %v1908_v36 = vpop.f32.mrb[23].mxu0 }
 0x124   :  { %v1098_v14 = vmax.f32 %v1054_v9, 0.0 }
 0x125   :  { %v1399_v15 = vpack.c.bf16 %v1097_v11, %v1096_v8  ;;  %v1099_v1 = vmax.f32 %v1055_v12, 0.0  ;;  %v669_v16 = vpop.f32.mrb[8].mxu1 }
 0x126   :  { %v813_v17 = vadd.f32 %v812_v29, %v669_v16  ;;  %v671_v18 = vpop.f32.mrb[9].mxu1 }
 0x127   :  { %1270 = vst [vmem:[%s2047_s3 + $0x10] sm:$0xff] %v1399_v15  ;;  %v1400_v19 = vpack.c.bf16 %v1099_v1, %v1098_v14  ;;  %v815_v20 = vadd.f32 %v814_v32, %v671_v18  ;;  %v673_v21 = vpop.f32.mrb[10].mxu1  ;;  %v1917_v52 = vpop.f32.mrb[24].mxu0 }
 0x128   :  { %v1056_v22 = vadd.f32 %v1858_v35, %v813_v17  ;;  %v817_v23 = vadd.f32 %v816_v33, %v673_v21  ;;  %v675_v24 = vpop.f32.mrb[11].mxu1  ;;  %v1924_v55 = vpop.f32.mrb[25].mxu0 }
 0x129   :  { %1271 = vst [vmem:[%s2047_s3 + $0x18] sm:$0xff] %v1400_v19  ;;  %v1057_v26 = vadd.f32 %v1860_v37, %v815_v20  ;;  %v819_v27 = vadd.f32 %v818_v34, %v675_v24  ;;  %v1927_v57 = vpop.f32.mrb[26].mxu0 }
 0x12a   :  { %v1100_v29 = vmax.f32 %v1056_v22, 0.0  ;;  %v1058_v30 = vadd.f32 %v1858_v35, %v817_v23  ;;  %v1930_v59 = vpop.f32.mrb[27].mxu0 }
 0x12b   :  { %v1101_v32 = vmax.f32 %v1057_v26, 0.0  ;;  %v1059_v33 = vadd.f32 %v1860_v37, %v819_v27 }
 0x12c   :  { %v1102_v38 = vmax.f32 %v1058_v30, 0.0 }
 0x12d   :  { %v1401_v39 = vpack.c.bf16 %v1101_v32, %v1100_v29  ;;  %v1103_v40 = vmax.f32 %v1059_v33, 0.0  ;;  %v679_v41 = vpop.f32.mrb[12].mxu1 }
 0x12e   :  { %v823_v42 = vadd.f32 %v1863_v45, %v679_v41  ;;  %v681_v43 = vpop.f32.mrb[13].mxu1 }
 0x12f   :  { %1272 = vst [vmem:[%s2047_s3 + $0x20] sm:$0xff] %v1401_v39  ;;  %v1402_v34 = vpack.c.bf16 %v1103_v40, %v1102_v38  ;;  %v825_v44 = vadd.f32 %v1866_v48, %v681_v43  ;;  %v683_v46 = vpop.f32.mrb[14].mxu1  ;;  %v1939_v11 = vpop.f32.mrb[28].mxu0 }
 0x130   :  { %v1060_v47 = vadd.f32 %v1858_v35, %v823_v42  ;;  %v827_v49 = vadd.f32 %v1869_v51, %v683_v46  ;;  %v685_v50 = vpop.f32.mrb[15].mxu1  ;;  %v1946_v14 = vpop.f32.mrb[29].mxu0 }
 0x131   :  { %1273 = vst [vmem:[%s2047_s3 + $0x28] sm:$0xff] %v1402_v34  ;;  %v1061_v45 = vadd.f32 %v1860_v37, %v825_v44  ;;  %v829_v53 = vadd.f32 %v1872_v54, %v685_v50  ;;  %v1949_v1 = vpop.f32.mrb[30].mxu0 }
 0x132   :  { %v1104_v56 = vmax.f32 %v1060_v47, 0.0  ;;  %v1062_v48 = vadd.f32 %v1858_v35, %v827_v49  ;;  %v1952_v17 = vpop.f32.mrb[31].mxu0 }
 0x133   :  { %v1105_v58 = vmax.f32 %v1061_v45, 0.0  ;;  %v1063_v51 = vadd.f32 %v1860_v37, %v829_v53 }
 0x134   :  { %v1106_v60 = vmax.f32 %v1062_v48, 0.0 }
 0x135   :  { %v1403_v61 = vpack.c.bf16 %v1105_v58, %v1104_v56  ;;  %v1107_v62 = vmax.f32 %v1063_v51, 0.0  ;;  %v689_v63 = vpop.f32.mrb[16].mxu1 }
 0x136   :  { %v833_v0 = vadd.f32 %v1878_v4, %v689_v63  ;;  %v691_v2 = vpop.f32.mrb[17].mxu1 }
 0x137   :  { %1274 = vst [vmem:[%s2047_s3 + $0x30] sm:$0xff] %v1403_v61  ;;  %v1404_v54 = vpack.c.bf16 %v1107_v62, %v1106_v60  ;;  %v835_v3 = vadd.f32 %v1884_v7, %v691_v2  ;;  %v693_v5 = vpop.f32.mrb[18].mxu1  ;;  %v1961_v32 = vpop.f32.mrb[32].mxu0 }
 0x138   :  { %v1064_v6 = vadd.f32 %v1858_v35, %v833_v0  ;;  %v837_v8 = vadd.f32 %v1887_v10, %v693_v5  ;;  %v695_v9 = vpop.f32.mrb[19].mxu1  ;;  %v1968_v38 = vpop.f32.mrb[33].mxu0 }
 0x139   :  { %1275 = vst [vmem:[%s2047_s3 + $0x38] sm:$0xff] %v1404_v54  ;;  %v1065_v4 = vadd.f32 %v1860_v37, %v835_v3  ;;  %v839_v12 = vadd.f32 %v1890_v13, %v695_v9  ;;  %v1971_v40 = vpop.f32.mrb[34].mxu0 }
 0x13a   :  { %v1108_v15 = vmax.f32 %v1064_v6, 0.0  ;;  %v1066_v7 = vadd.f32 %v1858_v35, %v837_v8  ;;  %v1974_v42 = vpop.f32.mrb[35].mxu0 }
 0x13b   :  { %v1109_v16 = vmax.f32 %v1065_v4, 0.0  ;;  %v1067_v10 = vadd.f32 %v1860_v37, %v839_v12 }
 0x13c   :  { %v1110_v18 = vmax.f32 %v1066_v7, 0.0 }
 0x13d   :  { %v1405_v19 = vpack.c.bf16 %v1109_v16, %v1108_v15  ;;  %v1111_v20 = vmax.f32 %v1067_v10, 0.0  ;;  %v699_v21 = vpop.f32.mrb[20].mxu1 }
 0x13e   :  { %v843_v22 = vadd.f32 %v1896_v25, %v699_v21  ;;  %v701_v23 = vpop.f32.mrb[21].mxu1 }
 0x13f   :  { %1276 = vst [vmem:[%s2047_s3 + $0x40] sm:$0xff] %v1405_v19  ;;  %v1406_v13 = vpack.c.bf16 %v1111_v20, %v1110_v18  ;;  %v845_v24 = vadd.f32 %v1902_v28, %v701_v23  ;;  %v703_v26 = vpop.f32.mrb[22].mxu1  ;;  %v882_v58 = vpop.f32.mrb[36].mxu0 }
 0x140   :  { %v1068_v27 = vadd.f32 %v1858_v35, %v843_v22  ;;  %v847_v29 = vadd.f32 %v1905_v31, %v703_v26  ;;  %v705_v30 = vpop.f32.mrb[23].mxu1  ;;  %v884_v60 = vpop.f32.mrb[37].mxu0 }
 0x141   :  { %1277 = vst [vmem:[%s2047_s3 + $0x48] sm:$0xff] %v1406_v13  ;;  %v1069_v25 = vadd.f32 %v1860_v37, %v845_v24  ;;  %v849_v33 = vadd.f32 %v1908_v36, %v705_v30 }
 0x142   :  { %v1112_v39 = vmax.f32 %v1068_v27, 0.0  ;;  %v1070_v28 = vadd.f32 %v1858_v35, %v847_v29 }
 0x143   :  { %v1113_v41 = vmax.f32 %v1069_v25, 0.0  ;;  %v1071_v31 = vadd.f32 %v1860_v37, %v849_v33 }
 0x144   :  { %v1114_v43 = vmax.f32 %v1070_v28, 0.0 }
 0x145   :  { %v1407_v34 = vpack.c.bf16 %v1113_v41, %v1112_v39  ;;  %v1115_v44 = vmax.f32 %v1071_v31, 0.0  ;;  %v709_v46 = vpop.f32.mrb[24].mxu1 }
 0x146   :  { %v853_v47 = vadd.f32 %v1917_v52, %v709_v46  ;;  %v711_v49 = vpop.f32.mrb[25].mxu1 }
 0x147   :  { %1278 = vst [vmem:[%s2047_s3 + $0x50] sm:$0xff] %v1407_v34  ;;  %v1408_v36 = vpack.c.bf16 %v1115_v44, %v1114_v43  ;;  %v855_v50 = vadd.f32 %v1924_v55, %v711_v49  ;;  %v713_v45 = vpop.f32.mrb[26].mxu1  ;;  %v886_v55 = vpop.f32.mrb[38].mxu0 }
 0x148   :  { %v1072_v53 = vadd.f32 %v1858_v35, %v853_v47  ;;  %v857_v56 = vadd.f32 %v1927_v57, %v713_v45  ;;  %v715_v48 = vpop.f32.mrb[27].mxu1  ;;  %v888_v2 = vpop.f32.mrb[39].mxu0 }
 0x149   :  { %1279 = vst [vmem:[%s2047_s3 + $0x58] sm:$0xff] %v1408_v36  ;;  %v1073_v52 = vadd.f32 %v1860_v37, %v855_v50  ;;  %v859_v51 = vadd.f32 %v1930_v59, %v715_v48  ;;  %v892_v16 = vpop.f32.mrb[40].mxu0 }
 0x14a   :  { %v1116_v61 = vmax.f32 %v1072_v53, 0.0  ;;  %v1074_v62 = vadd.f32 %v1858_v35, %v857_v56  ;;  %v894_v18 = vpop.f32.mrb[41].mxu0 }
 0x14b   :  { %v1117_v63 = vmax.f32 %v1073_v52, 0.0  ;;  %v1075_v0 = vadd.f32 %v1860_v37, %v859_v51 }
 0x14c   :  { %v1118_v57 = vmax.f32 %v1074_v62, 0.0 }
 0x14d   :  { %v1409_v54 = vpack.c.bf16 %v1117_v63, %v1116_v61  ;;  %v1119_v3 = vmax.f32 %v1075_v0, 0.0  ;;  %v719_v5 = vpop.f32.mrb[28].mxu1 }
 0x14e   :  { %v863_v6 = vadd.f32 %v1939_v11, %v719_v5  ;;  %v721_v8 = vpop.f32.mrb[29].mxu1 }
 0x14f   :  { %1280 = vst [vmem:[%s2047_s3 + $0x60] sm:$0xff] %v1409_v54  ;;  %v1410_v59 = vpack.c.bf16 %v1119_v3, %v1118_v57  ;;  %v865_v9 = vadd.f32 %v1946_v14, %v721_v8  ;;  %v723_v4 = vpop.f32.mrb[30].mxu1  ;;  %v896_v14 = vpop.f32.mrb[42].mxu0 }
 0x150   :  { %v1076_v12 = vadd.f32 %v1858_v35, %v863_v6  ;;  %v867_v15 = vadd.f32 %v1949_v1, %v723_v4  ;;  %v725_v7 = vpop.f32.mrb[31].mxu1  ;;  %v898_v23 = vpop.f32.mrb[43].mxu0 }
 0x151   :  { %1281 = vst [vmem:[%s2047_s3 + $0x68] sm:$0xff] %v1410_v59  ;;  %v1077_v11 = vadd.f32 %v1860_v37, %v865_v9  ;;  %v869_v10 = vadd.f32 %v1952_v17, %v725_v7 }
 0x152   :  { %v1120_v19 = vmax.f32 %v1076_v12, 0.0  ;;  %v1078_v20 = vadd.f32 %v1858_v35, %v867_v15 }
 0x153   :  { %v1121_v21 = vmax.f32 %v1077_v11, 0.0  ;;  %v1079_v22 = vadd.f32 %v1860_v37, %v869_v10 }
 0x154   :  { %v1122_v1 = vmax.f32 %v1078_v20, 0.0 }
 0x155   :  { %v1411_v13 = vpack.c.bf16 %v1121_v21, %v1120_v19  ;;  %v1123_v24 = vmax.f32 %v1079_v22, 0.0  ;;  %v729_v26 = vpop.f32.mrb[32].mxu1 }
 0x156   :  { %v873_v27 = vadd.f32 %v1961_v32, %v729_v26  ;;  %v731_v29 = vpop.f32.mrb[33].mxu1 }
 0x157   :  { %1282 = vst [vmem:[%s2047_s3 + $0x70] sm:$0xff] %v1411_v13  ;;  %v1412_v17 = vpack.c.bf16 %v1123_v24, %v1122_v1  ;;  %v875_v30 = vadd.f32 %v1968_v38, %v731_v29  ;;  %v733_v25 = vpop.f32.mrb[34].mxu1 }
 0x158   :  { %v1080_v33 = vadd.f32 %v1858_v35, %v873_v27  ;;  %v877_v39 = vadd.f32 %v1971_v40, %v733_v25  ;;  %v735_v28 = vpop.f32.mrb[35].mxu1 }
 0x159   :  { %1283 = vst [vmem:[%s2047_s3 + $0x78] sm:$0xff] %v1412_v17  ;;  %v1081_v32 = vadd.f32 %v1860_v37, %v875_v30  ;;  %v879_v41 = vadd.f32 %v1974_v42, %v735_v28 }
 0x15a   :  { %v1124_v31 = vmax.f32 %v1080_v33, 0.0  ;;  %v1082_v43 = vadd.f32 %v1858_v35, %v877_v39 }
 0x15b   :  { %v1125_v34 = vmax.f32 %v1081_v32, 0.0  ;;  %v1083_v38 = vadd.f32 %v1860_v37, %v879_v41 }
 0x15c   :  { %v1126_v44 = vmax.f32 %v1082_v43, 0.0 }
 0x15d   :  { %v1413_v46 = vpack.c.bf16 %v1125_v34, %v1124_v31  ;;  %v1127_v47 = vmax.f32 %v1083_v38, 0.0  ;;  %v739_v49 = vpop.f32.mrb[36].mxu1 }
 0x15e   :  { %v883_v40 = vadd.f32 %v882_v58, %v739_v49  ;;  %v741_v36 = vpop.f32.mrb[37].mxu1 }
 0x15f   :  { %1284 = vst [vmem:[%s2047_s3 + $0x80] sm:$0xff] %v1413_v46  ;;  %v1414_v50 = vpack.c.bf16 %v1127_v47, %v1126_v44  ;;  %v885_v45 = vadd.f32 %v884_v60, %v741_v36  ;;  %v743_v53 = vpop.f32.mrb[38].mxu1 }
 0x160   :  { %v1084_v42 = vadd.f32 %v1858_v35, %v883_v40  ;;  %v887_v56 = vadd.f32 %v886_v55, %v743_v53  ;;  %v745_v48 = vpop.f32.mrb[39].mxu1 }
 0x161   :  { %1285 = vst [vmem:[%s2047_s3 + $0x88] sm:$0xff] %v1414_v50  ;;  %v1085_v52 = vadd.f32 %v1860_v37, %v885_v45  ;;  %v889_v51 = vadd.f32 %v888_v2, %v745_v48 }
 0x162   :  { %v1128_v58 = vmax.f32 %v1084_v42, 0.0  ;;  %v1086_v61 = vadd.f32 %v1858_v35, %v887_v56 }
 0x163   :  { %v1129_v62 = vmax.f32 %v1085_v52, 0.0  ;;  %v1087_v63 = vadd.f32 %v1860_v37, %v889_v51 }
 0x164   :  { %v1130_v0 = vmax.f32 %v1086_v61, 0.0 }
 0x165   :  { %v1415_v60 = vpack.c.bf16 %v1129_v62, %v1128_v58  ;;  %v1131_v57 = vmax.f32 %v1087_v63, 0.0  ;;  %v749_v54 = vpop.f32.mrb[40].mxu1 }
 0x166   :  { %v893_v3 = vadd.f32 %v892_v16, %v749_v54  ;;  %v751_v55 = vpop.f32.mrb[41].mxu1 }
 0x167   :  { %1286 = vst [vmem:[%s2047_s3 + $0x90] sm:$0xff] %v1415_v60  ;;  %v1416_v5 = vpack.c.bf16 %v1131_v57, %v1130_v0  ;;  %v895_v6 = vadd.f32 %v894_v18, %v751_v55  ;;  %v753_v8 = vpop.f32.mrb[42].mxu1 }
 0x168   :  { %v1088_v2 = vadd.f32 %v1858_v35, %v893_v3  ;;  %v897_v59 = vadd.f32 %v896_v14, %v753_v8  ;;  %v755_v9 = vpop.f32.mrb[43].mxu1 }
 0x169   :  { %1287 = vst [vmem:[%s2047_s3 + $0x98] sm:$0xff] %v1416_v5  ;;  %v1089_v4 = vadd.f32 %v1860_v37, %v895_v6  ;;  %v899_v12 = vadd.f32 %v898_v23, %v755_v9 }
 0x16a   :  { %v1132_v15 = vmax.f32 %v1088_v2, 0.0  ;;  %v1090_v7 = vadd.f32 %v1858_v35, %v897_v59 }
 0x16b   :  { %v1133_v16 = vmax.f32 %v1089_v4, 0.0  ;;  %v1091_v11 = vadd.f32 %v1860_v37, %v899_v12 }
 0x16c   :  { %v1134_v10 = vmax.f32 %v1090_v7, 0.0 }
 0x16d   :  { %v1417_v18 = vpack.c.bf16 %v1133_v16, %v1132_v15  ;;  %v1135_v19 = vmax.f32 %v1091_v11, 0.0 }
 0x16f   :  { %1288 = vst [vmem:[%s2047_s3 + $0xa0] sm:$0xff] %v1417_v18  ;;  %v1418_v20 = vpack.c.bf16 %v1135_v19, %v1134_v10 }
 0x171   :  { %1289 = vst [vmem:[%s2047_s3 + $0xa8] sm:$0xff] %v1418_v20 }

// kernel: reduction_a_forward.8
= control target key start
LH: loop header
LB: loop body
LE: loop exit
PB: predicated region body
PF: predicated region fallthrough
CT: control target
= control target key end

     0   :  { %s3116_s12 = smov 0   ;;  %s3118_s13 = smov 0   ;;  %s3734_s0 = inlined_call_operand.vmem [shape: bf16[176,2304], index: 0, kind: input, shape index: {}]   ;;  %s3735_s1 = inlined_call_operand.vmem [shape: bf16[2304,256], index: 1, kind: input, shape index: {}]   ;;  %s3736_s2 = inlined_call_operand.vmem [shape: f32[1,256], index: 2, kind: input, shape index: {}]   ;;  %s3737_s3 = inlined_call_operand.vmem [shape: bf16[176,256], index: 3, kind: output, shape index: {}]  }
   0x1   :  { %s3120_s14 = smov 0   ;;  %s3122_s15 = smov 0  }
   0x2   :  { %s3124_s16 = smov 0  }
   0x3 LB: > { %s25_s17 = sadd.s32 1, %s3089_s15  ;;  %p48_p1 = scmp.ne.s32.totalorder %s3081_s13, %s3077_s12  ;;  %s3093_s16 = sphi %s3124_s16, %s13_s16   ;;  %s3089_s15 = sphi %s3122_s15, %s3745_s15   ;;  %s3085_s14 = sphi %s3120_s14, %s3744_s14   ;;  %s3081_s13 = sphi %s3118_s13, %s3743_s13   ;;  %s3077_s12 = sphi %s3116_s12, %s3742_s12  }
   0x4   : > { %p26_p0 = scmp.ge.s32.totalorder %s25_s17, 3  ;;  %p49_p2 = scmp.eq.s32.totalorder %s3093_s16, 0 }
   0x5   : > { %s41_s19 = sadd.s32 1, %s3081_s13  ;;  %p2430_p5 = scmp.ge.s32.totalorder %s3093_s16, 3 }
   0x6   : > { %s3747_s17 = smov (%p26_p0, %s25_s17), 0  ;;  %p50_p3 = por %p49_p2, %p48_p1 }
   0x7   : > { %s37_s18 = ssub.s32 %s3089_s15, %s3747_s17  ;;  %164 = sbr.rel (%p2430_p5) target bundleno = 52 (0x34), region = 20 }
   0x8   : > { %p39_p4 = scmp.eq.s32.totalorder %s37_s18, 0 }
   0xa   : > { %s3151_s20 = scalar_select %p39_p4, %s3081_s13, %s41_s19  }
   0xe   : > { %167 = sbr.rel (!%p50_p3) target bundleno = 52 (0x34), region = 24  ;;  %s169_s21 = sand.u32 (%p50_p3), 1, %s3081_s13  }
   0xf   : > { %s2625_s22 = smul.u32 (%p50_p3), 24, %s3089_s15 }
  0x10   : > { %s2769_s23 = smul.u32 (%p50_p3), 528, %s169_s21 }
  0x11   : > { %s3159_s26 = scalar_lea.vmem (%p50_p3), %s3734_s0, %s2625_s22 }
  0x12   : > { %v190_v0 = vld [vmem:[%s3159_s26] sm:$0xff] (%p50_p3)  ;;  %v192_v1 = vld [vmem:[%s3159_s26 + $0x8] sm:$0xff] (%p50_p3)  ;;  %v194_v2 = vld [vmem:[%s3159_s26 + $0x10] sm:$0xff] (%p50_p3)  ;;  %s3164_s27 = scalar_lea.vmem (%p50_p3), [#allocation3], %s2769_s23 }
  0x13   : > { %191 = vst [vmem:[%s3164_s27] sm:$0xff] (%p50_p3), %v190_v0  ;;  %193 = vst [vmem:[%s3164_s27 + $0x8] sm:$0xff] (%p50_p3), %v192_v1  ;;  %v196_v3 = vld [vmem:[%s3159_s26 + $0x48] sm:$0xff] (%p50_p3)  ;;  %v198_v4 = vld [vmem:[%s3159_s26 + $0x50] sm:$0xff] (%p50_p3) }
  0x14   : > { %195 = vst [vmem:[%s3164_s27 + $0x10] sm:$0xff] (%p50_p3), %v194_v2  ;;  %v200_v5 = vld [vmem:[%s3159_s26 + $0x58] sm:$0xff] (%p50_p3)  ;;  %197 = vst [vmem:[%s3164_s27 + $0x18] sm:$0xff] (%p50_p3), %v196_v3  ;;  %v202_v6 = vld [vmem:[%s3159_s26 + $0x90] sm:$0xff] (%p50_p3) }
  0x15   : > { %199 = vst [vmem:[%s3164_s27 + $0x20] sm:$0xff] %v198_v4  ;;  %201 = vst [vmem:[%s3164_s27 + $0x28] sm:$0xff] %v200_v5  ;;  %v204_v7 = vld [vmem:[%s3159_s26 + $0x98] sm:$0xff]  ;;  %v206_v8 = vld [vmem:[%s3159_s26 + $0xa0] sm:$0xff] }
  0x16   : > { %203 = vst [vmem:[%s3164_s27 + $0x30] sm:$0xff] %v202_v6  ;;  %205 = vst [vmem:[%s3164_s27 + $0x38] sm:$0xff] %v204_v7  ;;  %v208_v9 = vld [vmem:[%s3159_s26 + $0xd8] sm:$0xff]  ;;  %v210_v10 = vld [vmem:[%s3159_s26 + $0xe0] sm:$0xff] }
  0x17   : > { %207 = vst [vmem:[%s3164_s27 + $0x40] sm:$0xff] %v206_v8  ;;  %v212_v11 = vld [vmem:[%s3159_s26 + $0xe8] sm:$0xff]  ;;  %209 = vst [vmem:[%s3164_s27 + $0x48] sm:$0xff] %v208_v9  ;;  %v214_v12 = vld [vmem:[%s3159_s26 + $0x120] sm:$0xff] }
  0x18   : > { %211 = vst [vmem:[%s3164_s27 + $0x50] sm:$0xff] %v210_v10  ;;  %213 = vst [vmem:[%s3164_s27 + $0x58] sm:$0xff] %v212_v11  ;;  %v216_v13 = vld [vmem:[%s3159_s26 + $0x128] sm:$0xff]  ;;  %v218_v14 = vld [vmem:[%s3159_s26 + $0x130] sm:$0xff] }
  0x19   : > { %215 = vst [vmem:[%s3164_s27 + $0x60] sm:$0xff] %v214_v12  ;;  %217 = vst [vmem:[%s3164_s27 + $0x68] sm:$0xff] %v216_v13  ;;  %v220_v15 = vld [vmem:[%s3159_s26 + $0x168] sm:$0xff]  ;;  %v222_v16 = vld [vmem:[%s3159_s26 + $0x170] sm:$0xff] }
  0x1a   : > { %219 = vst [vmem:[%s3164_s27 + $0x70] sm:$0xff] %v218_v14  ;;  %v224_v17 = vld [vmem:[%s3159_s26 + $0x178] sm:$0xff]  ;;  %221 = vst [vmem:[%s3164_s27 + $0x78] sm:$0xff] %v220_v15  ;;  %v226_v18 = vld [vmem:[%s3159_s26 + $0x1b0] sm:$0xff] }
  0x1b   : > { %223 = vst [vmem:[%s3164_s27 + $0x80] sm:$0xff] %v222_v16  ;;  %225 = vst [vmem:[%s3164_s27 + $0x88] sm:$0xff] %v224_v17  ;;  %v228_v19 = vld [vmem:[%s3159_s26 + $0x1b8] sm:$0xff]  ;;  %v230_v20 = vld [vmem:[%s3159_s26 + $0x1c0] sm:$0xff] }
  0x1c   : > { %227 = vst [vmem:[%s3164_s27 + $0x90] sm:$0xff] %v226_v18  ;;  %229 = vst [vmem:[%s3164_s27 + $0x98] sm:$0xff] %v228_v19  ;;  %v232_v21 = vld [vmem:[%s3159_s26 + $0x1f8] sm:$0xff]  ;;  %v234_v22 = vld [vmem:[%s3159_s26 + $0x200] sm:$0xff] }
  0x1d   : > { %231 = vst [vmem:[%s3164_s27 + $0xa0] sm:$0xff] %v230_v20  ;;  %v236_v23 = vld [vmem:[%s3159_s26 + $0x208] sm:$0xff]  ;;  %233 = vst [vmem:[%s3164_s27 + $0xa8] sm:$0xff] %v232_v21  ;;  %v238_v24 = vld [vmem:[%s3159_s26 + $0x240] sm:$0xff] }
  0x1e   : > { %235 = vst [vmem:[%s3164_s27 + $0xb0] sm:$0xff] %v234_v22  ;;  %237 = vst [vmem:[%s3164_s27 + $0xb8] sm:$0xff] %v236_v23  ;;  %v240_v25 = vld [vmem:[%s3159_s26 + $0x248] sm:$0xff]  ;;  %v242_v26 = vld [vmem:[%s3159_s26 + $0x250] sm:$0xff] }
  0x1f   : > { %239 = vst [vmem:[%s3164_s27 + $0xc0] sm:$0xff] %v238_v24  ;;  %241 = vst [vmem:[%s3164_s27 + $0xc8] sm:$0xff] %v240_v25  ;;  %v244_v27 = vld [vmem:[%s3159_s26 + $0x288] sm:$0xff]  ;;  %v246_v28 = vld [vmem:[%s3159_s26 + $0x290] sm:$0xff] }
  0x20   : > { %243 = vst [vmem:[%s3164_s27 + $0xd0] sm:$0xff] %v242_v26  ;;  %v248_v29 = vld [vmem:[%s3159_s26 + $0x298] sm:$0xff]  ;;  %245 = vst [vmem:[%s3164_s27 + $0xd8] sm:$0xff] %v244_v27  ;;  %v250_v30 = vld [vmem:[%s3159_s26 + $0x2d0] sm:$0xff] }
  0x21   : > { %247 = vst [vmem:[%s3164_s27 + $0xe0] sm:$0xff] %v246_v28  ;;  %249 = vst [vmem:[%s3164_s27 + $0xe8] sm:$0xff] %v248_v29  ;;  %v252_v31 = vld [vmem:[%s3159_s26 + $0x2d8] sm:$0xff]  ;;  %v254_v32 = vld [vmem:[%s3159_s26 + $0x2e0] sm:$0xff] }
  0x22   : > { %251 = vst [vmem:[%s3164_s27 + $0xf0] sm:$0xff] %v250_v30  ;;  %253 = vst [vmem:[%s3164_s27 + $0xf8] sm:$0xff] %v252_v31  ;;  %v256_v33 = vld [vmem:[%s3159_s26 + $0x318] sm:$0xff]  ;;  %v258_v34 = vld [vmem:[%s3159_s26 + $0x320] sm:$0xff] }
  0x23   : > { %255 = vst [vmem:[%s3164_s27 + $0x100] sm:$0xff] %v254_v32  ;;  %v260_v35 = vld [vmem:[%s3159_s26 + $0x328] sm:$0xff]  ;;  %257 = vst [vmem:[%s3164_s27 + $0x108] sm:$0xff] %v256_v33  ;;  %v262_v36 = vld [vmem:[%s3159_s26 + $0x360] sm:$0xff] }
  0x24   : > { %259 = vst [vmem:[%s3164_s27 + $0x110] sm:$0xff] %v258_v34  ;;  %261 = vst [vmem:[%s3164_s27 + $0x118] sm:$0xff] %v260_v35  ;;  %v264_v37 = vld [vmem:[%s3159_s26 + $0x368] sm:$0xff]  ;;  %v266_v38 = vld [vmem:[%s3159_s26 + $0x370] sm:$0xff] }
  0x25   : > { %263 = vst [vmem:[%s3164_s27 + $0x120] sm:$0xff] %v262_v36  ;;  %265 = vst [vmem:[%s3164_s27 + $0x128] sm:$0xff] %v264_v37  ;;  %v268_v39 = vld [vmem:[%s3159_s26 + $0x3a8] sm:$0xff]  ;;  %v270_v40 = vld [vmem:[%s3159_s26 + $0x3b0] sm:$0xff] }
  0x26   : > { %267 = vst [vmem:[%s3164_s27 + $0x130] sm:$0xff] %v266_v38  ;;  %v272_v41 = vld [vmem:[%s3159_s26 + $0x3b8] sm:$0xff]  ;;  %269 = vst [vmem:[%s3164_s27 + $0x138] sm:$0xff] %v268_v39  ;;  %v274_v42 = vld [vmem:[%s3159_s26 + $0x3f0] sm:$0xff] }
  0x27   : > { %271 = vst [vmem:[%s3164_s27 + $0x140] sm:$0xff] %v270_v40  ;;  %273 = vst [vmem:[%s3164_s27 + $0x148] sm:$0xff] %v272_v41  ;;  %v276_v43 = vld [vmem:[%s3159_s26 + $0x3f8] sm:$0xff]  ;;  %v278_v44 = vld [vmem:[%s3159_s26 + $0x400] sm:$0xff] }
  0x28   : > { %275 = vst [vmem:[%s3164_s27 + $0x150] sm:$0xff] %v274_v42  ;;  %277 = vst [vmem:[%s3164_s27 + $0x158] sm:$0xff] %v276_v43  ;;  %v280_v45 = vld [vmem:[%s3159_s26 + $0x438] sm:$0xff]  ;;  %v282_v46 = vld [vmem:[%s3159_s26 + $0x440] sm:$0xff] }
  0x29   : > { %279 = vst [vmem:[%s3164_s27 + $0x160] sm:$0xff] %v278_v44  ;;  %v284_v47 = vld [vmem:[%s3159_s26 + $0x448] sm:$0xff]  ;;  %281 = vst [vmem:[%s3164_s27 + $0x168] sm:$0xff] %v280_v45  ;;  %v286_v48 = vld [vmem:[%s3159_s26 + $0x480] sm:$0xff] }
  0x2a   : > { %283 = vst [vmem:[%s3164_s27 + $0x170] sm:$0xff] %v282_v46  ;;  %285 = vst [vmem:[%s3164_s27 + $0x178] sm:$0xff] %v284_v47  ;;  %v288_v49 = vld [vmem:[%s3159_s26 + $0x488] sm:$0xff]  ;;  %v290_v50 = vld [vmem:[%s3159_s26 + $0x490] sm:$0xff] }
  0x2b   : > { %287 = vst [vmem:[%s3164_s27 + $0x180] sm:$0xff] %v286_v48  ;;  %289 = vst [vmem:[%s3164_s27 + $0x188] sm:$0xff] %v288_v49  ;;  %v292_v51 = vld [vmem:[%s3159_s26 + $0x4c8] sm:$0xff]  ;;  %v294_v52 = vld [vmem:[%s3159_s26 + $0x4d0] sm:$0xff] }
  0x2c   : > { %291 = vst [vmem:[%s3164_s27 + $0x190] sm:$0xff] %v290_v50  ;;  %v296_v53 = vld [vmem:[%s3159_s26 + $0x4d8] sm:$0xff]  ;;  %293 = vst [vmem:[%s3164_s27 + $0x198] sm:$0xff] %v292_v51  ;;  %v298_v54 = vld [vmem:[%s3159_s26 + $0x510] sm:$0xff] }
  0x2d   : > { %295 = vst [vmem:[%s3164_s27 + $0x1a0] sm:$0xff] %v294_v52  ;;  %297 = vst [vmem:[%s3164_s27 + $0x1a8] sm:$0xff] %v296_v53  ;;  %v300_v55 = vld [vmem:[%s3159_s26 + $0x518] sm:$0xff]  ;;  %v302_v56 = vld [vmem:[%s3159_s26 + $0x520] sm:$0xff] }
  0x2e   : > { %299 = vst [vmem:[%s3164_s27 + $0x1b0] sm:$0xff] %v298_v54  ;;  %301 = vst [vmem:[%s3164_s27 + $0x1b8] sm:$0xff] %v300_v55  ;;  %v304_v57 = vld [vmem:[%s3159_s26 + $0x558] sm:$0xff]  ;;  %v306_v58 = vld [vmem:[%s3159_s26 + $0x560] sm:$0xff] }
  0x2f   : > { %303 = vst [vmem:[%s3164_s27 + $0x1c0] sm:$0xff] %v302_v56  ;;  %v308_v59 = vld [vmem:[%s3159_s26 + $0x568] sm:$0xff]  ;;  %305 = vst [vmem:[%s3164_s27 + $0x1c8] sm:$0xff] %v304_v57  ;;  %v310_v60 = vld [vmem:[%s3159_s26 + $0x5a0] sm:$0xff] }
  0x30   : > { %307 = vst [vmem:[%s3164_s27 + $0x1d0] sm:$0xff] %v306_v58  ;;  %309 = vst [vmem:[%s3164_s27 + $0x1d8] sm:$0xff] %v308_v59  ;;  %v312_v61 = vld [vmem:[%s3159_s26 + $0x5a8] sm:$0xff]  ;;  %v314_v62 = vld [vmem:[%s3159_s26 + $0x5b0] sm:$0xff] }
  0x31   : > { %311 = vst [vmem:[%s3164_s27 + $0x1e0] sm:$0xff] %v310_v60  ;;  %313 = vst [vmem:[%s3164_s27 + $0x1e8] sm:$0xff] %v312_v61  ;;  %v316_v63 = vld [vmem:[%s3159_s26 + $0x5e8] sm:$0xff]  ;;  %v318_v0 = vld [vmem:[%s3159_s26 + $0x5f0] sm:$0xff] }
  0x32   : > { %315 = vst [vmem:[%s3164_s27 + $0x1f0] sm:$0xff] %v314_v62  ;;  %v320_v1 = vld [vmem:[%s3159_s26 + $0x5f8] sm:$0xff]  ;;  %317 = vst [vmem:[%s3164_s27 + $0x1f8] sm:$0xff] %v316_v63 }
  0x33   : > { %319 = vst [vmem:[%s3164_s27 + $0x200] sm:$0xff] %v318_v0  ;;  %321 = vst [vmem:[%s3164_s27 + $0x208] sm:$0xff] %v320_v1 }
  0x34 PF: > { %p2432_p6 = scmp.ge.s32.totalorder %s3093_s16, 1  ;;  %p341_p7 = scmp.lt.s32.totalorder %s3093_s16, 4 }
  0x36   : > { %p342_p8 = pnand %p2432_p6, %p341_p7 }
  0x38   : > { %345 = sbr.rel (%p342_p8) target bundleno = 534 (0x216), region = 51 }
  0x3f   : > { %s348_s28 = sand.u32 1, %s3077_s12   ;;  %s392_s29 = smul.u32 96, %s3085_s14 }
  0x40   : > { %s2770_s30 = smul.u32 528, %s348_s28  ;;  %p2435_p10 = scmp.ne.s32.totalorder %s3085_s14, 0 }
  0x41   : > { %p394_p9 = scmp.lt.s32.totalorder %s392_s29, 287  ;;  %v3095_v2 = vmov (!%p2435_p10), 0.0  }
  0x42   : > { %s3304_s8 = scalar_lea.vmem [#allocation3], %s2770_s30  ;;  %424 = sbr.rel (%p2435_p10) target bundleno = 88 (0x58), region = 59  ;;  %425 = vst [vmem:[#allocation2] sm:$0xff] (!%p2435_p10), %v3095_v2  ;;  %426 = vst [vmem:[#allocation2 + $0x8] sm:$0xff] (!%p2435_p10), %v3095_v2 }
  0x43   : > { %s3749_s29 = smov (!%p394_p9, %s392_s29), 287  ;;  %427 = vst [vmem:[#allocation2 + $0x10] sm:$0xff] (!%p2435_p10), %v3095_v2  ;;  %428 = vst [vmem:[#allocation2 + $0x18] sm:$0xff] (!%p2435_p10), %v3095_v2 }
  0x44   : > { %s2626_s4 = sshll.u32 %s3749_s29, 3  ;;  %429 = vst [vmem:[#allocation2 + $0x20] sm:$0xff] (!%p2435_p10), %v3095_v2  ;;  %430 = vst [vmem:[#allocation2 + $0x28] sm:$0xff] (!%p2435_p10), %v3095_v2 }
  0x45   : > { %s3302_s7 = scalar_lea.vmem %s3735_s1, %s2626_s4  ;;  %431 = vst [vmem:[#allocation2 + $0x30] sm:$0xff] (!%p2435_p10), %v3095_v2  ;;  %432 = vst [vmem:[#allocation2 + $0x38] sm:$0xff] (!%p2435_p10), %v3095_v2 }
  0x46   : > { %433 = vst [vmem:[#allocation2 + $0x40] sm:$0xff] (!%p2435_p10), %v3095_v2  ;;  %434 = vst [vmem:[#allocation2 + $0x48] sm:$0xff] (!%p2435_p10), %v3095_v2 }
  0x47   : > { %435 = vst [vmem:[#allocation2 + $0x50] sm:$0xff] (!%p2435_p10), %v3095_v2  ;;  %436 = vst [vmem:[#allocation2 + $0x58] sm:$0xff] (!%p2435_p10), %v3095_v2 }
  0x48   : > { %437 = vst [vmem:[#allocation2 + $0x60] sm:$0xff] (!%p2435_p10), %v3095_v2  ;;  %438 = vst [vmem:[#allocation2 + $0x68] sm:$0xff] (!%p2435_p10), %v3095_v2 }
  0x49   : > { %439 = vst [vmem:[#allocation2 + $0x70] sm:$0xff] %v3095_v2  ;;  %440 = vst [vmem:[#allocation2 + $0x78] sm:$0xff] %v3095_v2 }
  0x4a   : > { %441 = vst [vmem:[#allocation2 + $0x80] sm:$0xff] %v3095_v2  ;;  %442 = vst [vmem:[#allocation2 + $0x88] sm:$0xff] %v3095_v2 }
  0x4b   : > { %443 = vst [vmem:[#allocation2 + $0x90] sm:$0xff] %v3095_v2  ;;  %444 = vst [vmem:[#allocation2 + $0x98] sm:$0xff] %v3095_v2 }
  0x4c   : > { %445 = vst [vmem:[#allocation2 + $0xa0] sm:$0xff] %v3095_v2  ;;  %446 = vst [vmem:[#allocation2 + $0xa8] sm:$0xff] %v3095_v2 }
  0x4d   : > { %447 = vst [vmem:[#allocation2 + $0xb0] sm:$0xff] %v3095_v2  ;;  %448 = vst [vmem:[#allocation2 + $0xb8] sm:$0xff] %v3095_v2 }
  0x4e   : > { %449 = vst [vmem:[#allocation2 + $0xc0] sm:$0xff] %v3095_v2  ;;  %450 = vst [vmem:[#allocation2 + $0xc8] sm:$0xff] %v3095_v2 }
  0x4f   : > { %451 = vst [vmem:[#allocation2 + $0xd0] sm:$0xff] %v3095_v2  ;;  %452 = vst [vmem:[#allocation2 + $0xd8] sm:$0xff] %v3095_v2 }
  0x50   : > { %453 = vst [vmem:[#allocation2 + $0xe0] sm:$0xff] %v3095_v2  ;;  %454 = vst [vmem:[#allocation2 + $0xe8] sm:$0xff] %v3095_v2 }
  0x51   : > { %455 = vst [vmem:[#allocation2 + $0xf0] sm:$0xff] %v3095_v2  ;;  %456 = vst [vmem:[#allocation2 + $0xf8] sm:$0xff] %v3095_v2 }
  0x52   : > { %457 = vst [vmem:[#allocation2 + $0x100] sm:$0xff] %v3095_v2  ;;  %458 = vst [vmem:[#allocation2 + $0x108] sm:$0xff] %v3095_v2 }
  0x53   : > { %459 = vst [vmem:[#allocation2 + $0x110] sm:$0xff] %v3095_v2  ;;  %460 = vst [vmem:[#allocation2 + $0x118] sm:$0xff] %v3095_v2 }
  0x54   : > { %461 = vst [vmem:[#allocation2 + $0x120] sm:$0xff] %v3095_v2  ;;  %462 = vst [vmem:[#allocation2 + $0x128] sm:$0xff] %v3095_v2 }
  0x55   : > { %463 = vst [vmem:[#allocation2 + $0x130] sm:$0xff] %v3095_v2  ;;  %464 = vst [vmem:[#allocation2 + $0x138] sm:$0xff] %v3095_v2 }
  0x56   : > { %465 = vst [vmem:[#allocation2 + $0x140] sm:$0xff] %v3095_v2  ;;  %466 = vst [vmem:[#allocation2 + $0x148] sm:$0xff] %v3095_v2 }
  0x57   : > { %467 = vst [vmem:[#allocation2 + $0x150] sm:$0xff] %v3095_v2  ;;  %468 = vst [vmem:[#allocation2 + $0x158] sm:$0xff] %v3095_v2 }
  0x58 PF: > { %v2812_v3 = vld [vmem:[%s3302_s7 + $0x4] ss:$8 sps:$4 sm:$0xff]   ;;  %v2816_v5 = vld [vmem:[%s3302_s7] ss:$8 sps:$4 sm:$0xff]   ;;  %v2818_v7 = vld [vmem:[%s3302_s7 + $0x14] ss:$8 sps:$4 sm:$0xff]  }
  0x59   : > { %v2814_v4 = vld [vmem:[%s3302_s7 + $0x104] ss:$8 sps:$4 sm:$0xff]   ;;  %1485 = vmatprep.subr.bf16.mxu1 %v2812_v3  ;;  %v2817_v6 = vld [vmem:[%s3302_s7 + $0x100] ss:$8 sps:$4 sm:$0xff]   ;;  %v2820_v8 = vld [vmem:[%s3302_s7 + $0x114] ss:$8 sps:$4 sm:$0xff]  }
  0x5a   : > { %1628 = vmatprep.subr.bf16.mxu0 %v2814_v4  ;;  %1486 = vmatpush1.bf16.msra.mxu1 %v2816_v5  ;;  %v2822_v9 = vld [vmem:[%s3302_s7 + $0x10] ss:$8 sps:$4 sm:$0xff]   ;;  %v2824_v11 = vld [vmem:[%s3302_s7 + $0x24] ss:$8 sps:$4 sm:$0xff]   ;;  %v2828_v13 = vld [vmem:[%s3302_s7 + $0x20] ss:$8 sps:$4 sm:$0xff]  }
  0x5b   : > { %1629 = vmatpush1.bf16.msra.mxu0 %v2817_v6  ;;  %1487 = vmatprep.subr.bf16.mxu1 %v2818_v7  ;;  %v2823_v10 = vld [vmem:[%s3302_s7 + $0x110] ss:$8 sps:$4 sm:$0xff]   ;;  %v2826_v12 = vld [vmem:[%s3302_s7 + $0x124] ss:$8 sps:$4 sm:$0xff]   ;;  %v2829_v14 = vld [vmem:[%s3302_s7 + $0x120] ss:$8 sps:$4 sm:$0xff]  }
  0x5c   : > { %1630 = vmatprep.subr.bf16.mxu0 %v2820_v8  ;;  %v2830_v15 = vld [vmem:[%s3302_s7 + $0x34] ss:$8 sps:$4 sm:$0xff]   ;;  %v2834_v17 = vld [vmem:[%s3302_s7 + $0x30] ss:$8 sps:$4 sm:$0xff]   ;;  %v2836_v19 = vld [vmem:[%s3302_s7 + $0x44] ss:$8 sps:$4 sm:$0xff]  }
  0x5d   : > { %v2832_v16 = vld [vmem:[%s3302_s7 + $0x134] ss:$8 sps:$4 sm:$0xff]   ;;  %v2835_v18 = vld [vmem:[%s3302_s7 + $0x130] ss:$8 sps:$4 sm:$0xff]   ;;  %v2838_v20 = vld [vmem:[%s3302_s7 + $0x144] ss:$8 sps:$4 sm:$0xff]  }
  0x5e   : > { %1488 = vmatpush1.bf16.msra.mxu1 %v2822_v9  ;;  %v2840_v21 = vld [vmem:[%s3302_s7 + $0x40] ss:$8 sps:$4 sm:$0xff]   ;;  %v2842_v23 = vld [vmem:[%s3302_s7 + $0x54] ss:$8 sps:$4 sm:$0xff]   ;;  %v2846_v25 = vld [vmem:[%s3302_s7 + $0x50] ss:$8 sps:$4 sm:$0xff]  }
  0x5f   : > { %1631 = vmatpush1.bf16.msra.mxu0 %v2823_v10  ;;  %1489 = vmatprep.subr.bf16.mxu1 %v2824_v11  ;;  %v2841_v22 = vld [vmem:[%s3302_s7 + $0x140] ss:$8 sps:$4 sm:$0xff]   ;;  %v2844_v24 = vld [vmem:[%s3302_s7 + $0x154] ss:$8 sps:$4 sm:$0xff]   ;;  %v2847_v26 = vld [vmem:[%s3302_s7 + $0x150] ss:$8 sps:$4 sm:$0xff]  }
  0x60   : > { %1632 = vmatprep.subr.bf16.mxu0 %v2826_v12  ;;  %v2848_v27 = vld [vmem:[%s3302_s7 + $0x64] ss:$8 sps:$4 sm:$0xff]   ;;  %v2852_v29 = vld [vmem:[%s3302_s7 + $0x60] ss:$8 sps:$4 sm:$0xff]   ;;  %v2854_v31 = vld [vmem:[%s3302_s7 + $0x74] ss:$8 sps:$4 sm:$0xff]  }
  0x61   : > { %v2850_v28 = vld [vmem:[%s3302_s7 + $0x164] ss:$8 sps:$4 sm:$0xff]   ;;  %v2853_v30 = vld [vmem:[%s3302_s7 + $0x160] ss:$8 sps:$4 sm:$0xff]   ;;  %v2856_v32 = vld [vmem:[%s3302_s7 + $0x174] ss:$8 sps:$4 sm:$0xff]  }
  0x62   : > { %1490 = vmatpush1.bf16.msra.mxu1 %v2828_v13  ;;  %v2858_v33 = vld [vmem:[%s3302_s7 + $0x70] ss:$8 sps:$4 sm:$0xff]   ;;  %v2860_v35 = vld [vmem:[%s3302_s7 + $0x84] ss:$8 sps:$4 sm:$0xff]   ;;  %v2864_v37 = vld [vmem:[%s3302_s7 + $0x80] ss:$8 sps:$4 sm:$0xff]  }
  0x63   : > { %1633 = vmatpush1.bf16.msra.mxu0 %v2829_v14  ;;  %1491 = vmatprep.subr.bf16.mxu1 %v2830_v15  ;;  %v2859_v34 = vld [vmem:[%s3302_s7 + $0x170] ss:$8 sps:$4 sm:$0xff]   ;;  %v2862_v36 = vld [vmem:[%s3302_s7 + $0x184] ss:$8 sps:$4 sm:$0xff]   ;;  %v2865_v38 = vld [vmem:[%s3302_s7 + $0x180] ss:$8 sps:$4 sm:$0xff]  }
  0x64   : > { %1634 = vmatprep.subr.bf16.mxu0 %v2832_v16  ;;  %v2866_v39 = vld [vmem:[%s3302_s7 + $0x94] ss:$8 sps:$4 sm:$0xff]   ;;  %v2870_v41 = vld [vmem:[%s3302_s7 + $0x90] ss:$8 sps:$4 sm:$0xff]   ;;  %v2872_v43 = vld [vmem:[%s3302_s7 + $0xa4] ss:$8 sps:$4 sm:$0xff]  }
  0x65   : > { %v2868_v40 = vld [vmem:[%s3302_s7 + $0x194] ss:$8 sps:$4 sm:$0xff]   ;;  %v2871_v42 = vld [vmem:[%s3302_s7 + $0x190] ss:$8 sps:$4 sm:$0xff]   ;;  %v2874_v44 = vld [vmem:[%s3302_s7 + $0x1a4] ss:$8 sps:$4 sm:$0xff]  }
  0x66   : > { %1492 = vmatpush1.bf16.msra.mxu1 %v2834_v17  ;;  %v2876_v45 = vld [vmem:[%s3302_s7 + $0xa0] ss:$8 sps:$4 sm:$0xff]   ;;  %v2878_v47 = vld [vmem:[%s3302_s7 + $0xb4] ss:$8 sps:$4 sm:$0xff]   ;;  %v2882_v49 = vld [vmem:[%s3302_s7 + $0xb0] ss:$8 sps:$4 sm:$0xff]  }
  0x67   : > { %1635 = vmatpush1.bf16.msra.mxu0 %v2835_v18  ;;  %1493 = vmatprep.subr.bf16.mxu1 %v2836_v19  ;;  %v2877_v46 = vld [vmem:[%s3302_s7 + $0x1a0] ss:$8 sps:$4 sm:$0xff]   ;;  %v2880_v48 = vld [vmem:[%s3302_s7 + $0x1b4] ss:$8 sps:$4 sm:$0xff]   ;;  %v2883_v50 = vld [vmem:[%s3302_s7 + $0x1b0] ss:$8 sps:$4 sm:$0xff]  }
  0x68   : > { %1636 = vmatprep.subr.bf16.mxu0 %v2838_v20  ;;  %v2884_v51 = vld [vmem:[%s3302_s7 + $0xc4] ss:$8 sps:$4 sm:$0xff]   ;;  %v2888_v55 = vld [vmem:[%s3302_s7 + $0xc0] ss:$8 sps:$4 sm:$0xff]   ;;  %v2890_v57 = vld [vmem:[%s3302_s7 + $0xd4] ss:$8 sps:$4 sm:$0xff]  }
  0x69   : > { %v2910_v52 = vld [vmem:[%s3304_s8 + $0x4] ss:$24 sps:$4 sm:$0xff]   ;;  %v2889_v56 = vld [vmem:[%s3302_s7 + $0x1c0] ss:$8 sps:$4 sm:$0xff]   ;;  %v2894_v59 = vld [vmem:[%s3302_s7 + $0xd0] ss:$8 sps:$4 sm:$0xff]  }
  0x6a   : > { %1494 = vmatpush1.bf16.msra.mxu1 %v2840_v21  ;;  %v2886_v53 = vld [vmem:[%s3302_s7 + $0x1c4] ss:$8 sps:$4 sm:$0xff]   ;;  %1517 = vmatprep.mubr.bf16.mxu1 %v2910_v52  ;;  %v2892_v58 = vld [vmem:[%s3302_s7 + $0x1d4] ss:$8 sps:$4 sm:$0xff]   ;;  %v2895_v60 = vld [vmem:[%s3302_s7 + $0x1d0] ss:$8 sps:$4 sm:$0xff]  }
  0x6b   : > { %1637 = vmatpush1.bf16.msra.mxu0 %v2841_v22  ;;  %1495 = vmatprep.subr.bf16.mxu1 %v2842_v23  ;;  %v2913_v54 = vld [vmem:[%s3304_s8 + $0xc] ss:$24 sps:$4 sm:$0xff]   ;;  %v2900_v63 = vld [vmem:[%s3302_s7 + $0xe0] ss:$8 sps:$4 sm:$0xff]   ;;  %v2906_v3 = vld [vmem:[%s3302_s7 + $0xf0] ss:$8 sps:$4 sm:$0xff]  }
  0x6c   : > { %1638 = vmatprep.subr.bf16.mxu0 %v2844_v24  ;;  %1660 = vmatprep.mubr.bf16.mxu0 %v2913_v54  ;;  %v2896_v61 = vld [vmem:[%s3302_s7 + $0xe4] ss:$8 sps:$4 sm:$0xff]   ;;  %v2901_v0 = vld [vmem:[%s3302_s7 + $0x1e0] ss:$8 sps:$4 sm:$0xff]   ;;  %v2902_v1 = vld [vmem:[%s3302_s7 + $0xf4] ss:$8 sps:$4 sm:$0xff]  }
  0x6d   : > { %v2898_v62 = vld [vmem:[%s3302_s7 + $0x1e4] ss:$8 sps:$4 sm:$0xff]   ;;  %v2904_v2 = vld [vmem:[%s3302_s7 + $0x1f4] ss:$8 sps:$4 sm:$0xff]   ;;  %v2907_v4 = vld [vmem:[%s3302_s7 + $0x1f0] ss:$8 sps:$4 sm:$0xff]  }
  0x6e   : > { %1496 = vmatpush1.bf16.msra.mxu1 %v2846_v25  ;;  %v2916_v5 = vld [vmem:[%s3302_s7 + $0x204] ss:$8 sps:$4 sm:$0xff]   ;;  %v2908_v6 = vld [vmem:[%s3304_s8] ss:$24 sps:$4 sm:$0xff]   ;;  %v2919_v9 = vld [vmem:[%s3302_s7 + $0x214] ss:$8 sps:$4 sm:$0xff]  }
  0x6f   : > { %1639 = vmatpush1.bf16.msra.mxu0 %v2847_v26  ;;  %1497 = vmatprep.subr.bf16.mxu1 %v2848_v27  ;;  %v2911_v7 = vld [vmem:[%s3304_s8 + $0x8] ss:$24 sps:$4 sm:$0xff]   ;;  %v2920_v10 = vld [vmem:[%s3304_s8 + $0x34] ss:$24 sps:$4 sm:$0xff]   ;;  %v2925_v15 = vld [vmem:[%s3304_s8 + $0x38] ss:$24 sps:$4 sm:$0xff]  }
  0x70   : > { %1640 = vmatprep.subr.bf16.mxu0 %v2850_v28  ;;  %v2914_v8 = vld [vmem:[%s3302_s7 + $0x200] ss:$8 sps:$4 sm:$0xff]   ;;  %v2922_v11 = vld [vmem:[%s3304_s8 + $0x3c] ss:$24 sps:$4 sm:$0xff]   ;;  %v2917_v12 = vld [vmem:[%s3302_s7 + $0x210] ss:$8 sps:$4 sm:$0xff]  }
  0x71   : > { %v2928_v13 = vld [vmem:[%s3302_s7 + $0x224] ss:$8 sps:$4 sm:$0xff]   ;;  %v2924_v14 = vld [vmem:[%s3304_s8 + $0x30] ss:$24 sps:$4 sm:$0xff]   ;;  %v2937_v19 = vld [vmem:[%s3302_s7 + $0x234] ss:$8 sps:$4 sm:$0xff]  }
  0x72   : > { %1498 = vmatpush1.bf16.msra.mxu1 %v2852_v29  ;;  %v2926_v16 = vld [vmem:[%s3302_s7 + $0x220] ss:$8 sps:$4 sm:$0xff]   ;;  %v2929_v17 = vld [vmem:[%s3304_s8 + $0x64] ss:$24 sps:$4 sm:$0xff]   ;;  %v2935_v20 = vld [vmem:[%s3302_s7 + $0x230] ss:$8 sps:$4 sm:$0xff]  }
  0x73   : > { %1641 = vmatpush1.bf16.msra.mxu0 %v2853_v30  ;;  %1499 = vmatprep.subr.bf16.mxu1 %v2854_v31  ;;  %v2931_v18 = vld [vmem:[%s3304_s8 + $0x6c] ss:$24 sps:$4 sm:$0xff]   ;;  %v2933_v22 = vld [vmem:[%s3304_s8 + $0x60] ss:$24 sps:$4 sm:$0xff]   ;;  %v2943_v25 = vld [vmem:[%s3304_s8 + $0x9c] ss:$24 sps:$4 sm:$0xff]  }
  0x74   : > { %1642 = vmatprep.subr.bf16.mxu0 %v2856_v32  ;;  %v2940_v21 = vld [vmem:[%s3302_s7 + $0x244] ss:$8 sps:$4 sm:$0xff]   ;;  %v2934_v23 = vld [vmem:[%s3304_s8 + $0x68] ss:$24 sps:$4 sm:$0xff]   ;;  %v2949_v27 = vld [vmem:[%s3302_s7 + $0x254] ss:$8 sps:$4 sm:$0xff]  }
  0x75   : > { %v2941_v24 = vld [vmem:[%s3304_s8 + $0x94] ss:$24 sps:$4 sm:$0xff]   ;;  %v2938_v26 = vld [vmem:[%s3302_s7 + $0x240] ss:$8 sps:$4 sm:$0xff]   ;;  %v2947_v28 = vld [vmem:[%s3302_s7 + $0x250] ss:$8 sps:$4 sm:$0xff]  }
  0x76   : > { %1500 = vmatpush1.bf16.msra.mxu1 %v2858_v33  ;;  %v2945_v29 = vld [vmem:[%s3304_s8 + $0x90] ss:$24 sps:$4 sm:$0xff]   ;;  %v2958_v30 = vld [vmem:[%s3302_s7 + $0x264] ss:$8 sps:$4 sm:$0xff]   ;;  %v2975_v54 = vld [vmem:[%s3304_s8 + $0x120] ss:$24 sps:$4 sm:$0xff]  }
  0x77   : > { %1643 = vmatpush1.bf16.msra.mxu0 %v2859_v34  ;;  %1501 = vmatprep.subr.bf16.mxu1 %v2860_v35  ;;  %v2946_v31 = vld [vmem:[%s3304_s8 + $0x98] ss:$24 sps:$4 sm:$0xff]   ;;  %v2950_v32 = vld [vmem:[%s3304_s8 + $0xc4] ss:$24 sps:$4 sm:$0xff]   ;;  %p2598_p11 = scmp.ne.s32.totalorder %s3085_s14, 2 }
  0x78   : > { %1644 = vmatprep.subr.bf16.mxu0 %v2862_v36  ;;  %v2952_v33 = vld [vmem:[%s3304_s8 + $0xcc] ss:$24 sps:$4 sm:$0xff]   ;;  %v2956_v34 = vld [vmem:[%s3302_s7 + $0x260] ss:$8 sps:$4 sm:$0xff]   ;;  %v2963_v36 = vld [vmem:[%s3302_s7 + $0x270] ss:$8 sps:$4 sm:$0xff]  }
  0x79   : > { %v2965_v35 = vld [vmem:[%s3302_s7 + $0x274] ss:$8 sps:$4 sm:$0xff]   ;;  %v2989_v52 = vld [vmem:[%s3302_s7 + $0x2b0] ss:$8 sps:$4 sm:$0xff]  }
  0x7a   : > { %1502 = vmatpush1.bf16.msra.mxu1 %v2864_v37  ;;  %v2954_v37 = vld [vmem:[%s3304_s8 + $0xc0] ss:$24 sps:$4 sm:$0xff]  }
  0x7b   : > { %1645 = vmatpush1.bf16.msra.mxu0 %v2865_v38  ;;  %1503 = vmatprep.subr.bf16.mxu1 %v2866_v39  ;;  %v2970_v38 = vld [vmem:[%s3302_s7 + $0x284] ss:$8 sps:$4 sm:$0xff]   ;;  %v2955_v39 = vld [vmem:[%s3304_s8 + $0xc8] ss:$24 sps:$4 sm:$0xff]  }
  0x7c   : > { %1646 = vmatprep.subr.bf16.mxu0 %v2868_v40  ;;  %v2959_v40 = vld [vmem:[%s3304_s8 + $0xf4] ss:$24 sps:$4 sm:$0xff]  }
  0x7e   : > { %1504 = vmatpush1.bf16.msra.mxu1 %v2870_v41  ;;  %v2961_v41 = vld [vmem:[%s3304_s8 + $0xfc] ss:$24 sps:$4 sm:$0xff]  }
  0x7f   : > { %1647 = vmatpush1.bf16.msra.mxu0 %v2871_v42  ;;  %1505 = vmatprep.subr.bf16.mxu1 %v2872_v43  ;;  %v2968_v42 = vld [vmem:[%s3302_s7 + $0x280] ss:$8 sps:$4 sm:$0xff]   ;;  %v2979_v43 = vld [vmem:[%s3302_s7 + $0x294] ss:$8 sps:$4 sm:$0xff]  }
  0x80   : > { %1648 = vmatprep.subr.bf16.mxu0 %v2874_v44  ;;  %v2977_v44 = vld [vmem:[%s3302_s7 + $0x290] ss:$8 sps:$4 sm:$0xff]  }
  0x82   : > { %1506 = vmatpush1.bf16.msra.mxu1 %v2876_v45  ;;  %v2986_v45 = vld [vmem:[%s3302_s7 + $0x2a4] ss:$8 sps:$4 sm:$0xff]  }
  0x83   : > { %1649 = vmatpush1.bf16.msra.mxu0 %v2877_v46  ;;  %1507 = vmatprep.subr.bf16.mxu1 %v2878_v47  ;;  %v2966_v46 = vld [vmem:[%s3304_s8 + $0xf0] ss:$24 sps:$4 sm:$0xff]  }
  0x84   : > { %1650 = vmatprep.subr.bf16.mxu0 %v2880_v48  ;;  %v2967_v47 = vld [vmem:[%s3304_s8 + $0xf8] ss:$24 sps:$4 sm:$0xff]   ;;  %v2971_v48 = vld [vmem:[%s3304_s8 + $0x124] ss:$24 sps:$4 sm:$0xff]  }
  0x86   : > { %1508 = vmatpush1.bf16.msra.mxu1 %v2882_v49  ;;  %v2973_v49 = vld [vmem:[%s3304_s8 + $0x12c] ss:$24 sps:$4 sm:$0xff]  }
  0x87   : > { %1651 = vmatpush1.bf16.msra.mxu0 %v2883_v50  ;;  %1509 = vmatprep.subr.bf16.mxu1 %v2884_v51  ;;  %v2984_v50 = vld [vmem:[%s3302_s7 + $0x2a0] ss:$8 sps:$4 sm:$0xff]   ;;  %v2991_v51 = vld [vmem:[%s3302_s7 + $0x2b4] ss:$8 sps:$4 sm:$0xff]  }
  0x88   : > { %1652 = vmatprep.subr.bf16.mxu0 %v2886_v53  ;;  %v3000_v53 = vld [vmem:[%s3302_s7 + $0x2c4] ss:$8 sps:$4 sm:$0xff]  }
  0x8a   : > { %1510 = vmatpush1.bf16.msra.mxu1 %v2888_v55  ;;  %v2976_v55 = vld [vmem:[%s3304_s8 + $0x128] ss:$24 sps:$4 sm:$0xff]  }
  0x8b   : > { %1653 = vmatpush1.bf16.msra.mxu0 %v2889_v56  ;;  %1511 = vmatprep.subr.bf16.mxu1 %v2890_v57  ;;  %v2980_v56 = vld [vmem:[%s3304_s8 + $0x154] ss:$24 sps:$4 sm:$0xff]  }
  0x8c   : > { %1654 = vmatprep.subr.bf16.mxu0 %v2892_v58  ;;  %v2982_v57 = vld [vmem:[%s3304_s8 + $0x15c] ss:$24 sps:$4 sm:$0xff]   ;;  %v2998_v58 = vld [vmem:[%s3302_s7 + $0x2c0] ss:$8 sps:$4 sm:$0xff]  }
  0x8e   : > { %1512 = vmatpush1.bf16.msra.mxu1 %v2894_v59  ;;  %v3009_v59 = vld [vmem:[%s3302_s7 + $0x2d4] ss:$8 sps:$4 sm:$0xff]  }
  0x8f   : > { %1655 = vmatpush1.bf16.msra.mxu0 %v2895_v60  ;;  %1513 = vmatprep.subr.bf16.mxu1 %v2896_v61  ;;  %v3007_v60 = vld [vmem:[%s3302_s7 + $0x2d0] ss:$8 sps:$4 sm:$0xff]   ;;  %v3012_v61 = vld [vmem:[%s3302_s7 + $0x2e4] ss:$8 sps:$4 sm:$0xff]  }
  0x90   : > { %1656 = vmatprep.subr.bf16.mxu0 %v2898_v62  ;;  %v2987_v62 = vld [vmem:[%s3304_s8 + $0x150] ss:$24 sps:$4 sm:$0xff]  }
  0x92   : > { %1514 = vmatpush1.bf16.msra.mxu1 %v2900_v63  ;;  %v2988_v63 = vld [vmem:[%s3304_s8 + $0x158] ss:$24 sps:$4 sm:$0xff]  }
  0x93   : > { %1657 = vmatpush1.bf16.msra.mxu0 %v2901_v0  ;;  %1515 = vmatprep.subr.bf16.mxu1 %v2902_v1  ;;  %v2992_v0 = vld [vmem:[%s3304_s8 + $0x184] ss:$24 sps:$4 sm:$0xff]  }
  0x94   : > { %1658 = vmatprep.subr.bf16.mxu0 %v2904_v2  ;;  %v2994_v1 = vld [vmem:[%s3304_s8 + $0x18c] ss:$24 sps:$4 sm:$0xff]   ;;  %v3010_v2 = vld [vmem:[%s3302_s7 + $0x2e0] ss:$8 sps:$4 sm:$0xff]  }
  0x96   : > { %1516 = vmatpush1.bf16.msra.mxu1 %v2906_v3  ;;  %v3021_v3 = vld [vmem:[%s3302_s7 + $0x2f4] ss:$8 sps:$4 sm:$0xff]  }
  0x97   : > { %1659 = vmatpush1.bf16.msra.mxu0 %v2907_v4  ;;  %2649 = vmatprep.subr.bf16.mxu1 %v2916_v5  ;;  %v3019_v4 = vld [vmem:[%s3302_s7 + $0x2f0] ss:$8 sps:$4 sm:$0xff]  }
  0x98   : > { %1771 = vmatprep.subr.bf16.mxu0 %v2916_v5  ;;  %v2996_v5 = vld [vmem:[%s3304_s8 + $0x180] ss:$24 sps:$4 sm:$0xff]  }
  0x99   : > { %1518 = vmatmul.mubr.bf16.vlgmr.msra.gmra.mrb[0].mxu1 %v2908_v6  ;;  %v2997_v6 = vld [vmem:[%s3304_s8 + $0x188] ss:$24 sps:$4 sm:$0xff]  }
  0x9a   : > { %1661 = vmatmul.mubr.bf16.vlgmr.msra.gmra.mrb[0].mxu0 %v2911_v7  ;;  %1527 = vmatprep.mubr.bf16.mxu1 %v2920_v10  ;;  %v3001_v7 = vld [vmem:[%s3304_s8 + $0x1b4] ss:$24 sps:$4 sm:$0xff]   ;;  %v3006_v10 = vld [vmem:[%s3304_s8 + $0x1b8] ss:$24 sps:$4 sm:$0xff]  }
  0x9b   : > { %1772 = vmatpush1.bf16.msra.mxu0 %v2914_v8  ;;  %1670 = vmatprep.mubr.bf16.mxu0 %v2922_v11  ;;  %v3013_v11 = vld [vmem:[%s3304_s8 + $0x1e4] ss:$24 sps:$4 sm:$0xff]  }
  0x9c   : > { %1773 = vmatprep.subr.bf16.mxu0 %v2919_v9  ;;  %2665 = vmatpush1.bf16.msra.mxu1 %v2914_v8  ;;  %v3003_v8 = vld [vmem:[%s3304_s8 + $0x1bc] ss:$24 sps:$4 sm:$0xff]  }
  0x9d   : > { %2650 = vmatprep.subr.bf16.mxu1 %v2919_v9  ;;  %v3005_v9 = vld [vmem:[%s3304_s8 + $0x1b0] ss:$24 sps:$4 sm:$0xff]  }
  0x9f   : > { %1774 = vmatpush1.bf16.msra.mxu0 %v2917_v12 }
  0xa0   : > { %1775 = vmatprep.subr.bf16.mxu0 %v2928_v13  ;;  %2666 = vmatpush1.bf16.msra.mxu1 %v2917_v12  ;;  %v3015_v12 = vld [vmem:[%s3304_s8 + $0x1ec] ss:$24 sps:$4 sm:$0xff]  }
  0xa1   : > { %1528 = vmatmul.mubr.bf16.gmra.mrb[4].mxu1 %v2924_v14  ;;  %2651 = vmatprep.subr.bf16.mxu1 %v2928_v13  ;;  %v3017_v13 = vld [vmem:[%s3304_s8 + $0x1e0] ss:$24 sps:$4 sm:$0xff]  }
  0xa2   : > { %1671 = vmatmul.mubr.bf16.gmra.mrb[4].mxu0 %v2925_v15  ;;  %1537 = vmatprep.mubr.bf16.mxu1 %v2929_v17  ;;  %v3018_v14 = vld [vmem:[%s3304_s8 + $0x1e8] ss:$24 sps:$4 sm:$0xff]   ;;  %v3024_v15 = vld [vmem:[%s3304_s8 + $0x14] ss:$24 sps:$4 sm:$0xff]  }
  0xa3   : > { %1776 = vmatpush1.bf16.msra.mxu0 %v2926_v16  ;;  %1680 = vmatprep.mubr.bf16.mxu0 %v2931_v18  ;;  %v3022_v17 = vld [vmem:[%s3304_s8 + $0x10] ss:$24 sps:$4 sm:$0xff]  }
  0xa4   : > { %1777 = vmatprep.subr.bf16.mxu0 %v2937_v19  ;;  %2667 = vmatpush1.bf16.msra.mxu1 %v2926_v16  ;;  %v3027_v16 = vld [vmem:[%s3304_s8 + $0x134] ss:$24 sps:$4 sm:$0xff]   ;;  %v3025_v18 = vld [vmem:[%s3304_s8 + $0x130] ss:$24 sps:$4 sm:$0xff]  }
  0xa5   : > { %2652 = vmatprep.subr.bf16.mxu1 %v2937_v19  ;;  %v3028_v19 = vld [vmem:[%s3304_s8 + $0x44] ss:$24 sps:$4 sm:$0xff]  }
  0xa7   : > { %1778 = vmatpush1.bf16.msra.mxu0 %v2935_v20 }
  0xa8   : > { %1779 = vmatprep.subr.bf16.mxu0 %v2940_v21  ;;  %2668 = vmatpush1.bf16.msra.mxu1 %v2935_v20  ;;  %v3030_v20 = vld [vmem:[%s3304_s8 + $0x164] ss:$24 sps:$4 sm:$0xff]  }
  0xa9   : > { %1538 = vmatmul.mubr.bf16.gmra.mrb[8].mxu1 %v2933_v22  ;;  %2653 = vmatprep.subr.bf16.mxu1 %v2940_v21  ;;  %v3032_v21 = vld [vmem:[%s3304_s8 + $0x40] ss:$24 sps:$4 sm:$0xff]  }
  0xaa   : > { %1681 = vmatmul.mubr.bf16.gmra.mrb[8].mxu0 %v2934_v23  ;;  %1547 = vmatprep.mubr.bf16.mxu1 %v2941_v24  ;;  %v3033_v22 = vld [vmem:[%s3304_s8 + $0x160] ss:$24 sps:$4 sm:$0xff]   ;;  %v3034_v23 = vld [vmem:[%s3304_s8 + $0x74] ss:$24 sps:$4 sm:$0xff]  }
  0xab   : > { %1690 = vmatprep.mubr.bf16.mxu0 %v2943_v25  ;;  %1780 = vmatpush1.bf16.msra.mxu0 %v2938_v26  ;;  %v3036_v24 = vld [vmem:[%s3304_s8 + $0x194] ss:$24 sps:$4 sm:$0xff]   ;;  %v3038_v25 = vld [vmem:[%s3304_s8 + $0x70] ss:$24 sps:$4 sm:$0xff]  }
  0xac   : > { %1781 = vmatprep.subr.bf16.mxu0 %v2949_v27  ;;  %2669 = vmatpush1.bf16.msra.mxu1 %v2938_v26  ;;  %v3039_v26 = vld [vmem:[%s3304_s8 + $0x190] ss:$24 sps:$4 sm:$0xff]  }
  0xad   : > { %2654 = vmatprep.subr.bf16.mxu1 %v2949_v27  ;;  %v3040_v27 = vld [vmem:[%s3304_s8 + $0xa4] ss:$24 sps:$4 sm:$0xff]  }
  0xaf   : > { %1782 = vmatpush1.bf16.msra.mxu0 %v2947_v28 }
  0xb0   : > { %1783 = vmatprep.subr.bf16.mxu0 %v2958_v30  ;;  %2670 = vmatpush1.bf16.msra.mxu1 %v2947_v28  ;;  %v3042_v28 = vld [vmem:[%s3304_s8 + $0x1c4] ss:$24 sps:$4 sm:$0xff]  }
  0xb1   : > { %1548 = vmatmul.mubr.bf16.gmra.mrb[12].mxu1 %v2945_v29  ;;  %2655 = vmatprep.subr.bf16.mxu1 %v2958_v30  ;;  %v3044_v29 = vld [vmem:[%s3304_s8 + $0xa0] ss:$24 sps:$4 sm:$0xff]  }
  0xb2   : > { %1691 = vmatmul.mubr.bf16.gmra.mrb[12].mxu0 %v2946_v31  ;;  %1557 = vmatprep.mubr.bf16.mxu1 %v2950_v32  ;;  %v3045_v30 = vld [vmem:[%s3304_s8 + $0x1c0] ss:$24 sps:$4 sm:$0xff]   ;;  %v3046_v31 = vld [vmem:[%s3304_s8 + $0xd4] ss:$24 sps:$4 sm:$0xff]  }
  0xb3   : > { %1700 = vmatprep.mubr.bf16.mxu0 %v2952_v33  ;;  %1784 = vmatpush1.bf16.msra.mxu0 %v2956_v34  ;;  %v3048_v32 = vld [vmem:[%s3304_s8 + $0x1f4] ss:$24 sps:$4 sm:$0xff]   ;;  %v3050_v33 = vld [vmem:[%s3304_s8 + $0xd0] ss:$24 sps:$4 sm:$0xff]  }
  0xb4   : > { %1785 = vmatprep.subr.bf16.mxu0 %v2965_v35  ;;  %2671 = vmatpush1.bf16.msra.mxu1 %v2956_v34  ;;  %v3051_v34 = vld [vmem:[%s3304_s8 + $0x1f0] ss:$24 sps:$4 sm:$0xff]  }
  0xb5   : > { %2656 = vmatprep.subr.bf16.mxu1 %v2965_v35  ;;  %v3052_v35 = vld [vmem:[%s3304_s8 + $0x104] ss:$24 sps:$4 sm:$0xff]  }
  0xb7   : > { %1786 = vmatpush1.bf16.msra.mxu0 %v2963_v36 }
  0xb8   : > { %1787 = vmatprep.subr.bf16.mxu0 %v2970_v38  ;;  %2672 = vmatpush1.bf16.msra.mxu1 %v2963_v36  ;;  %v3054_v36 = vld [vmem:[%s3304_s8 + $0x100] ss:$24 sps:$4 sm:$0xff]  }
  0xb9   : > { %1558 = vmatmul.mubr.bf16.gmra.mrb[16].mxu1 %v2954_v37  ;;  %2657 = vmatprep.subr.bf16.mxu1 %v2970_v38 }
  0xba   : > { %1701 = vmatmul.mubr.bf16.gmra.mrb[16].mxu0 %v2955_v39  ;;  %1567 = vmatprep.mubr.bf16.mxu1 %v2959_v40 }
  0xbb   : > { %1710 = vmatprep.mubr.bf16.mxu0 %v2961_v41  ;;  %1788 = vmatpush1.bf16.msra.mxu0 %v2968_v42 }
  0xbc   : > { %1789 = vmatprep.subr.bf16.mxu0 %v2979_v43  ;;  %2673 = vmatpush1.bf16.msra.mxu1 %v2968_v42 }
  0xbd   : > { %2658 = vmatprep.subr.bf16.mxu1 %v2979_v43 }
  0xbf   : > { %1790 = vmatpush1.bf16.msra.mxu0 %v2977_v44 }
  0xc0   : > { %1791 = vmatprep.subr.bf16.mxu0 %v2986_v45  ;;  %2674 = vmatpush1.bf16.msra.mxu1 %v2977_v44 }
  0xc1   : > { %1568 = vmatmul.mubr.bf16.gmra.mrb[20].mxu1 %v2966_v46  ;;  %2659 = vmatprep.subr.bf16.mxu1 %v2986_v45 }
  0xc2   : > { %1711 = vmatmul.mubr.bf16.gmra.mrb[20].mxu0 %v2967_v47  ;;  %1577 = vmatprep.mubr.bf16.mxu1 %v2971_v48 }
  0xc3   : > { %1720 = vmatprep.mubr.bf16.mxu0 %v2973_v49  ;;  %1792 = vmatpush1.bf16.msra.mxu0 %v2984_v50 }
  0xc4   : > { %1793 = vmatprep.subr.bf16.mxu0 %v2991_v51  ;;  %2675 = vmatpush1.bf16.msra.mxu1 %v2984_v50 }
  0xc5   : > { %2660 = vmatprep.subr.bf16.mxu1 %v2991_v51 }
  0xc7   : > { %1794 = vmatpush1.bf16.msra.mxu0 %v2989_v52 }
  0xc8   : > { %1795 = vmatprep.subr.bf16.mxu0 %v3000_v53  ;;  %2676 = vmatpush1.bf16.msra.mxu1 %v2989_v52 }
  0xc9   : > { %1578 = vmatmul.mubr.bf16.gmra.mrb[24].mxu1 %v2975_v54  ;;  %2661 = vmatprep.subr.bf16.mxu1 %v3000_v53 }
  0xca   : > { %1721 = vmatmul.mubr.bf16.gmra.mrb[24].mxu0 %v2976_v55  ;;  %1587 = vmatprep.mubr.bf16.mxu1 %v2980_v56 }
  0xcb   : > { %1730 = vmatprep.mubr.bf16.mxu0 %v2982_v57  ;;  %1796 = vmatpush1.bf16.msra.mxu0 %v2998_v58 }
  0xcc   : > { %1797 = vmatprep.subr.bf16.mxu0 %v3009_v59  ;;  %2677 = vmatpush1.bf16.msra.mxu1 %v2998_v58 }
  0xcd   : > { %2662 = vmatprep.subr.bf16.mxu1 %v3009_v59 }
  0xcf   : > { %1798 = vmatpush1.bf16.msra.mxu0 %v3007_v60 }
  0xd0   : > { %1799 = vmatprep.subr.bf16.mxu0 %v3012_v61  ;;  %2678 = vmatpush1.bf16.msra.mxu1 %v3007_v60 }
  0xd1   : > { %1588 = vmatmul.mubr.bf16.gmra.mrb[28].mxu1 %v2987_v62  ;;  %2663 = vmatprep.subr.bf16.mxu1 %v3012_v61 }
  0xd2   : > { %1731 = vmatmul.mubr.bf16.gmra.mrb[28].mxu0 %v2988_v63  ;;  %1597 = vmatprep.mubr.bf16.mxu1 %v2992_v0 }
  0xd3   : > { %1740 = vmatprep.mubr.bf16.mxu0 %v2994_v1  ;;  %1800 = vmatpush1.bf16.msra.mxu0 %v3010_v2 }
  0xd4   : > { %1801 = vmatprep.subr.bf16.mxu0 %v3021_v3  ;;  %2679 = vmatpush1.bf16.msra.mxu1 %v3010_v2 }
  0xd5   : > { %2664 = vmatprep.subr.bf16.mxu1 %v3021_v3 }
  0xd7   : > { %1802 = vmatpush1.bf16.msra.mxu0 %v3019_v4 }
  0xd8   : > { %2680 = vmatpush1.bf16.msra.mxu1 %v3019_v4 }
  0xd9   : > { %1598 = vmatmul.mubr.bf16.gmra.mrb[32].mxu1 %v2996_v5 }
  0xda   : > { %1741 = vmatmul.mubr.bf16.gmra.mrb[32].mxu0 %v2997_v6  ;;  %1607 = vmatprep.mubr.bf16.mxu1 %v3001_v7 }
  0xdb   : > { %1750 = vmatprep.mubr.bf16.mxu0 %v3003_v8 }
  0xe1   : > { %1608 = vmatmul.mubr.bf16.gmra.mrb[36].mxu1 %v3005_v9 }
  0xe2   : > { %1751 = vmatmul.mubr.bf16.gmra.mrb[36].mxu0 %v3006_v10  ;;  %1617 = vmatprep.mubr.bf16.mxu1 %v3013_v11 }
  0xe3   : > { %1760 = vmatprep.mubr.bf16.mxu0 %v3015_v12 }
  0xe9   : > { %1618 = vmatmul.mubr.bf16.gmra.mrb[40].mxu1 %v3017_v13 }
  0xea   : > { %1761 = vmatmul.mubr.bf16.gmra.mrb[40].mxu0 %v3018_v14  ;;  %1863 = vmatprep.mubr.bf16.mxu1 %v3027_v16 }
  0xeb   : > { %1803 = vmatprep.mubr.bf16.mxu0 %v3024_v15 }
  0xf1   : > { %1864 = vmatmul.mubr.bf16.vlgmr.msra.gmra.mrb[44].mxu1 %v3025_v18 }
  0xf2   : > { %1804 = vmatmul.mubr.bf16.vlgmr.msra.gmra.mrb[0].mxu0 %v3022_v17  ;;  %1873 = vmatprep.mubr.bf16.mxu1 %v3030_v20 }
  0xf3   : > { %1813 = vmatprep.mubr.bf16.mxu0 %v3028_v19 }
  0xf9   : > { %1874 = vmatmul.mubr.bf16.gmra.mrb[48].mxu1 %v3033_v22 }
  0xfa   : > { %1814 = vmatmul.mubr.bf16.gmra.mrb[4].mxu0 %v3032_v21  ;;  %1883 = vmatprep.mubr.bf16.mxu1 %v3036_v24 }
  0xfb   : > { %1823 = vmatprep.mubr.bf16.mxu0 %v3034_v23 }
 0x101   : > { %1884 = vmatmul.mubr.bf16.gmra.mrb[52].mxu1 %v3039_v26 }
 0x102   : > { %1824 = vmatmul.mubr.bf16.gmra.mrb[8].mxu0 %v3038_v25  ;;  %1893 = vmatprep.mubr.bf16.mxu1 %v3042_v28 }
 0x103   : > { %1833 = vmatprep.mubr.bf16.mxu0 %v3040_v27 }
 0x109   : > { %1894 = vmatmul.mubr.bf16.gmra.mrb[56].mxu1 %v3045_v30 }
 0x10a   : > { %1834 = vmatmul.mubr.bf16.gmra.mrb[12].mxu0 %v3044_v29  ;;  %1903 = vmatprep.mubr.bf16.mxu1 %v3048_v32 }
 0x10b   : > { %1843 = vmatprep.mubr.bf16.mxu0 %v3046_v31 }
 0x111   : > { %1904 = vmatmul.mubr.bf16.gmra.mrb[60].mxu1 %v3051_v34 }
 0x112   : > { %1844 = vmatmul.mubr.bf16.gmra.mrb[16].mxu0 %v3050_v33 }
 0x113   : > { %1853 = vmatprep.mubr.bf16.mxu0 %v3052_v35 }
 0x11a   : > { %1854 = vmatmul.mubr.bf16.gmra.mrb[20].mxu0 %v3054_v36 }
 0x16c   : > { %v3469_v37 = vpop.f32.mrb[0].mxu1 }
 0x16d   : > { %v3471_v38 = vpop.f32.mrb[1].mxu1 }
 0x16e   : > { %v3473_v39 = vpop.f32.mrb[2].mxu1 }
 0x16f   : > { %v3475_v40 = vpop.f32.mrb[3].mxu1 }
 0x174   : > { %v3477_v41 = vpop.f32.mrb[4].mxu1 }
 0x175   : > { %v3479_v42 = vpop.f32.mrb[5].mxu1 }
 0x176   : > { %v3481_v43 = vpop.f32.mrb[6].mxu1 }
 0x177   : > { %v3483_v44 = vpop.f32.mrb[7].mxu1 }
 0x17c   : > { %v3485_v45 = vpop.f32.mrb[8].mxu1 }
 0x17d   : > { %v3487_v46 = vpop.f32.mrb[9].mxu1 }
 0x17e   : > { %v3489_v47 = vpop.f32.mrb[10].mxu1 }
 0x17f   : > { %v3491_v48 = vpop.f32.mrb[11].mxu1 }
 0x184   : > { %v3493_v49 = vpop.f32.mrb[12].mxu1 }
 0x185   : > { %v3495_v50 = vpop.f32.mrb[13].mxu1 }
 0x186   : > { %v3497_v51 = vpop.f32.mrb[14].mxu1 }
 0x187   : > { %v3499_v52 = vpop.f32.mrb[15].mxu1 }
 0x18c   : > { %v3501_v53 = vpop.f32.mrb[16].mxu1 }
 0x18d   : > { %v3503_v54 = vpop.f32.mrb[17].mxu1 }
 0x18e   : > { %v3505_v55 = vpop.f32.mrb[18].mxu1 }
 0x18f   : > { %v3507_v56 = vpop.f32.mrb[19].mxu1 }
 0x194   : > { %v3509_v57 = vpop.f32.mrb[20].mxu1 }
 0x195   : > { %v3511_v58 = vpop.f32.mrb[21].mxu1 }
 0x196   : > { %v3513_v59 = vpop.f32.mrb[22].mxu1 }
 0x197   : > { %3738 = vst [vmem:[#allocation4_spill] sm:$0xff] %v3513_v59  ;;  %v3515_v60 = vpop.f32.mrb[23].mxu1 }
 0x198   : > { %3739 = vst [vmem:[#allocation5_spill] sm:$0xff] %v3515_v60 }
 0x19c   : > { %v1579_v61 = vpop.f32.mrb[24].mxu1 }
 0x19d   : > { %v1722_v62 = vpop.f32.mrb[24].mxu0  ;;  %v1581_v0 = vpop.f32.mrb[25].mxu1 }
 0x19e   : > { %v3517_v63 = vadd.f32 %v1722_v62, %v1579_v61  ;;  %v1724_v1 = vpop.f32.mrb[25].mxu0  ;;  %v1583_v3 = vpop.f32.mrb[26].mxu1 }
 0x19f   : > { %v3519_v2 = vadd.f32 %v1724_v1, %v1581_v0  ;;  %v1726_v4 = vpop.f32.mrb[26].mxu0  ;;  %v1585_v6 = vpop.f32.mrb[27].mxu1 }
 0x1a0   : > { %v3521_v5 = vadd.f32 %v1726_v4, %v1583_v3  ;;  %v1728_v7 = vpop.f32.mrb[27].mxu0 }
 0x1a1   : > { %v3523_v8 = vadd.f32 %v1728_v7, %v1585_v6 }
 0x1a4   : > { %v1589_v9 = vpop.f32.mrb[28].mxu1 }
 0x1a5   : > { %v1732_v10 = vpop.f32.mrb[28].mxu0  ;;  %v1591_v12 = vpop.f32.mrb[29].mxu1 }
 0x1a6   : > { %v3525_v11 = vadd.f32 %v1732_v10, %v1589_v9  ;;  %v1734_v13 = vpop.f32.mrb[29].mxu0  ;;  %v1593_v15 = vpop.f32.mrb[30].mxu1 }
 0x1a7   : > { %v3527_v14 = vadd.f32 %v1734_v13, %v1591_v12  ;;  %v1736_v16 = vpop.f32.mrb[30].mxu0  ;;  %v1595_v18 = vpop.f32.mrb[31].mxu1 }
 0x1a8   : > { %v3529_v17 = vadd.f32 %v1736_v16, %v1593_v15  ;;  %v1738_v19 = vpop.f32.mrb[31].mxu0 }
 0x1a9   : > { %v3531_v20 = vadd.f32 %v1738_v19, %v1595_v18 }
 0x1ac   : > { %v1599_v21 = vpop.f32.mrb[32].mxu1 }
 0x1ad   : > { %v1742_v22 = vpop.f32.mrb[32].mxu0  ;;  %v1601_v24 = vpop.f32.mrb[33].mxu1 }
 0x1ae   : > { %v3533_v23 = vadd.f32 %v1742_v22, %v1599_v21  ;;  %v1744_v25 = vpop.f32.mrb[33].mxu0  ;;  %v1603_v27 = vpop.f32.mrb[34].mxu1 }
 0x1af   : > { %v3535_v26 = vadd.f32 %v1744_v25, %v1601_v24  ;;  %v1746_v28 = vpop.f32.mrb[34].mxu0  ;;  %v1605_v30 = vpop.f32.mrb[35].mxu1 }
 0x1b0   : > { %v3537_v29 = vadd.f32 %v1746_v28, %v1603_v27  ;;  %v1748_v31 = vpop.f32.mrb[35].mxu0  ;;  %v469_v27 = vld [vmem:[#allocation2] sm:$0xff] }
 0x1b1   : > { %v3539_v32 = vadd.f32 %v1748_v31, %v1605_v30  ;;  %v493_v30 = vld [vmem:[#allocation2 + $0xc0] sm:$0xff] }
 0x1b4   : > { %v1609_v33 = vpop.f32.mrb[36].mxu1 }
 0x1b5   : > { %v1752_v34 = vpop.f32.mrb[36].mxu0  ;;  %v1611_v36 = vpop.f32.mrb[37].mxu1 }
 0x1b6   : > { %v3541_v35 = vadd.f32 %v1752_v34, %v1609_v33  ;;  %v1754_v61 = vpop.f32.mrb[37].mxu0  ;;  %v1613_v0 = vpop.f32.mrb[38].mxu1 }
 0x1b7   : > { %v3543_v62 = vadd.f32 %v1754_v61, %v1611_v36  ;;  %v1756_v1 = vpop.f32.mrb[38].mxu0  ;;  %v1615_v4 = vpop.f32.mrb[39].mxu1  ;;  %v470_v36 = vld [vmem:[#allocation2 + $0x8] sm:$0xff] }
 0x1b8   : > { %v3545_v3 = vadd.f32 %v1756_v1, %v1613_v0  ;;  %v1758_v6 = vpop.f32.mrb[39].mxu0  ;;  %v494_v0 = vld [vmem:[#allocation2 + $0xc8] sm:$0xff] }
 0x1b9   : > { %v3547_v7 = vadd.f32 %v1758_v6, %v1615_v4 }
 0x1bc   : > { %v1619_v9 = vpop.f32.mrb[40].mxu1 }
 0x1bd   : > { %v1762_v10 = vpop.f32.mrb[40].mxu0  ;;  %v1621_v13 = vpop.f32.mrb[41].mxu1 }
 0x1be   : > { %v3549_v12 = vadd.f32 %v1762_v10, %v1619_v9  ;;  %v1764_v15 = vpop.f32.mrb[41].mxu0  ;;  %v1623_v18 = vpop.f32.mrb[42].mxu1  ;;  %v471_v9 = vld [vmem:[#allocation2 + $0x10] sm:$0xff] }
 0x1bf   : > { %v3551_v16 = vadd.f32 %v1764_v15, %v1621_v13  ;;  %v1766_v19 = vpop.f32.mrb[42].mxu0  ;;  %v1625_v22 = vpop.f32.mrb[43].mxu1  ;;  %v495_v13 = vld [vmem:[#allocation2 + $0xd0] sm:$0xff] }
 0x1c0   : > { %v3553_v21 = vadd.f32 %v1766_v19, %v1623_v18  ;;  %v1768_v24 = vpop.f32.mrb[43].mxu0 }
 0x1c1   : > { %v3555_v25 = vadd.f32 %v1768_v24, %v1625_v22  ;;  %v472_v24 = vld [vmem:[#allocation2 + $0x18] sm:$0xff] }
 0x1c4   : > { %v1865_v31 = vpop.f32.mrb[44].mxu1 }
 0x1c5   : > { %v1805_v28 = vpop.f32.mrb[0].mxu0  ;;  %v1866_v34 = vadd.f32 %v1865_v31, %v3517_v63  ;;  %v1867_v1 = vpop.f32.mrb[45].mxu1 }
 0x1c6   : > { %v2681_v33 = vadd.f32 %v1805_v28, %v3469_v37  ;;  %v1807_v61 = vpop.f32.mrb[1].mxu0  ;;  %v1868_v6 = vadd.f32 %v1867_v1, %v3519_v2  ;;  %v1869_v15 = vpop.f32.mrb[46].mxu1  ;;  %v496_v28 = vld [vmem:[#allocation2 + $0xd8] sm:$0xff] }
 0x1c7   : > { %v2682_v4 = vadd.f32 %v1807_v61, %v3471_v38  ;;  %v1809_v10 = vpop.f32.mrb[2].mxu0  ;;  %v1938_v19 = vadd.f32 %v1866_v34, %v493_v30  ;;  %v1870_v37 = vadd.f32 %v1869_v15, %v3521_v5  ;;  %v1871_v31 = vpop.f32.mrb[47].mxu1  ;;  %v473_v5 = vld [vmem:[#allocation2 + $0x20] sm:$0xff] }
 0x1c8   : > { %v1914_v18 = vadd.f32 %v2681_v33, %v469_v27  ;;  %v2683_v22 = vadd.f32 %v1809_v10, %v3473_v39  ;;  %v1811_v63 = vpop.f32.mrb[3].mxu0  ;;  %v1939_v59 = vadd.f32 %v1868_v6, %v494_v0  ;;  %v1872_v2 = vadd.f32 %v1871_v31, %v3523_v8  ;;  %v497_v33 = vld [vmem:[#allocation2 + $0xe0] sm:$0xff] }
 0x1c9   : > { %v1915_v60 = vadd.f32 %v2682_v4, %v470_v36  ;;  %v2684_v38 = vadd.f32 %v1811_v63, %v3475_v40  ;;  %1982 = vst [vmem:[#allocation2 + $0xc0] sm:$0xff] %v1938_v19  ;;  %v1940_v1 = vadd.f32 %v1870_v37, %v495_v13  ;;  %v474_v36 = vld [vmem:[#allocation2 + $0x28] sm:$0xff]  ;;  %v499_v13 = vld [vmem:[#allocation2 + $0xf0] sm:$0xff]  ;;  %v476_v37 = vld [vmem:[#allocation2 + $0x38] sm:$0xff] }
 0x1ca   : > { %1958 = vst [vmem:[#allocation2] sm:$0xff] %v1914_v18  ;;  %v1916_v61 = vadd.f32 %v2683_v22, %v471_v9  ;;  %1983 = vst [vmem:[#allocation2 + $0xc8] sm:$0xff] %v1939_v59  ;;  %v1941_v39 = vadd.f32 %v1872_v2, %v496_v28  ;;  %v498_v4 = vld [vmem:[#allocation2 + $0xe8] sm:$0xff]  ;;  %v475_v9 = vld [vmem:[#allocation2 + $0x30] sm:$0xff] }
 0x1cb   : > { %1959 = vst [vmem:[#allocation2 + $0x8] sm:$0xff] %v1915_v60  ;;  %v1917_v27 = vadd.f32 %v2684_v38, %v472_v24  ;;  %1984 = vst [vmem:[#allocation2 + $0xd0] sm:$0xff] %v1940_v1  ;;  %v500_v24 = vld [vmem:[#allocation2 + $0xf8] sm:$0xff] }
 0x1cc   : > { %1960 = vst [vmem:[#allocation2 + $0x10] sm:$0xff] %v1916_v61  ;;  %1985 = vst [vmem:[#allocation2 + $0xd8] sm:$0xff] %v1941_v39  ;;  %v1875_v34 = vpop.f32.mrb[48].mxu1 }
 0x1cd   : > { %1961 = vst [vmem:[#allocation2 + $0x18] sm:$0xff] %v1917_v27  ;;  %v1815_v30 = vpop.f32.mrb[4].mxu0  ;;  %v1876_v8 = vadd.f32 %v1875_v34, %v3525_v11  ;;  %v1877_v6 = vpop.f32.mrb[49].mxu1  ;;  %v501_v27 = vld [vmem:[#allocation2 + $0x100] sm:$0xff] }
 0x1ce   : > { %v2685_v40 = vadd.f32 %v1815_v30, %v3477_v41  ;;  %v1817_v0 = vpop.f32.mrb[5].mxu0  ;;  %v1878_v60 = vadd.f32 %v1877_v6, %v3527_v14  ;;  %v1879_v15 = vpop.f32.mrb[50].mxu1 }
 0x1cf   : > { %v2686_v59 = vadd.f32 %v1817_v0, %v3479_v42  ;;  %v1819_v10 = vpop.f32.mrb[6].mxu0  ;;  %v1942_v19 = vadd.f32 %v1876_v8, %v497_v33  ;;  %v1880_v41 = vadd.f32 %v1879_v15, %v3529_v17  ;;  %v1881_v63 = vpop.f32.mrb[51].mxu1  ;;  %v477_v17 = vld [vmem:[#allocation2 + $0x40] sm:$0xff]  ;;  %v502_v33 = vld [vmem:[#allocation2 + $0x108] sm:$0xff] }
 0x1d0   : > { %v1918_v18 = vadd.f32 %v2685_v40, %v473_v5  ;;  %v2687_v22 = vadd.f32 %v1819_v10, %v3481_v43  ;;  %v1821_v11 = vpop.f32.mrb[7].mxu0  ;;  %v1943_v31 = vadd.f32 %v1878_v60, %v498_v4  ;;  %v1882_v14 = vadd.f32 %v1881_v63, %v3531_v20  ;;  %v478_v5 = vld [vmem:[#allocation2 + $0x48] sm:$0xff]  ;;  %v503_v4 = vld [vmem:[#allocation2 + $0x110] sm:$0xff]  ;;  %v480_v10 = vld [vmem:[#allocation2 + $0x58] sm:$0xff] }
 0x1d1   : > { %v1919_v28 = vadd.f32 %v2686_v59, %v474_v36  ;;  %v2688_v42 = vadd.f32 %v1821_v11, %v3483_v44  ;;  %1986 = vst [vmem:[#allocation2 + $0xe0] sm:$0xff] %v1942_v19  ;;  %v1944_v2 = vadd.f32 %v1880_v41, %v499_v13  ;;  %v479_v36 = vld [vmem:[#allocation2 + $0x50] sm:$0xff]  ;;  %v504_v13 = vld [vmem:[#allocation2 + $0x118] sm:$0xff] }
 0x1d2   : > { %1962 = vst [vmem:[#allocation2 + $0x20] sm:$0xff] %v1918_v18  ;;  %v1920_v38 = vadd.f32 %v2687_v22, %v475_v9  ;;  %1987 = vst [vmem:[#allocation2 + $0xe8] sm:$0xff] %v1943_v31  ;;  %v1945_v43 = vadd.f32 %v1882_v14, %v500_v24  ;;  %v505_v24 = vld [vmem:[#allocation2 + $0x120] sm:$0xff] }
 0x1d3   : > { %1963 = vst [vmem:[#allocation2 + $0x28] sm:$0xff] %v1919_v28  ;;  %v1921_v61 = vadd.f32 %v2688_v42, %v476_v37  ;;  %1988 = vst [vmem:[#allocation2 + $0xf0] sm:$0xff] %v1944_v2  ;;  %v482_v28 = vld [vmem:[#allocation2 + $0x68] sm:$0xff] }
 0x1d4   : > { %1964 = vst [vmem:[#allocation2 + $0x30] sm:$0xff] %v1920_v38  ;;  %1989 = vst [vmem:[#allocation2 + $0xf8] sm:$0xff] %v1945_v43  ;;  %v1885_v39 = vpop.f32.mrb[52].mxu1  ;;  %v506_v42 = vld [vmem:[#allocation2 + $0x128] sm:$0xff] }
 0x1d5   : > { %1965 = vst [vmem:[#allocation2 + $0x38] sm:$0xff] %v1921_v61  ;;  %v1825_v1 = vpop.f32.mrb[8].mxu0  ;;  %v1886_v20 = vadd.f32 %v1885_v39, %v3533_v23  ;;  %v1887_v34 = vpop.f32.mrb[53].mxu1  ;;  %v483_v61 = vld [vmem:[#allocation2 + $0x70] sm:$0xff] }
 0x1d6   : > { %v2689_v44 = vadd.f32 %v1825_v1, %v3485_v45  ;;  %v1827_v30 = vpop.f32.mrb[9].mxu0  ;;  %v1888_v8 = vadd.f32 %v1887_v34, %v3535_v26  ;;  %v1889_v6 = vpop.f32.mrb[54].mxu1 }
 0x1d7   : > { %v2690_v40 = vadd.f32 %v1827_v30, %v3487_v46  ;;  %v1829_v0 = vpop.f32.mrb[10].mxu0  ;;  %v1946_v60 = vadd.f32 %v1886_v20, %v501_v27  ;;  %v1890_v45 = vadd.f32 %v1889_v6, %v3537_v29  ;;  %v1891_v15 = vpop.f32.mrb[55].mxu1  ;;  %v481_v29 = vld [vmem:[#allocation2 + $0x60] sm:$0xff]  ;;  %v484_v20 = vld [vmem:[#allocation2 + $0x78] sm:$0xff] }
 0x1d8   : > { %v1922_v59 = vadd.f32 %v2689_v44, %v477_v17  ;;  %v2691_v9 = vadd.f32 %v1829_v0, %v3489_v47  ;;  %v1831_v23 = vpop.f32.mrb[11].mxu0  ;;  %v1947_v19 = vadd.f32 %v1888_v8, %v502_v33  ;;  %v1892_v26 = vadd.f32 %v1891_v15, %v3539_v32  ;;  %v507_v17 = vld [vmem:[#allocation2 + $0x130] sm:$0xff] }
 0x1d9   : > { %v1923_v18 = vadd.f32 %v2690_v40, %v478_v5  ;;  %v2692_v46 = vadd.f32 %v1831_v23, %v3491_v48  ;;  %1990 = vst [vmem:[#allocation2 + $0x100] sm:$0xff] %v1946_v60  ;;  %v1948_v41 = vadd.f32 %v1890_v45, %v503_v4  ;;  %v508_v5 = vld [vmem:[#allocation2 + $0x138] sm:$0xff]  ;;  %v509_v4 = vld [vmem:[#allocation2 + $0x140] sm:$0xff] }
 0x1da   : > { %1966 = vst [vmem:[#allocation2 + $0x40] sm:$0xff] %v1922_v59  ;;  %v1924_v22 = vadd.f32 %v2691_v9, %v479_v36  ;;  %1991 = vst [vmem:[#allocation2 + $0x108] sm:$0xff] %v1947_v19  ;;  %v1949_v47 = vadd.f32 %v1892_v26, %v504_v13  ;;  %v486_v59 = vld [vmem:[#allocation2 + $0x88] sm:$0xff]  ;;  %v487_v13 = vld [vmem:[#allocation2 + $0x90] sm:$0xff] }
 0x1db   : > { %1967 = vst [vmem:[#allocation2 + $0x48] sm:$0xff] %v1923_v18  ;;  %v1925_v37 = vadd.f32 %v2692_v46, %v480_v10  ;;  %1992 = vst [vmem:[#allocation2 + $0x110] sm:$0xff] %v1948_v41  ;;  %v510_v9 = vld [vmem:[#allocation2 + $0x148] sm:$0xff]  ;;  %v511_v18 = vld [vmem:[#allocation2 + $0x150] sm:$0xff] }
 0x1dc   : > { %1968 = vst [vmem:[#allocation2 + $0x50] sm:$0xff] %v1924_v22  ;;  %1993 = vst [vmem:[#allocation2 + $0x118] sm:$0xff] %v1949_v47  ;;  %v1895_v63 = vpop.f32.mrb[56].mxu1  ;;  %v488_v41 = vld [vmem:[#allocation2 + $0x98] sm:$0xff] }
 0x1dd   : > { %1969 = vst [vmem:[#allocation2 + $0x58] sm:$0xff] %v1925_v37  ;;  %v1835_v11 = vpop.f32.mrb[12].mxu0  ;;  %v1896_v32 = vadd.f32 %v1895_v63, %v3541_v35  ;;  %v1897_v14 = vpop.f32.mrb[57].mxu1  ;;  %v512_v37 = vld [vmem:[#allocation2 + $0x158] sm:$0xff] }
 0x1de   : > { %v2693_v48 = vadd.f32 %v1835_v11, %v3493_v49  ;;  %v1837_v31 = vpop.f32.mrb[13].mxu0  ;;  %v1898_v2 = vadd.f32 %v1897_v14, %v3543_v62  ;;  %v1899_v1 = vpop.f32.mrb[58].mxu1 }
 0x1df   : > { %v2694_v38 = vadd.f32 %v1837_v31, %v3495_v50  ;;  %v1839_v43 = vpop.f32.mrb[14].mxu0  ;;  %v1950_v39 = vadd.f32 %v1896_v32, %v505_v24  ;;  %v1900_v49 = vadd.f32 %v1899_v1, %v3545_v3  ;;  %v1901_v30 = vpop.f32.mrb[59].mxu1  ;;  %v485_v3 = vld [vmem:[#allocation2 + $0x80] sm:$0xff]  ;;  %v490_v31 = vld [vmem:[#allocation2 + $0xa8] sm:$0xff] }
 0x1e0   : > { %v1926_v27 = vadd.f32 %v2693_v48, %v481_v29  ;;  %v2695_v44 = vadd.f32 %v1839_v43, %v3497_v51  ;;  %v1841_v35 = vpop.f32.mrb[15].mxu0  ;;  %v1951_v34 = vadd.f32 %v1898_v2, %v506_v42  ;;  %v1902_v62 = vadd.f32 %v1901_v30, %v3547_v7  ;;  %v491_v42 = vld [vmem:[#allocation2 + $0xb0] sm:$0xff]  ;;  %v3740_v2 = vld [vmem:[#allocation4_spill] sm:$0xff]  ;;  %v492_v43 = vld [vmem:[#allocation2 + $0xb8] sm:$0xff] }
 0x1e1   : > { %v1927_v33 = vadd.f32 %v2694_v38, %v482_v28  ;;  %v2696_v50 = vadd.f32 %v1841_v35, %v3499_v52  ;;  %1994 = vst [vmem:[#allocation2 + $0x120] sm:$0xff] %v1950_v39  ;;  %v1952_v8 = vadd.f32 %v1900_v49, %v507_v17  ;;  %v2006_v35 = vld [vmem:[#allocation2] sm:$0xff] (!%p2598_p11) }
 0x1e2   : > { %1970 = vst [vmem:[#allocation2 + $0x60] sm:$0xff] %v1926_v27  ;;  %v1928_v40 = vadd.f32 %v2695_v44, %v483_v61  ;;  %1995 = vst [vmem:[#allocation2 + $0x128] sm:$0xff] %v1951_v34  ;;  %v1953_v51 = vadd.f32 %v1902_v62, %v508_v5  ;;  %v3741_v27 = vld [vmem:[#allocation5_spill] sm:$0xff]  ;;  %v2008_v34 = vld [vmem:[#allocation2 + $0x10] sm:$0xff] (!%p2598_p11) }
 0x1e3   : > { %1971 = vst [vmem:[#allocation2 + $0x68] sm:$0xff] %v1927_v33  ;;  %v1929_v36 = vadd.f32 %v2696_v50, %v484_v20  ;;  %1996 = vst [vmem:[#allocation2 + $0x130] sm:$0xff] %v1952_v8  ;;  %v2050_v20 = vld [vmem:[%s3736_s2] sm:$0x3] (!%p2598_p11)  ;;  %v2007_v5 = vld [vmem:[#allocation2 + $0x8] sm:$0xff] (!%p2598_p11) }
 0x1e4   : > { %1972 = vst [vmem:[#allocation2 + $0x70] sm:$0xff] %v1928_v40  ;;  %1997 = vst [vmem:[#allocation2 + $0x138] sm:$0xff] %v1953_v51  ;;  %v1905_v6 = vpop.f32.mrb[60].mxu1  ;;  %v2009_v50 = vld [vmem:[#allocation2 + $0x18] sm:$0xff] (!%p2598_p11)  ;;  %v2010_v62 = vld [vmem:[#allocation2 + $0x20] sm:$0xff] (!%p2598_p11) }
 0x1e5   : > { %1973 = vst [vmem:[#allocation2 + $0x78] sm:$0xff] %v1929_v36  ;;  %v1845_v0 = vpop.f32.mrb[16].mxu0  ;;  %v1906_v7 = vadd.f32 %v1905_v6, %v3549_v12  ;;  %v1907_v45 = vpop.f32.mrb[61].mxu1  ;;  %v2011_v36 = vld [vmem:[#allocation2 + $0x28] sm:$0xff] (!%p2598_p11)  ;;  %v2012_v51 = vld [vmem:[#allocation2 + $0x30] sm:$0xff] (!%p2598_p11) }
 0x1e6   : > { %v2697_v52 = vadd.f32 %v1845_v0, %v3501_v53  ;;  %v1847_v60 = vpop.f32.mrb[17].mxu0  ;;  %v1908_v23 = vadd.f32 %v1907_v45, %v3551_v16  ;;  %v1909_v19 = vpop.f32.mrb[62].mxu1  ;;  %v2014_v45 = vld [vmem:[#allocation2 + $0x40] sm:$0xff] (!%p2598_p11) }
 0x1e7   : > { %v2698_v10 = vadd.f32 %v1847_v60, %v3503_v54  ;;  %v1849_v15 = vpop.f32.mrb[18].mxu0  ;;  %v1954_v26 = vadd.f32 %v1906_v7, %v509_v4  ;;  %v1910_v53 = vadd.f32 %v1909_v19, %v3553_v21  ;;  %v1911_v47 = vpop.f32.mrb[63].mxu1  ;;  %v489_v21 = vld [vmem:[#allocation2 + $0xa0] sm:$0xff]  ;;  %v2016_v19 = vld [vmem:[#allocation2 + $0x50] sm:$0xff] (!%p2598_p11) }
 0x1e8   : > { %v1930_v46 = vadd.f32 %v2697_v52, %v485_v3  ;;  %v2699_v22 = vadd.f32 %v1849_v15, %v3505_v55  ;;  %v1851_v12 = vpop.f32.mrb[19].mxu0  ;;  %v1955_v11 = vadd.f32 %v1908_v23, %v510_v9  ;;  %v1912_v16 = vadd.f32 %v1911_v47, %v3555_v25  ;;  %v2013_v3 = vld [vmem:[#allocation2 + $0x38] sm:$0xff] (!%p2598_p11) }
 0x1e9   : > { %v1931_v29 = vadd.f32 %v2698_v10, %v486_v59  ;;  %v2700_v54 = vadd.f32 %v1851_v12, %v3507_v56  ;;  %1998 = vst [vmem:[#allocation2 + $0x140] sm:$0xff] %v1954_v26  ;;  %v1956_v63 = vadd.f32 %v1910_v53, %v511_v18  ;;  %v2015_v10 = vld [vmem:[#allocation2 + $0x48] sm:$0xff] (!%p2598_p11)  ;;  %v2018_v12 = vld [vmem:[#allocation2 + $0x60] sm:$0xff] (!%p2598_p11) }
 0x1ea   : > { %1974 = vst [vmem:[#allocation2 + $0x80] sm:$0xff] %v1930_v46  ;;  %v1932_v24 = vadd.f32 %v2699_v22, %v487_v13  ;;  %1999 = vst [vmem:[#allocation2 + $0x148] sm:$0xff] %v1955_v11  ;;  %v1957_v55 = vadd.f32 %v1912_v16, %v512_v37  ;;  %v2017_v46 = vld [vmem:[#allocation2 + $0x58] sm:$0xff] (!%p2598_p11)  ;;  %v2019_v37 = vld [vmem:[#allocation2 + $0x68] sm:$0xff] (!%p2598_p11) }
 0x1eb   : > { %1975 = vst [vmem:[#allocation2 + $0x88] sm:$0xff] %v1931_v29  ;;  %v1933_v48 = vadd.f32 %v2700_v54, %v488_v41  ;;  %2000 = vst [vmem:[#allocation2 + $0x150] sm:$0xff] %v1956_v63  ;;  %v2020_v16 = vld [vmem:[#allocation2 + $0x70] sm:$0xff] (!%p2598_p11) }
 0x1ec   : > { %1976 = vst [vmem:[#allocation2 + $0x90] sm:$0xff] %v1932_v24  ;;  %2001 = vst [vmem:[#allocation2 + $0x158] sm:$0xff] %v1957_v55  ;;  %v2021_v24 = vld [vmem:[#allocation2 + $0x78] sm:$0xff] (!%p2598_p11) }
 0x1ed   : > { %1977 = vst [vmem:[#allocation2 + $0x98] sm:$0xff] %v1933_v48  ;;  %v1855_v32 = vpop.f32.mrb[20].mxu0 }
 0x1ee   : > { %v2701_v28 = vadd.f32 %v1855_v32, %v3509_v57  ;;  %v1857_v56 = vpop.f32.mrb[21].mxu0  ;;  %v2052_v57 = vlaneseq (!%p2598_p11) }
 0x1ef   : > { %v2702_v25 = vadd.f32 %v1857_v56, %v3511_v58  ;;  %v1859_v14 = vpop.f32.mrb[22].mxu0  ;;  %2005 = sbr.rel (%p2598_p11) target bundleno = 534 (0x216), region = 63 }
 0x1f0   : > { %v1934_v38 = vadd.f32 %v2701_v28, %v489_v21  ;;  %v2703_v61 = vadd.f32 %v1859_v14, %v3740_v2  ;;  %v1861_v17 = vpop.f32.mrb[23].mxu0  ;;  %v2053_v58 = vshrl.u32 (!%p2598_p11), %v2052_v57, 7 }
 0x1f1   : > { %v1935_v1 = vadd.f32 %v2702_v25, %v490_v31  ;;  %v2704_v39 = vadd.f32 %v1861_v17, %v3741_v27  ;;  %v2022_v32 = vld [vmem:[#allocation2 + $0x80] sm:$0xff] (!%p2598_p11) }
 0x1f2   : > { %1978 = vst [vmem:[#allocation2 + $0xa0] sm:$0xff] %v1934_v38  ;;  %v1936_v44 = vadd.f32 %v2703_v61, %v491_v42  ;;  %v2054_v30 = vsub.s32 (!%p2598_p11), 0, %v2053_v58  ;;  %v2058_v33 = vsub.s32 (!%p2598_p11), 1, %v2053_v58  ;;  %v2023_v42 = vld [vmem:[#allocation2 + $0x88] sm:$0xff] (!%p2598_p11) }
 0x1f3   : > { %1979 = vst [vmem:[#allocation2 + $0xa8] sm:$0xff] %v1935_v1  ;;  %v1937_v49 = vadd.f32 %v2704_v39, %v492_v43  ;;  %v2024_v43 = vld [vmem:[#allocation2 + $0x90] sm:$0xff] (!%p2598_p11) }
 0x1f4   : > { %1980 = vst [vmem:[#allocation2 + $0xb0] sm:$0xff] %v1936_v44  ;;  %v3605_v40 = vrot.slane (!%p2598_p11), %v2050_v20, %v2054_v30  ;;  %v3607_v8 = vrot.slane (!%p2598_p11), %v2050_v20, %v2058_v33  ;;  %v2025_v17 = vld [vmem:[#allocation2 + $0x98] sm:$0xff] (!%p2598_p11) }
 0x1f5   : > { %1981 = vst [vmem:[#allocation2 + $0xb8] sm:$0xff] %v1937_v49 }
 0x1f6   : > { %v2062_v0 = vadd.f32 %v3605_v40, %v2006_v35  ;;  %v2063_v4 = vadd.f32 %v3607_v8, %v2007_v5  ;;  %v2064_v6 = vadd.f32 %v3605_v40, %v2008_v34  ;;  %v2065_v52 = vadd.f32 %v3607_v8, %v2009_v50 }
 0x1f7   : > { %v2066_v7 = vadd.f32 %v3605_v40, %v2010_v62  ;;  %v2067_v59 = vadd.f32 %v3607_v8, %v2011_v36  ;;  %v2068_v60 = vadd.f32 %v3605_v40, %v2012_v51  ;;  %v2069_v9 = vadd.f32 %v3607_v8, %v2013_v3  ;;  %v2030_v51 = vld [vmem:[#allocation2 + $0xc0] sm:$0xff] }
 0x1f8   : > { %v2106_v23 = vmax.f32 %v2062_v0, 0.0  ;;  %v2107_v13 = vmax.f32 %v2063_v4, 0.0  ;;  %v2108_v15 = vmax.f32 %v2064_v6, 0.0  ;;  %v2109_v18 = vmax.f32 %v2065_v52, 0.0  ;;  %v2031_v52 = vld [vmem:[#allocation2 + $0xc8] sm:$0xff] }
 0x1f9   : > { %v2110_v26 = vmax.f32 %v2066_v7, 0.0  ;;  %v2111_v22 = vmax.f32 %v2067_v59, 0.0  ;;  %v2112_v53 = vmax.f32 %v2068_v60, 0.0  ;;  %v2113_v41 = vmax.f32 %v2069_v9, 0.0  ;;  %v2026_v49 = vld [vmem:[#allocation2 + $0xa0] sm:$0xff] }
 0x1fa   : > { %v2627_v47 = vpack.c.bf16 %v2107_v13, %v2106_v23  ;;  %v2628_v29 = vpack.c.bf16 %v2109_v18, %v2108_v15  ;;  %v2070_v11 = vadd.f32 %v3605_v40, %v2014_v45  ;;  %v2071_v54 = vadd.f32 %v3607_v8, %v2015_v10  ;;  %v2027_v57 = vld [vmem:[#allocation2 + $0xa8] sm:$0xff]  ;;  %v2032_v45 = vld [vmem:[#allocation2 + $0xd0] sm:$0xff]  ;;  %v2033_v10 = vld [vmem:[#allocation2 + $0xd8] sm:$0xff] }
 0x1fb   : > { %v2629_v63 = vpack.c.bf16 %v2111_v22, %v2110_v26  ;;  %v2630_v48 = vpack.c.bf16 %v2113_v41, %v2112_v53  ;;  %v2072_v55 = vadd.f32 %v3605_v40, %v2016_v19  ;;  %v2073_v21 = vadd.f32 %v3607_v8, %v2017_v46  ;;  %v2028_v30 = vld [vmem:[#allocation2 + $0xb0] sm:$0xff]  ;;  %v2034_v19 = vld [vmem:[#allocation2 + $0xe0] sm:$0xff]  ;;  %v2035_v46 = vld [vmem:[#allocation2 + $0xe8] sm:$0xff] }
 0x1fc   : > { %2282 = vst [vmem:[%s3737_s3] sm:$0xff] %v2627_v47  ;;  %2283 = vst [vmem:[%s3737_s3 + $0x8] sm:$0xff] %v2628_v29  ;;  %v2114_v28 = vmax.f32 %v2070_v11, 0.0  ;;  %v2115_v31 = vmax.f32 %v2071_v54, 0.0  ;;  %v2074_v56 = vadd.f32 %v3605_v40, %v2018_v12  ;;  %v2075_v25 = vadd.f32 %v3607_v8, %v2019_v37  ;;  %v2029_v33 = vld [vmem:[#allocation2 + $0xb8] sm:$0xff]  ;;  %v2036_v12 = vld [vmem:[#allocation2 + $0xf0] sm:$0xff] }
 0x1fd   : > { %2284 = vst [vmem:[%s3737_s3 + $0x10] sm:$0xff] %v2629_v63  ;;  %2285 = vst [vmem:[%s3737_s3 + $0x18] sm:$0xff] %v2630_v48  ;;  %v2116_v14 = vmax.f32 %v2072_v55, 0.0  ;;  %v2117_v38 = vmax.f32 %v2073_v21, 0.0  ;;  %v2076_v2 = vadd.f32 %v3605_v40, %v2020_v16  ;;  %v2077_v61 = vadd.f32 %v3607_v8, %v2021_v24  ;;  %v2037_v37 = vld [vmem:[#allocation2 + $0xf8] sm:$0xff]  ;;  %v2038_v16 = vld [vmem:[#allocation2 + $0x100] sm:$0xff] }
 0x1fe   : > { %v2631_v1 = vpack.c.bf16 %v2115_v31, %v2114_v28  ;;  %v2118_v27 = vmax.f32 %v2074_v56, 0.0  ;;  %v2119_v39 = vmax.f32 %v2075_v25, 0.0  ;;  %v2078_v44 = vadd.f32 %v3605_v40, %v2022_v32  ;;  %v2039_v21 = vld [vmem:[#allocation2 + $0x108] sm:$0xff]  ;;  %v2040_v25 = vld [vmem:[#allocation2 + $0x110] sm:$0xff] }
 0x1ff   : > { %v2632_v58 = vpack.c.bf16 %v2117_v38, %v2116_v14  ;;  %v2120_v20 = vmax.f32 %v2076_v2, 0.0  ;;  %v2121_v35 = vmax.f32 %v2077_v61, 0.0  ;;  %v2079_v5 = vadd.f32 %v3607_v8, %v2023_v42  ;;  %v2041_v42 = vld [vmem:[#allocation2 + $0x118] sm:$0xff] }
 0x200   : > { %2286 = vst [vmem:[%s3737_s3 + $0x20] sm:$0xff] %v2631_v1  ;;  %v2633_v34 = vpack.c.bf16 %v2119_v39, %v2118_v27  ;;  %v2122_v50 = vmax.f32 %v2078_v44, 0.0  ;;  %v2080_v62 = vadd.f32 %v3605_v40, %v2024_v43  ;;  %v2081_v36 = vadd.f32 %v3607_v8, %v2025_v17  ;;  %v2042_v43 = vld [vmem:[#allocation2 + $0x120] sm:$0xff]  ;;  %v2043_v17 = vld [vmem:[#allocation2 + $0x128] sm:$0xff] }
 0x201   : > { %2287 = vst [vmem:[%s3737_s3 + $0x28] sm:$0xff] %v2632_v58  ;;  %v2634_v3 = vpack.c.bf16 %v2121_v35, %v2120_v20  ;;  %v2123_v0 = vmax.f32 %v2079_v5, 0.0  ;;  %v2082_v4 = vadd.f32 %v3605_v40, %v2026_v49  ;;  %v2083_v6 = vadd.f32 %v3607_v8, %v2027_v57  ;;  %v2044_v49 = vld [vmem:[#allocation2 + $0x130] sm:$0xff]  ;;  %v2045_v57 = vld [vmem:[#allocation2 + $0x138] sm:$0xff] }
 0x202   : > { %2288 = vst [vmem:[%s3737_s3 + $0x30] sm:$0xff] %v2633_v34  ;;  %v2124_v7 = vmax.f32 %v2080_v62, 0.0  ;;  %v2125_v59 = vmax.f32 %v2081_v36, 0.0  ;;  %v2084_v60 = vadd.f32 %v3605_v40, %v2028_v30  ;;  %v2085_v9 = vadd.f32 %v3607_v8, %v2029_v33  ;;  %v2046_v30 = vld [vmem:[#allocation2 + $0x140] sm:$0xff]  ;;  %v2047_v36 = vld [vmem:[#allocation2 + $0x148] sm:$0xff] }
 0x203   : > { %2289 = vst [vmem:[%s3737_s3 + $0x38] sm:$0xff] %v2634_v3  ;;  %v2635_v23 = vpack.c.bf16 %v2123_v0, %v2122_v50  ;;  %v2126_v13 = vmax.f32 %v2082_v4, 0.0  ;;  %v2127_v15 = vmax.f32 %v2083_v6, 0.0  ;;  %v2086_v18 = vadd.f32 %v3605_v40, %v2030_v51  ;;  %v2048_v6 = vld [vmem:[#allocation2 + $0x150] sm:$0xff] }
 0x204   : > { %v2636_v26 = vpack.c.bf16 %v2125_v59, %v2124_v7  ;;  %v2128_v22 = vmax.f32 %v2084_v60, 0.0  ;;  %v2129_v53 = vmax.f32 %v2085_v9, 0.0  ;;  %v2087_v41 = vadd.f32 %v3607_v8, %v2031_v52  ;;  %v2049_v52 = vld [vmem:[#allocation2 + $0x158] sm:$0xff] }
 0x205   : > { %2290 = vst [vmem:[%s3737_s3 + $0x40] sm:$0xff] %v2635_v23  ;;  %v2637_v47 = vpack.c.bf16 %v2127_v15, %v2126_v13  ;;  %v2130_v29 = vmax.f32 %v2086_v18, 0.0  ;;  %v2088_v11 = vadd.f32 %v3605_v40, %v2032_v45  ;;  %v2089_v54 = vadd.f32 %v3607_v8, %v2033_v10 }
 0x206   : > { %2291 = vst [vmem:[%s3737_s3 + $0x48] sm:$0xff] %v2636_v26  ;;  %v2638_v24 = vpack.c.bf16 %v2129_v53, %v2128_v22  ;;  %v2131_v63 = vmax.f32 %v2087_v41, 0.0  ;;  %v2090_v48 = vadd.f32 %v3605_v40, %v2034_v19  ;;  %v2091_v55 = vadd.f32 %v3607_v8, %v2035_v46 }
 0x207   : > { %2292 = vst [vmem:[%s3737_s3 + $0x50] sm:$0xff] %v2637_v47  ;;  %v2132_v32 = vmax.f32 %v2088_v11, 0.0  ;;  %v2133_v28 = vmax.f32 %v2089_v54, 0.0  ;;  %v2092_v31 = vadd.f32 %v3605_v40, %v2036_v12  ;;  %v2093_v56 = vadd.f32 %v3607_v8, %v2037_v37 }
 0x208   : > { %2293 = vst [vmem:[%s3737_s3 + $0x58] sm:$0xff] %v2638_v24  ;;  %v2639_v14 = vpack.c.bf16 %v2131_v63, %v2130_v29  ;;  %v2134_v38 = vmax.f32 %v2090_v48, 0.0  ;;  %v2135_v2 = vmax.f32 %v2091_v55, 0.0  ;;  %v2094_v61 = vadd.f32 %v3605_v40, %v2038_v16 }
 0x209   : > { %v2640_v1 = vpack.c.bf16 %v2133_v28, %v2132_v32  ;;  %v2136_v27 = vmax.f32 %v2092_v31, 0.0  ;;  %v2137_v39 = vmax.f32 %v2093_v56, 0.0  ;;  %v2095_v44 = vadd.f32 %v3607_v8, %v2039_v21 }
 0x20a   : > { %2294 = vst [vmem:[%s3737_s3 + $0x60] sm:$0xff] %v2639_v14  ;;  %v2641_v58 = vpack.c.bf16 %v2135_v2, %v2134_v38  ;;  %v2138_v20 = vmax.f32 %v2094_v61, 0.0  ;;  %v2096_v35 = vadd.f32 %v3605_v40, %v2040_v25  ;;  %v2097_v5 = vadd.f32 %v3607_v8, %v2041_v42 }
 0x20b   : > { %2295 = vst [vmem:[%s3737_s3 + $0x68] sm:$0xff] %v2640_v1  ;;  %v2642_v33 = vpack.c.bf16 %v2137_v39, %v2136_v27  ;;  %v2139_v34 = vmax.f32 %v2095_v44, 0.0  ;;  %v2098_v50 = vadd.f32 %v3605_v40, %v2042_v43  ;;  %v2099_v62 = vadd.f32 %v3607_v8, %v2043_v17 }
 0x20c   : > { %2296 = vst [vmem:[%s3737_s3 + $0x70] sm:$0xff] %v2641_v58  ;;  %v2140_v51 = vmax.f32 %v2096_v35, 0.0  ;;  %v2141_v3 = vmax.f32 %v2097_v5, 0.0  ;;  %v2100_v0 = vadd.f32 %v3605_v40, %v2044_v49  ;;  %v2101_v4 = vadd.f32 %v3607_v8, %v2045_v57 }
 0x20d   : > { %2297 = vst [vmem:[%s3737_s3 + $0x78] sm:$0xff] %v2642_v33  ;;  %v2643_v7 = vpack.c.bf16 %v2139_v34, %v2138_v20  ;;  %v2142_v59 = vmax.f32 %v2098_v50, 0.0  ;;  %v2143_v60 = vmax.f32 %v2099_v62, 0.0  ;;  %v2102_v9 = vadd.f32 %v3605_v40, %v2046_v30 }
 0x20e   : > { %v2644_v45 = vpack.c.bf16 %v2141_v3, %v2140_v51  ;;  %v2144_v10 = vmax.f32 %v2100_v0, 0.0  ;;  %v2145_v23 = vmax.f32 %v2101_v4, 0.0  ;;  %v2103_v13 = vadd.f32 %v3607_v8, %v2047_v36 }
 0x20f   : > { %2298 = vst [vmem:[%s3737_s3 + $0x80] sm:$0xff] %v2643_v7  ;;  %v2645_v15 = vpack.c.bf16 %v2143_v60, %v2142_v59  ;;  %v2146_v18 = vmax.f32 %v2102_v9, 0.0  ;;  %v2104_v19 = vadd.f32 %v3605_v40, %v2048_v6  ;;  %v2105_v46 = vadd.f32 %v3607_v8, %v2049_v52 }
 0x210   : > { %2299 = vst [vmem:[%s3737_s3 + $0x88] sm:$0xff] %v2644_v45  ;;  %v2646_v26 = vpack.c.bf16 %v2145_v23, %v2144_v10  ;;  %v2147_v22 = vmax.f32 %v2103_v13, 0.0 }
 0x211   : > { %2300 = vst [vmem:[%s3737_s3 + $0x90] sm:$0xff] %v2645_v15  ;;  %v2148_v53 = vmax.f32 %v2104_v19, 0.0  ;;  %v2149_v41 = vmax.f32 %v2105_v46, 0.0 }
 0x212   : > { %2301 = vst [vmem:[%s3737_s3 + $0x98] sm:$0xff] %v2646_v26  ;;  %v2647_v12 = vpack.c.bf16 %v2147_v22, %v2146_v18 }
 0x213   : > { %v2648_v40 = vpack.c.bf16 %v2149_v41, %v2148_v53 }
 0x214   : > { %2302 = vst [vmem:[%s3737_s3 + $0xa0] sm:$0xff] %v2647_v12 }
 0x215   : > { %2303 = vst [vmem:[%s3737_s3 + $0xa8] sm:$0xff] %v2648_v40 }
 0x216 PF: > { %s13_s16 = sadd.s32 1, %s3093_s16   ;;  %s3742_s12 = smov %s3081_s13 }
 0x217   : > { %p10_p12 = scmp.ge.s32.totalorder %s13_s16, 5   ;;  %s3743_s13 = smov %s3151_s20 }
 0x218   : > { %s3744_s14 = smov %s3089_s15  ;;  %s3745_s15 = smov %s3747_s17 }
 0x219   :  { %12 = sbr.rel (!%p10_p12) target bundleno = 3 (0x3), region = 104 }

// kernel: reduction_a_forward.9
= control target key start
LH: loop header
LB: loop body
LE: loop exit
PB: predicated region body
PF: predicated region fallthrough
CT: control target
= control target key end

     0   :  { %s1793_s12 = smov 0   ;;  %s1795_s13 = smov 0   ;;  %s1987_s0 = inlined_call_operand.vmem [shape: bf16[32,2304], index: 0, kind: input, shape index: {}]   ;;  %s1988_s1 = inlined_call_operand.vmem [shape: bf16[2304,256], index: 1, kind: input, shape index: {}]   ;;  %s1989_s2 = inlined_call_operand.vmem [shape: f32[1,256], index: 2, kind: input, shape index: {}]   ;;  %s1990_s3 = inlined_call_operand.vmem [shape: bf16[32,256], index: 3, kind: output, shape index: {}]  }
   0x1   :  { %s1797_s14 = smov 0   ;;  %s1799_s15 = smov 0  }
   0x2   :  { %s1801_s16 = smov 0  }
   0x3 LB: > { %s25_s17 = sadd.s32 1, %s1766_s15  ;;  %p48_p1 = scmp.ne.s32.totalorder %s1758_s13, %s1754_s12  ;;  %s1770_s16 = sphi %s1801_s16, %s13_s16   ;;  %s1766_s15 = sphi %s1799_s15, %s1994_s15   ;;  %s1762_s14 = sphi %s1797_s14, %s1993_s14   ;;  %s1758_s13 = sphi %s1795_s13, %s1992_s13   ;;  %s1754_s12 = sphi %s1793_s12, %s1991_s12  }
   0x4   : > { %p26_p0 = scmp.ge.s32.totalorder %s25_s17, 3  ;;  %p49_p2 = scmp.eq.s32.totalorder %s1770_s16, 0 }
   0x5   : > { %s41_s19 = sadd.s32 1, %s1758_s13  ;;  %p1350_p5 = scmp.ge.s32.totalorder %s1770_s16, 3 }
   0x6   : > { %s1996_s17 = smov (%p26_p0, %s25_s17), 0  ;;  %p50_p3 = por %p49_p2, %p48_p1 }
   0x7   : > { %s37_s18 = ssub.s32 %s1766_s15, %s1996_s17  ;;  %164 = sbr.rel (%p1350_p5) target bundleno = 25 (0x19), region = 20 }
   0x8   : > { %p39_p4 = scmp.eq.s32.totalorder %s37_s18, 0 }
   0xa   : > { %s1828_s20 = scalar_select %p39_p4, %s1758_s13, %s41_s19  }
   0xe   : > { %167 = sbr.rel (!%p50_p3) target bundleno = 25 (0x19), region = 24  ;;  %s169_s21 = sand.u32 (%p50_p3), 1, %s1758_s13  }
   0xf   : > { %s1473_s22 = smul.u32 (%p50_p3), 24, %s1766_s15 }
  0x10   : > { %s1527_s23 = smul.u32 (%p50_p3), 96, %s169_s21 }
  0x11   : > { %s177_s26 = scalar_lea.vmem (%p50_p3), %s1987_s0, %s1473_s22 }
  0x12   : > { %v190_v0 = vld [vmem:[%s177_s26] sm:$0xff] (%p50_p3)  ;;  %v192_v1 = vld [vmem:[%s177_s26 + $0x8] sm:$0xff] (%p50_p3)  ;;  %v194_v2 = vld [vmem:[%s177_s26 + $0x10] sm:$0xff] (%p50_p3)  ;;  %s171_s27 = scalar_lea.vmem (%p50_p3), [#allocation3], %s1527_s23 }
  0x13   : > { %191 = vst [vmem:[%s171_s27] sm:$0xff] (%p50_p3), %v190_v0  ;;  %193 = vst [vmem:[%s171_s27 + $0x8] sm:$0xff] (%p50_p3), %v192_v1  ;;  %v196_v3 = vld [vmem:[%s177_s26 + $0x48] sm:$0xff] (%p50_p3)  ;;  %v198_v4 = vld [vmem:[%s177_s26 + $0x50] sm:$0xff] (%p50_p3) }
  0x14   : > { %195 = vst [vmem:[%s171_s27 + $0x10] sm:$0xff] (%p50_p3), %v194_v2  ;;  %v200_v5 = vld [vmem:[%s177_s26 + $0x58] sm:$0xff] (%p50_p3)  ;;  %197 = vst [vmem:[%s171_s27 + $0x18] sm:$0xff] (%p50_p3), %v196_v3  ;;  %v202_v6 = vld [vmem:[%s177_s26 + $0x90] sm:$0xff] (%p50_p3) }
  0x15   : > { %199 = vst [vmem:[%s171_s27 + $0x20] sm:$0xff] %v198_v4  ;;  %201 = vst [vmem:[%s171_s27 + $0x28] sm:$0xff] %v200_v5  ;;  %v204_v7 = vld [vmem:[%s177_s26 + $0x98] sm:$0xff]  ;;  %v206_v8 = vld [vmem:[%s177_s26 + $0xa0] sm:$0xff] }
  0x16   : > { %203 = vst [vmem:[%s171_s27 + $0x30] sm:$0xff] %v202_v6  ;;  %205 = vst [vmem:[%s171_s27 + $0x38] sm:$0xff] %v204_v7  ;;  %v208_v9 = vld [vmem:[%s177_s26 + $0xd8] sm:$0xff]  ;;  %v210_v10 = vld [vmem:[%s177_s26 + $0xe0] sm:$0xff] }
  0x17   : > { %207 = vst [vmem:[%s171_s27 + $0x40] sm:$0xff] %v206_v8  ;;  %v212_v11 = vld [vmem:[%s177_s26 + $0xe8] sm:$0xff]  ;;  %209 = vst [vmem:[%s171_s27 + $0x48] sm:$0xff] %v208_v9 }
  0x18   : > { %211 = vst [vmem:[%s171_s27 + $0x50] sm:$0xff] %v210_v10  ;;  %213 = vst [vmem:[%s171_s27 + $0x58] sm:$0xff] %v212_v11 }
  0x19 PF: > { %p1352_p6 = scmp.ge.s32.totalorder %s1770_s16, 1  ;;  %p233_p7 = scmp.lt.s32.totalorder %s1770_s16, 4 }
  0x1b   : > { %p234_p8 = pnand %p1352_p6, %p233_p7 }
  0x1c   : > { %s240_s28 = sand.u32 (!%p234_p8), 1, %s1754_s12   ;;  %s284_s29 = smul.u32 (!%p234_p8), 96, %s1762_s14 }
  0x1d   : > { %237 = sbr.rel (%p234_p8) target bundleno = 407 (0x197), region = 51  ;;  %p1355_p10 = scmp.ne.s32.totalorder (!%p234_p8), %s1762_s14, 0 }
  0x1e   : > { %s1528_s30 = smul.u32 (!%p234_p8), 96, %s240_s28  ;;  %p286_p9 = scmp.lt.s32.totalorder (!%p234_p8), %s284_s29, 287 }
  0x20   : > { %s1845_s8 = scalar_lea.vmem (!%p234_p8), [#allocation3], %s1528_s30 }
  0x24   : > { %s1998_s29 = smov (!%p286_p9, %s284_s29), 287  ;;  %316 = sbr.rel (%p1355_p10) target bundleno = 43 (0x2b), region = 59 }
  0x25   : > { %s1474_s4 = sshll.u32 %s1998_s29, 3  ;;  %v1772_v12 = vmov (!%p1355_p10), 0.0  }
  0x26   : > { %s1843_s7 = scalar_lea.vmem %s1988_s1, %s1474_s4  ;;  %317 = vst [vmem:[#allocation2] sm:$0xff] (!%p1355_p10), %v1772_v12  ;;  %318 = vst [vmem:[#allocation2 + $0x8] sm:$0xff] (!%p1355_p10), %v1772_v12 }
  0x27   : > { %319 = vst [vmem:[#allocation2 + $0x10] sm:$0xff] (!%p1355_p10), %v1772_v12  ;;  %320 = vst [vmem:[#allocation2 + $0x18] sm:$0xff] (!%p1355_p10), %v1772_v12 }
  0x28   : > { %321 = vst [vmem:[#allocation2 + $0x20] sm:$0xff] (!%p1355_p10), %v1772_v12  ;;  %322 = vst [vmem:[#allocation2 + $0x28] sm:$0xff] (!%p1355_p10), %v1772_v12 }
  0x29   : > { %323 = vst [vmem:[#allocation2 + $0x30] sm:$0xff] (!%p1355_p10), %v1772_v12  ;;  %324 = vst [vmem:[#allocation2 + $0x38] sm:$0xff] (!%p1355_p10), %v1772_v12 }
  0x2b PF: > { %v1570_v13 = vld [vmem:[%s1843_s7 + $0x4] ss:$8 sps:$4 sm:$0xff]   ;;  %v1574_v15 = vld [vmem:[%s1843_s7] ss:$8 sps:$4 sm:$0xff]   ;;  %v1576_v17 = vld [vmem:[%s1843_s7 + $0x14] ss:$8 sps:$4 sm:$0xff]  }
  0x2c   : > { %v1572_v14 = vld [vmem:[%s1843_s7 + $0x104] ss:$8 sps:$4 sm:$0xff]   ;;  %981 = vmatprep.subr.bf16.mxu1 %v1570_v13  ;;  %v1575_v16 = vld [vmem:[%s1843_s7 + $0x100] ss:$8 sps:$4 sm:$0xff]   ;;  %v1578_v18 = vld [vmem:[%s1843_s7 + $0x114] ss:$8 sps:$4 sm:$0xff]  }
  0x2d   : > { %1034 = vmatprep.subr.bf16.mxu0 %v1572_v14  ;;  %982 = vmatpush1.bf16.msra.mxu1 %v1574_v15  ;;  %v1580_v19 = vld [vmem:[%s1843_s7 + $0x10] ss:$8 sps:$4 sm:$0xff]   ;;  %v1582_v21 = vld [vmem:[%s1843_s7 + $0x24] ss:$8 sps:$4 sm:$0xff]   ;;  %v1586_v23 = vld [vmem:[%s1843_s7 + $0x20] ss:$8 sps:$4 sm:$0xff]  }
  0x2e   : > { %1035 = vmatpush1.bf16.msra.mxu0 %v1575_v16  ;;  %983 = vmatprep.subr.bf16.mxu1 %v1576_v17  ;;  %v1581_v20 = vld [vmem:[%s1843_s7 + $0x110] ss:$8 sps:$4 sm:$0xff]   ;;  %v1584_v22 = vld [vmem:[%s1843_s7 + $0x124] ss:$8 sps:$4 sm:$0xff]   ;;  %v1587_v24 = vld [vmem:[%s1843_s7 + $0x120] ss:$8 sps:$4 sm:$0xff]  }
  0x2f   : > { %1036 = vmatprep.subr.bf16.mxu0 %v1578_v18  ;;  %v1588_v25 = vld [vmem:[%s1843_s7 + $0x34] ss:$8 sps:$4 sm:$0xff]   ;;  %v1592_v27 = vld [vmem:[%s1843_s7 + $0x30] ss:$8 sps:$4 sm:$0xff]   ;;  %v1594_v29 = vld [vmem:[%s1843_s7 + $0x44] ss:$8 sps:$4 sm:$0xff]  }
  0x30   : > { %v1590_v26 = vld [vmem:[%s1843_s7 + $0x134] ss:$8 sps:$4 sm:$0xff]   ;;  %v1593_v28 = vld [vmem:[%s1843_s7 + $0x130] ss:$8 sps:$4 sm:$0xff]   ;;  %v1596_v30 = vld [vmem:[%s1843_s7 + $0x144] ss:$8 sps:$4 sm:$0xff]  }
  0x31   : > { %984 = vmatpush1.bf16.msra.mxu1 %v1580_v19  ;;  %v1598_v31 = vld [vmem:[%s1843_s7 + $0x40] ss:$8 sps:$4 sm:$0xff]   ;;  %v1600_v33 = vld [vmem:[%s1843_s7 + $0x54] ss:$8 sps:$4 sm:$0xff]   ;;  %v1604_v35 = vld [vmem:[%s1843_s7 + $0x50] ss:$8 sps:$4 sm:$0xff]  }
  0x32   : > { %1037 = vmatpush1.bf16.msra.mxu0 %v1581_v20  ;;  %985 = vmatprep.subr.bf16.mxu1 %v1582_v21  ;;  %v1599_v32 = vld [vmem:[%s1843_s7 + $0x140] ss:$8 sps:$4 sm:$0xff]   ;;  %v1602_v34 = vld [vmem:[%s1843_s7 + $0x154] ss:$8 sps:$4 sm:$0xff]   ;;  %v1605_v36 = vld [vmem:[%s1843_s7 + $0x150] ss:$8 sps:$4 sm:$0xff]  }
  0x33   : > { %1038 = vmatprep.subr.bf16.mxu0 %v1584_v22  ;;  %v1606_v37 = vld [vmem:[%s1843_s7 + $0x64] ss:$8 sps:$4 sm:$0xff]   ;;  %v1610_v39 = vld [vmem:[%s1843_s7 + $0x60] ss:$8 sps:$4 sm:$0xff]   ;;  %v1612_v41 = vld [vmem:[%s1843_s7 + $0x74] ss:$8 sps:$4 sm:$0xff]  }
  0x34   : > { %v1608_v38 = vld [vmem:[%s1843_s7 + $0x164] ss:$8 sps:$4 sm:$0xff]   ;;  %v1611_v40 = vld [vmem:[%s1843_s7 + $0x160] ss:$8 sps:$4 sm:$0xff]   ;;  %v1614_v42 = vld [vmem:[%s1843_s7 + $0x174] ss:$8 sps:$4 sm:$0xff]  }
  0x35   : > { %986 = vmatpush1.bf16.msra.mxu1 %v1586_v23  ;;  %v1616_v43 = vld [vmem:[%s1843_s7 + $0x70] ss:$8 sps:$4 sm:$0xff]   ;;  %v1618_v45 = vld [vmem:[%s1843_s7 + $0x84] ss:$8 sps:$4 sm:$0xff]   ;;  %v1622_v47 = vld [vmem:[%s1843_s7 + $0x80] ss:$8 sps:$4 sm:$0xff]  }
  0x36   : > { %1039 = vmatpush1.bf16.msra.mxu0 %v1587_v24  ;;  %987 = vmatprep.subr.bf16.mxu1 %v1588_v25  ;;  %v1617_v44 = vld [vmem:[%s1843_s7 + $0x170] ss:$8 sps:$4 sm:$0xff]   ;;  %v1620_v46 = vld [vmem:[%s1843_s7 + $0x184] ss:$8 sps:$4 sm:$0xff]   ;;  %v1623_v48 = vld [vmem:[%s1843_s7 + $0x180] ss:$8 sps:$4 sm:$0xff]  }
  0x37   : > { %1040 = vmatprep.subr.bf16.mxu0 %v1590_v26  ;;  %v1624_v49 = vld [vmem:[%s1843_s7 + $0x94] ss:$8 sps:$4 sm:$0xff]   ;;  %v1628_v51 = vld [vmem:[%s1843_s7 + $0x90] ss:$8 sps:$4 sm:$0xff]   ;;  %v1630_v53 = vld [vmem:[%s1843_s7 + $0xa4] ss:$8 sps:$4 sm:$0xff]  }
  0x38   : > { %v1626_v50 = vld [vmem:[%s1843_s7 + $0x194] ss:$8 sps:$4 sm:$0xff]   ;;  %v1629_v52 = vld [vmem:[%s1843_s7 + $0x190] ss:$8 sps:$4 sm:$0xff]   ;;  %v1632_v54 = vld [vmem:[%s1843_s7 + $0x1a4] ss:$8 sps:$4 sm:$0xff]  }
  0x39   : > { %988 = vmatpush1.bf16.msra.mxu1 %v1592_v27  ;;  %v1634_v55 = vld [vmem:[%s1843_s7 + $0xa0] ss:$8 sps:$4 sm:$0xff]   ;;  %v1636_v57 = vld [vmem:[%s1843_s7 + $0xb4] ss:$8 sps:$4 sm:$0xff]   ;;  %v1640_v59 = vld [vmem:[%s1843_s7 + $0xb0] ss:$8 sps:$4 sm:$0xff]  }
  0x3a   : > { %1041 = vmatpush1.bf16.msra.mxu0 %v1593_v28  ;;  %989 = vmatprep.subr.bf16.mxu1 %v1594_v29  ;;  %v1635_v56 = vld [vmem:[%s1843_s7 + $0x1a0] ss:$8 sps:$4 sm:$0xff]   ;;  %v1638_v58 = vld [vmem:[%s1843_s7 + $0x1b4] ss:$8 sps:$4 sm:$0xff]   ;;  %v1641_v60 = vld [vmem:[%s1843_s7 + $0x1b0] ss:$8 sps:$4 sm:$0xff]  }
  0x3b   : > { %1042 = vmatprep.subr.bf16.mxu0 %v1596_v30  ;;  %v1642_v61 = vld [vmem:[%s1843_s7 + $0xc4] ss:$8 sps:$4 sm:$0xff]   ;;  %v1671_v0 = vld [vmem:[%s1845_s8 + $0xc] ss:$24 sps:$4 sm:$0xff]   ;;  %v1646_v1 = vld [vmem:[%s1843_s7 + $0xc0] ss:$8 sps:$4 sm:$0xff]  }
  0x3c   : > { %v1668_v62 = vld [vmem:[%s1845_s8 + $0x4] ss:$24 sps:$4 sm:$0xff]   ;;  %v1647_v2 = vld [vmem:[%s1843_s7 + $0x1c0] ss:$8 sps:$4 sm:$0xff]   ;;  %1066 = vmatprep.mubr.bf16.mxu0 %v1671_v0  ;;  %v1652_v5 = vld [vmem:[%s1843_s7 + $0xd0] ss:$8 sps:$4 sm:$0xff]  }
  0x3d   : > { %990 = vmatpush1.bf16.msra.mxu1 %v1598_v31  ;;  %v1644_v63 = vld [vmem:[%s1843_s7 + $0x1c4] ss:$8 sps:$4 sm:$0xff]   ;;  %1013 = vmatprep.mubr.bf16.mxu1 %v1668_v62  ;;  %v1648_v3 = vld [vmem:[%s1843_s7 + $0xd4] ss:$8 sps:$4 sm:$0xff]   ;;  %v1653_v6 = vld [vmem:[%s1843_s7 + $0x1d0] ss:$8 sps:$4 sm:$0xff]  }
  0x3e   : > { %1043 = vmatpush1.bf16.msra.mxu0 %v1599_v32  ;;  %991 = vmatprep.subr.bf16.mxu1 %v1600_v33  ;;  %v1650_v4 = vld [vmem:[%s1843_s7 + $0x1d4] ss:$8 sps:$4 sm:$0xff]   ;;  %v1654_v7 = vld [vmem:[%s1843_s7 + $0xe4] ss:$8 sps:$4 sm:$0xff]   ;;  %v1658_v9 = vld [vmem:[%s1843_s7 + $0xe0] ss:$8 sps:$4 sm:$0xff]  }
  0x3f   : > { %1044 = vmatprep.subr.bf16.mxu0 %v1602_v34  ;;  %v1656_v8 = vld [vmem:[%s1843_s7 + $0x1e4] ss:$8 sps:$4 sm:$0xff]   ;;  %v1659_v10 = vld [vmem:[%s1843_s7 + $0x1e0] ss:$8 sps:$4 sm:$0xff]   ;;  %v1660_v11 = vld [vmem:[%s1843_s7 + $0xf4] ss:$8 sps:$4 sm:$0xff]  }
  0x40   : > { %v1662_v12 = vld [vmem:[%s1843_s7 + $0x1f4] ss:$8 sps:$4 sm:$0xff]   ;;  %v1664_v13 = vld [vmem:[%s1843_s7 + $0xf0] ss:$8 sps:$4 sm:$0xff]   ;;  %v1674_v15 = vld [vmem:[%s1843_s7 + $0x204] ss:$8 sps:$4 sm:$0xff]  }
  0x41   : > { %992 = vmatpush1.bf16.msra.mxu1 %v1604_v35  ;;  %v1665_v14 = vld [vmem:[%s1843_s7 + $0x1f0] ss:$8 sps:$4 sm:$0xff]   ;;  %v1672_v18 = vld [vmem:[%s1843_s7 + $0x200] ss:$8 sps:$4 sm:$0xff]   ;;  %v1677_v19 = vld [vmem:[%s1843_s7 + $0x214] ss:$8 sps:$4 sm:$0xff]  }
  0x42   : > { %1045 = vmatpush1.bf16.msra.mxu0 %v1605_v36  ;;  %993 = vmatprep.subr.bf16.mxu1 %v1606_v37  ;;  %v1666_v16 = vld [vmem:[%s1845_s8] ss:$24 sps:$4 sm:$0xff]   ;;  %v1711_v20 = vld [vmem:[%s1845_s8 + $0x34] ss:$24 sps:$4 sm:$0xff]   ;;  %v1718_v24 = vld [vmem:[%s1845_s8 + $0x30] ss:$24 sps:$4 sm:$0xff]  }
  0x43   : > { %1046 = vmatprep.subr.bf16.mxu0 %v1608_v38  ;;  %v1669_v17 = vld [vmem:[%s1845_s8 + $0x8] ss:$24 sps:$4 sm:$0xff]   ;;  %v1713_v21 = vld [vmem:[%s1845_s8 + $0x3c] ss:$24 sps:$4 sm:$0xff]   ;;  %v1719_v25 = vld [vmem:[%s1845_s8 + $0x38] ss:$24 sps:$4 sm:$0xff]  }
  0x44   : > { %v1675_v22 = vld [vmem:[%s1843_s7 + $0x210] ss:$8 sps:$4 sm:$0xff]   ;;  %v1680_v23 = vld [vmem:[%s1843_s7 + $0x224] ss:$8 sps:$4 sm:$0xff]   ;;  %v1678_v26 = vld [vmem:[%s1843_s7 + $0x220] ss:$8 sps:$4 sm:$0xff]  }
  0x45   : > { %994 = vmatpush1.bf16.msra.mxu1 %v1610_v39  ;;  %v1683_v27 = vld [vmem:[%s1843_s7 + $0x234] ss:$8 sps:$4 sm:$0xff]   ;;  %v1681_v30 = vld [vmem:[%s1843_s7 + $0x230] ss:$8 sps:$4 sm:$0xff]   ;;  %v1686_v31 = vld [vmem:[%s1843_s7 + $0x244] ss:$8 sps:$4 sm:$0xff]  }
  0x46   : > { %1047 = vmatpush1.bf16.msra.mxu0 %v1611_v40  ;;  %995 = vmatprep.subr.bf16.mxu1 %v1612_v41  ;;  %v1728_v28 = vld [vmem:[%s1845_s8 + $0x14] ss:$24 sps:$4 sm:$0xff]   ;;  %v1731_v29 = vld [vmem:[%s1845_s8 + $0x44] ss:$24 sps:$4 sm:$0xff]   ;;  %v1684_v32 = vld [vmem:[%s1843_s7 + $0x240] ss:$8 sps:$4 sm:$0xff]  }
  0x47   : > { %1048 = vmatprep.subr.bf16.mxu0 %v1614_v42  ;;  %v1689_v33 = vld [vmem:[%s1843_s7 + $0x254] ss:$8 sps:$4 sm:$0xff]   ;;  %v1687_v34 = vld [vmem:[%s1843_s7 + $0x250] ss:$8 sps:$4 sm:$0xff]   ;;  %v1692_v35 = vld [vmem:[%s1843_s7 + $0x264] ss:$8 sps:$4 sm:$0xff]  }
  0x48   : > { %v1690_v36 = vld [vmem:[%s1843_s7 + $0x260] ss:$8 sps:$4 sm:$0xff]   ;;  %v1695_v37 = vld [vmem:[%s1843_s7 + $0x274] ss:$8 sps:$4 sm:$0xff]   ;;  %v1693_v38 = vld [vmem:[%s1843_s7 + $0x270] ss:$8 sps:$4 sm:$0xff]  }
  0x49   : > { %996 = vmatpush1.bf16.msra.mxu1 %v1616_v43  ;;  %v1698_v39 = vld [vmem:[%s1843_s7 + $0x284] ss:$8 sps:$4 sm:$0xff]   ;;  %v1696_v40 = vld [vmem:[%s1843_s7 + $0x280] ss:$8 sps:$4 sm:$0xff]   ;;  %v1701_v41 = vld [vmem:[%s1843_s7 + $0x294] ss:$8 sps:$4 sm:$0xff]  }
  0x4a   : > { %1049 = vmatpush1.bf16.msra.mxu0 %v1617_v44  ;;  %997 = vmatprep.subr.bf16.mxu1 %v1618_v45  ;;  %v1699_v42 = vld [vmem:[%s1843_s7 + $0x290] ss:$8 sps:$4 sm:$0xff]   ;;  %v1704_v43 = vld [vmem:[%s1843_s7 + $0x2a4] ss:$8 sps:$4 sm:$0xff]   ;;  %v1702_v44 = vld [vmem:[%s1843_s7 + $0x2a0] ss:$8 sps:$4 sm:$0xff]  }
  0x4b   : > { %1050 = vmatprep.subr.bf16.mxu0 %v1620_v46  ;;  %v1707_v45 = vld [vmem:[%s1843_s7 + $0x2b4] ss:$8 sps:$4 sm:$0xff]   ;;  %v1705_v46 = vld [vmem:[%s1843_s7 + $0x2b0] ss:$8 sps:$4 sm:$0xff]   ;;  %p1464_p11 = scmp.ne.s32.totalorder %s1762_s14, 2 }
  0x4d   : > { %998 = vmatpush1.bf16.msra.mxu1 %v1622_v47  ;;  %v1710_v47 = vld [vmem:[%s1843_s7 + $0x2c4] ss:$8 sps:$4 sm:$0xff]  }
  0x4e   : > { %1051 = vmatpush1.bf16.msra.mxu0 %v1623_v48  ;;  %999 = vmatprep.subr.bf16.mxu1 %v1624_v49  ;;  %v1708_v48 = vld [vmem:[%s1843_s7 + $0x2c0] ss:$8 sps:$4 sm:$0xff]   ;;  %v1717_v49 = vld [vmem:[%s1843_s7 + $0x2d4] ss:$8 sps:$4 sm:$0xff]  }
  0x4f   : > { %1052 = vmatprep.subr.bf16.mxu0 %v1626_v50  ;;  %v1715_v50 = vld [vmem:[%s1843_s7 + $0x2d0] ss:$8 sps:$4 sm:$0xff]  }
  0x51   : > { %1000 = vmatpush1.bf16.msra.mxu1 %v1628_v51  ;;  %v1722_v51 = vld [vmem:[%s1843_s7 + $0x2e4] ss:$8 sps:$4 sm:$0xff]  }
  0x52   : > { %1053 = vmatpush1.bf16.msra.mxu0 %v1629_v52  ;;  %1001 = vmatprep.subr.bf16.mxu1 %v1630_v53  ;;  %v1720_v52 = vld [vmem:[%s1843_s7 + $0x2e0] ss:$8 sps:$4 sm:$0xff]   ;;  %v1725_v53 = vld [vmem:[%s1843_s7 + $0x2f4] ss:$8 sps:$4 sm:$0xff]  }
  0x53   : > { %1054 = vmatprep.subr.bf16.mxu0 %v1632_v54  ;;  %v1723_v54 = vld [vmem:[%s1843_s7 + $0x2f0] ss:$8 sps:$4 sm:$0xff]  }
  0x55   : > { %1002 = vmatpush1.bf16.msra.mxu1 %v1634_v55  ;;  %v1726_v55 = vld [vmem:[%s1845_s8 + $0x10] ss:$24 sps:$4 sm:$0xff]  }
  0x56   : > { %1055 = vmatpush1.bf16.msra.mxu0 %v1635_v56  ;;  %1003 = vmatprep.subr.bf16.mxu1 %v1636_v57  ;;  %v1729_v56 = vld [vmem:[%s1845_s8 + $0x40] ss:$24 sps:$4 sm:$0xff]  }
  0x57   : > { %1056 = vmatprep.subr.bf16.mxu0 %v1638_v58 }
  0x59   : > { %1004 = vmatpush1.bf16.msra.mxu1 %v1640_v59 }
  0x5a   : > { %1057 = vmatpush1.bf16.msra.mxu0 %v1641_v60  ;;  %1005 = vmatprep.subr.bf16.mxu1 %v1642_v61 }
  0x5b   : > { %1058 = vmatprep.subr.bf16.mxu0 %v1644_v63 }
  0x5d   : > { %1006 = vmatpush1.bf16.msra.mxu1 %v1646_v1 }
  0x5e   : > { %1059 = vmatpush1.bf16.msra.mxu0 %v1647_v2  ;;  %1007 = vmatprep.subr.bf16.mxu1 %v1648_v3 }
  0x5f   : > { %1060 = vmatprep.subr.bf16.mxu0 %v1650_v4 }
  0x61   : > { %1008 = vmatpush1.bf16.msra.mxu1 %v1652_v5 }
  0x62   : > { %1061 = vmatpush1.bf16.msra.mxu0 %v1653_v6  ;;  %1009 = vmatprep.subr.bf16.mxu1 %v1654_v7 }
  0x63   : > { %1062 = vmatprep.subr.bf16.mxu0 %v1656_v8 }
  0x65   : > { %1010 = vmatpush1.bf16.msra.mxu1 %v1658_v9  ;;  %v325_v9 = vld [vmem:[#allocation2] sm:$0xff] }
  0x66   : > { %1063 = vmatpush1.bf16.msra.mxu0 %v1659_v10  ;;  %1011 = vmatprep.subr.bf16.mxu1 %v1660_v11  ;;  %v329_v11 = vld [vmem:[#allocation2 + $0x20] sm:$0xff] }
  0x67   : > { %1064 = vmatprep.subr.bf16.mxu0 %v1662_v12 }
  0x69   : > { %1012 = vmatpush1.bf16.msra.mxu1 %v1664_v13 }
  0x6a   : > { %1065 = vmatpush1.bf16.msra.mxu0 %v1665_v14  ;;  %1479 = vmatprep.subr.bf16.mxu1 %v1674_v15 }
  0x6b   : > { %1087 = vmatprep.subr.bf16.mxu0 %v1674_v15  ;;  %v326_v15 = vld [vmem:[#allocation2 + $0x8] sm:$0xff] }
  0x6c   : > { %1014 = vmatmul.mubr.bf16.vlgmr.msra.gmra.mrb[0].mxu1 %v1666_v16 }
  0x6d   : > { %1067 = vmatmul.mubr.bf16.vlgmr.msra.gmra.mrb[0].mxu0 %v1669_v17  ;;  %1495 = vmatpush1.bf16.msra.mxu1 %v1672_v18  ;;  %v330_v17 = vld [vmem:[#allocation2 + $0x28] sm:$0xff] }
  0x6e   : > { %1088 = vmatpush1.bf16.msra.mxu0 %v1672_v18  ;;  %1480 = vmatprep.subr.bf16.mxu1 %v1677_v19 }
  0x6f   : > { %1089 = vmatprep.subr.bf16.mxu0 %v1677_v19  ;;  %1023 = vmatprep.mubr.bf16.mxu1 %v1711_v20 }
  0x70   : > { %1076 = vmatprep.mubr.bf16.mxu0 %v1713_v21  ;;  %v327_v21 = vld [vmem:[#allocation2 + $0x10] sm:$0xff] }
  0x71   : > { %1496 = vmatpush1.bf16.msra.mxu1 %v1675_v22 }
  0x72   : > { %1090 = vmatpush1.bf16.msra.mxu0 %v1675_v22  ;;  %1481 = vmatprep.subr.bf16.mxu1 %v1680_v23 }
  0x73   : > { %1091 = vmatprep.subr.bf16.mxu0 %v1680_v23  ;;  %v331_v23 = vld [vmem:[#allocation2 + $0x30] sm:$0xff] }
  0x74   : > { %1024 = vmatmul.mubr.bf16.gmra.mrb[4].mxu1 %v1718_v24 }
  0x75   : > { %1077 = vmatmul.mubr.bf16.gmra.mrb[4].mxu0 %v1719_v25  ;;  %1497 = vmatpush1.bf16.msra.mxu1 %v1678_v26 }
  0x76   : > { %1092 = vmatpush1.bf16.msra.mxu0 %v1678_v26  ;;  %1482 = vmatprep.subr.bf16.mxu1 %v1683_v27 }
  0x77   : > { %1093 = vmatprep.subr.bf16.mxu0 %v1683_v27  ;;  %1119 = vmatprep.mubr.bf16.mxu0 %v1728_v28 }
  0x78   : > { %1129 = vmatprep.mubr.bf16.mxu1 %v1731_v29  ;;  %v328_v29 = vld [vmem:[#allocation2 + $0x18] sm:$0xff] }
  0x79   : > { %1498 = vmatpush1.bf16.msra.mxu1 %v1681_v30 }
  0x7a   : > { %1094 = vmatpush1.bf16.msra.mxu0 %v1681_v30  ;;  %1483 = vmatprep.subr.bf16.mxu1 %v1686_v31 }
  0x7b   : > { %1095 = vmatprep.subr.bf16.mxu0 %v1686_v31  ;;  %v332_v31 = vld [vmem:[#allocation2 + $0x38] sm:$0xff] }
  0x7d   : > { %1499 = vmatpush1.bf16.msra.mxu1 %v1684_v32 }
  0x7e   : > { %1096 = vmatpush1.bf16.msra.mxu0 %v1684_v32  ;;  %1484 = vmatprep.subr.bf16.mxu1 %v1689_v33 }
  0x7f   : > { %1097 = vmatprep.subr.bf16.mxu0 %v1689_v33 }
  0x81   : > { %1500 = vmatpush1.bf16.msra.mxu1 %v1687_v34 }
  0x82   : > { %1098 = vmatpush1.bf16.msra.mxu0 %v1687_v34  ;;  %1485 = vmatprep.subr.bf16.mxu1 %v1692_v35 }
  0x83   : > { %1099 = vmatprep.subr.bf16.mxu0 %v1692_v35 }
  0x85   : > { %1501 = vmatpush1.bf16.msra.mxu1 %v1690_v36 }
  0x86   : > { %1100 = vmatpush1.bf16.msra.mxu0 %v1690_v36  ;;  %1486 = vmatprep.subr.bf16.mxu1 %v1695_v37 }
  0x87   : > { %1101 = vmatprep.subr.bf16.mxu0 %v1695_v37 }
  0x89   : > { %1502 = vmatpush1.bf16.msra.mxu1 %v1693_v38 }
  0x8a   : > { %1102 = vmatpush1.bf16.msra.mxu0 %v1693_v38  ;;  %1487 = vmatprep.subr.bf16.mxu1 %v1698_v39 }
  0x8b   : > { %1103 = vmatprep.subr.bf16.mxu0 %v1698_v39 }
  0x8d   : > { %1503 = vmatpush1.bf16.msra.mxu1 %v1696_v40 }
  0x8e   : > { %1104 = vmatpush1.bf16.msra.mxu0 %v1696_v40  ;;  %1488 = vmatprep.subr.bf16.mxu1 %v1701_v41 }
  0x8f   : > { %1105 = vmatprep.subr.bf16.mxu0 %v1701_v41  ;;  %v1170_v41 = vlaneseq (!%p1464_p11) }
  0x91   : > { %1504 = vmatpush1.bf16.msra.mxu1 %v1699_v42 }
  0x92   : > { %1106 = vmatpush1.bf16.msra.mxu0 %v1699_v42  ;;  %1489 = vmatprep.subr.bf16.mxu1 %v1704_v43  ;;  %v1171_v42 = vshrl.u32 (!%p1464_p11), %v1170_v41, 7 }
  0x93   : > { %1107 = vmatprep.subr.bf16.mxu0 %v1704_v43  ;;  %v1168_v43 = vld [vmem:[%s1989_s2] sm:$0x3] (!%p1464_p11) }
  0x95   : > { %1505 = vmatpush1.bf16.msra.mxu1 %v1702_v44 }
  0x96   : > { %1108 = vmatpush1.bf16.msra.mxu0 %v1702_v44  ;;  %1490 = vmatprep.subr.bf16.mxu1 %v1707_v45 }
  0x97   : > { %1109 = vmatprep.subr.bf16.mxu0 %v1707_v45 }
  0x99   : > { %1506 = vmatpush1.bf16.msra.mxu1 %v1705_v46 }
  0x9a   : > { %1110 = vmatpush1.bf16.msra.mxu0 %v1705_v46  ;;  %1491 = vmatprep.subr.bf16.mxu1 %v1710_v47  ;;  %v1172_v46 = vsub.s32 (!%p1464_p11), 0, %v1171_v42 }
  0x9b   : > { %1111 = vmatprep.subr.bf16.mxu0 %v1710_v47  ;;  %v1176_v47 = vsub.s32 (!%p1464_p11), 1, %v1171_v42 }
  0x9d   : > { %1507 = vmatpush1.bf16.msra.mxu1 %v1708_v48 }
  0x9e   : > { %1112 = vmatpush1.bf16.msra.mxu0 %v1708_v48  ;;  %1492 = vmatprep.subr.bf16.mxu1 %v1717_v49 }
  0x9f   : > { %1113 = vmatprep.subr.bf16.mxu0 %v1717_v49 }
  0xa1   : > { %1508 = vmatpush1.bf16.msra.mxu1 %v1715_v50 }
  0xa2   : > { %1114 = vmatpush1.bf16.msra.mxu0 %v1715_v50  ;;  %1493 = vmatprep.subr.bf16.mxu1 %v1722_v51 }
  0xa3   : > { %1115 = vmatprep.subr.bf16.mxu0 %v1722_v51  ;;  %v1173_v51 = vrot.slane (!%p1464_p11), %v1168_v43, %v1172_v46 }
  0xa5   : > { %1509 = vmatpush1.bf16.msra.mxu1 %v1720_v52 }
  0xa6   : > { %1116 = vmatpush1.bf16.msra.mxu0 %v1720_v52  ;;  %1494 = vmatprep.subr.bf16.mxu1 %v1725_v53  ;;  %v1177_v52 = vrot.slane (!%p1464_p11), %v1168_v43, %v1176_v47 }
  0xa7   : > { %1117 = vmatprep.subr.bf16.mxu0 %v1725_v53 }
  0xa9   : > { %1510 = vmatpush1.bf16.msra.mxu1 %v1723_v54 }
  0xaa   : > { %1118 = vmatpush1.bf16.msra.mxu0 %v1723_v54 }
  0xac   : > { %1130 = vmatmul.mubr.bf16.vlgmr.msra.gmra.mrb[8].mxu1 %v1729_v56 }
  0xad   : > { %1120 = vmatmul.mubr.bf16.vlgmr.msra.gmra.mrb[0].mxu0 %v1726_v55 }
 0x13f   : > { %v1015_v57 = vpop.f32.mrb[0].mxu1 }
 0x140   : > { %v1017_v58 = vpop.f32.mrb[1].mxu1 }
 0x141   : > { %v1019_v59 = vpop.f32.mrb[2].mxu1 }
 0x142   : > { %v1021_v60 = vpop.f32.mrb[3].mxu1 }
 0x147   : > { %v1025_v61 = vpop.f32.mrb[4].mxu1 }
 0x148   : > { %v1078_v62 = vpop.f32.mrb[4].mxu0  ;;  %v1027_v0 = vpop.f32.mrb[5].mxu1 }
 0x149   : > { %v1079_v63 = vadd.f32 %v1078_v62, %v1025_v61  ;;  %v1080_v1 = vpop.f32.mrb[5].mxu0  ;;  %v1029_v3 = vpop.f32.mrb[6].mxu1 }
 0x14a   : > { %v1081_v2 = vadd.f32 %v1080_v1, %v1027_v0  ;;  %v1082_v4 = vpop.f32.mrb[6].mxu0  ;;  %v1031_v6 = vpop.f32.mrb[7].mxu1 }
 0x14b   : > { %v1083_v5 = vadd.f32 %v1082_v4, %v1029_v3  ;;  %v1084_v7 = vpop.f32.mrb[7].mxu0 }
 0x14c   : > { %v1085_v8 = vadd.f32 %v1084_v7, %v1031_v6 }
 0x17f   : > { %v1131_v12 = vpop.f32.mrb[8].mxu1 }
 0x180   : > { %v1121_v10 = vpop.f32.mrb[0].mxu0  ;;  %v1132_v14 = vadd.f32 %v1131_v12, %v1079_v63  ;;  %v1133_v18 = vpop.f32.mrb[9].mxu1 }
 0x181   : > { %v1511_v13 = vadd.f32 %v1121_v10, %v1015_v57  ;;  %v1123_v16 = vpop.f32.mrb[1].mxu0  ;;  %v1134_v20 = vadd.f32 %v1133_v18, %v1081_v2  ;;  %v1135_v24 = vpop.f32.mrb[10].mxu1 }
 0x182   : > { %v1512_v19 = vadd.f32 %v1123_v16, %v1017_v58  ;;  %v1125_v22 = vpop.f32.mrb[2].mxu0  ;;  %v1144_v26 = vadd.f32 %v1132_v14, %v329_v11  ;;  %v1136_v28 = vadd.f32 %v1135_v24, %v1083_v5  ;;  %v1137_v32 = vpop.f32.mrb[11].mxu1  ;;  %1159 = sbr.rel (%p1464_p11) target bundleno = 407 (0x197), region = 63 }
 0x183   : > { %v1140_v25 = vadd.f32 %v1511_v13, %v325_v9  ;;  %v1513_v27 = vadd.f32 %v1125_v22, %v1019_v59  ;;  %v1127_v30 = vpop.f32.mrb[3].mxu0  ;;  %v1145_v34 = vadd.f32 %v1134_v20, %v330_v17  ;;  %v1138_v36 = vadd.f32 %v1137_v32, %v1085_v8 }
 0x184   : > { %v1141_v33 = vadd.f32 %v1512_v19, %v326_v15  ;;  %v1514_v35 = vadd.f32 %v1127_v30, %v1021_v60  ;;  %1152 = vst [vmem:[#allocation2 + $0x20] sm:$0xff] %v1144_v26  ;;  %v1146_v38 = vadd.f32 %v1136_v28, %v331_v23 }
 0x185   : > { %1148 = vst [vmem:[#allocation2] sm:$0xff] %v1140_v25  ;;  %v1142_v37 = vadd.f32 %v1513_v27, %v327_v21  ;;  %1153 = vst [vmem:[#allocation2 + $0x28] sm:$0xff] %v1145_v34  ;;  %v1147_v40 = vadd.f32 %v1138_v36, %v332_v31 }
 0x186   : > { %1149 = vst [vmem:[#allocation2 + $0x8] sm:$0xff] %v1141_v33  ;;  %v1143_v39 = vadd.f32 %v1514_v35, %v328_v29  ;;  %1154 = vst [vmem:[#allocation2 + $0x30] sm:$0xff] %v1146_v38 }
 0x187   : > { %1150 = vst [vmem:[#allocation2 + $0x10] sm:$0xff] %v1142_v37  ;;  %1155 = vst [vmem:[#allocation2 + $0x38] sm:$0xff] %v1147_v40 }
 0x188   : > { %1151 = vst [vmem:[#allocation2 + $0x18] sm:$0xff] %v1143_v39 }
 0x18b   : > { %v1164_v50 = vld [vmem:[#allocation2 + $0x20] sm:$0xff] }
 0x18c   : > { %v1160_v44 = vld [vmem:[#allocation2] sm:$0xff]  ;;  %v1165_v53 = vld [vmem:[#allocation2 + $0x28] sm:$0xff]  ;;  %v1184_v60 = vadd.f32 %v1173_v51, %v1164_v50 }
 0x18d   : > { %v1161_v45 = vld [vmem:[#allocation2 + $0x8] sm:$0xff]  ;;  %v1166_v54 = vld [vmem:[#allocation2 + $0x30] sm:$0xff]  ;;  %v1180_v56 = vadd.f32 %v1173_v51, %v1160_v44  ;;  %v1185_v61 = vadd.f32 %v1177_v52, %v1165_v53 }
 0x18e   : > { %v1162_v48 = vld [vmem:[#allocation2 + $0x10] sm:$0xff]  ;;  %v1167_v55 = vld [vmem:[#allocation2 + $0x38] sm:$0xff]  ;;  %v1181_v57 = vadd.f32 %v1177_v52, %v1161_v45  ;;  %v1186_v62 = vadd.f32 %v1173_v51, %v1166_v54  ;;  %v1192_v4 = vmax.f32 %v1184_v60, 0.0 }
 0x18f   : > { %v1163_v49 = vld [vmem:[#allocation2 + $0x18] sm:$0xff]  ;;  %v1182_v58 = vadd.f32 %v1173_v51, %v1162_v48  ;;  %v1187_v63 = vadd.f32 %v1177_v52, %v1167_v55  ;;  %v1188_v0 = vmax.f32 %v1180_v56, 0.0  ;;  %v1193_v5 = vmax.f32 %v1185_v61, 0.0 }
 0x190   : > { %v1183_v59 = vadd.f32 %v1177_v52, %v1163_v49  ;;  %v1189_v1 = vmax.f32 %v1181_v57, 0.0  ;;  %v1194_v6 = vmax.f32 %v1186_v62, 0.0 }
 0x191   : > { %v1190_v2 = vmax.f32 %v1182_v58, 0.0  ;;  %v1195_v7 = vmax.f32 %v1187_v63, 0.0  ;;  %v1477_v10 = vpack.c.bf16 %v1193_v5, %v1192_v4 }
 0x192   : > { %v1191_v3 = vmax.f32 %v1183_v59, 0.0  ;;  %v1475_v8 = vpack.c.bf16 %v1189_v1, %v1188_v0 }
 0x193   : > { %v1478_v11 = vpack.c.bf16 %v1195_v7, %v1194_v6  ;;  %1222 = vst [vmem:[%s1990_s3 + $0x10] sm:$0xff] %v1477_v10 }
 0x194   : > { %v1476_v9 = vpack.c.bf16 %v1191_v3, %v1190_v2  ;;  %1220 = vst [vmem:[%s1990_s3] sm:$0xff] %v1475_v8 }
 0x195   : > { %1223 = vst [vmem:[%s1990_s3 + $0x18] sm:$0xff] %v1478_v11 }
 0x196   : > { %1221 = vst [vmem:[%s1990_s3 + $0x8] sm:$0xff] %v1476_v9 }
 0x197 PF: > { %s13_s16 = sadd.s32 1, %s1770_s16   ;;  %s1991_s12 = smov %s1758_s13 }
 0x198   : > { %p10_p12 = scmp.ge.s32.totalorder %s13_s16, 5   ;;  %s1992_s13 = smov %s1828_s20 }
 0x199   : > { %s1993_s14 = smov %s1766_s15  ;;  %s1994_s15 = smov %s1996_s17 }
 0x19a   :  { %12 = sbr.rel (!%p10_p12) target bundleno = 3 (0x3), region = 104 }

// kernel: reduction_a_forward.6
= control target key start
LH: loop header
LB: loop body
LE: loop exit
PB: predicated region body
PF: predicated region fallthrough
CT: control target
= control target key end

     0   :  { %s1716_s12 = smov 0   ;;  %s1718_s13 = smov 0   ;;  %s1902_s0 = inlined_call_operand.vmem [shape: bf16[32,3456], index: 0, kind: input, shape index: {}]   ;;  %s1903_s1 = inlined_call_operand.vmem [shape: bf16[3456,384], index: 1, kind: input, shape index: {}]   ;;  %s1904_s2 = inlined_call_operand.vmem [shape: f32[1,384], index: 2, kind: input, shape index: {}]   ;;  %s1905_s3 = inlined_call_operand.vmem [shape: bf16[32,384], index: 3, kind: output, shape index: {}]  }
   0x1   :  { %s1720_s14 = smov 0   ;;  %s1722_s15 = smov 0  }
   0x2   :  { %s1724_s16 = smov 0  }
   0x3 LB: > { %s25_s17 = sadd.s32 1, %s1688_s15  ;;  %p48_p1 = scmp.ne.s32.totalorder %s1680_s13, %s1676_s12  ;;  %s1692_s16 = sphi %s1724_s16, %s13_s16   ;;  %s1688_s15 = sphi %s1722_s15, %s1909_s15   ;;  %s1684_s14 = sphi %s1720_s14, %s1908_s14   ;;  %s1680_s13 = sphi %s1718_s13, %s1907_s13   ;;  %s1676_s12 = sphi %s1716_s12, %s1906_s12  }
   0x4   : > { %p26_p0 = scmp.ge.s32.totalorder %s25_s17, 9  ;;  %p49_p2 = scmp.eq.s32.totalorder %s1692_s16, 0 }
   0x5   : > { %s41_s19 = sadd.s32 1, %s1680_s13  ;;  %p1326_p5 = scmp.ge.s32.totalorder %s1692_s16, 9 }
   0x6   : > { %s1911_s17 = smov (%p26_p0, %s25_s17), 0  ;;  %p50_p3 = por %p49_p2, %p48_p1 }
   0x7   : > { %s37_s18 = ssub.s32 %s1688_s15, %s1911_s17  ;;  %164 = sbr.rel (%p1326_p5) target bundleno = 23 (0x17), region = 20 }
   0x8   : > { %p39_p4 = scmp.eq.s32.totalorder %s37_s18, 0 }
   0xa   : > { %s1751_s20 = scalar_select %p39_p4, %s1680_s13, %s41_s19  }
   0xe   : > { %167 = sbr.rel (!%p50_p3) target bundleno = 23 (0x17), region = 24  ;;  %s169_s21 = sand.u32 (%p50_p3), 1, %s1680_s13  }
   0xf   : > { %s1430_s22 = smul.u32 (%p50_p3), 12, %s1688_s15 }
  0x10   : > { %s1505_s23 = smul.u32 (%p50_p3), 48, %s169_s21 }
  0x11   : > { %s177_s26 = scalar_lea.vmem (%p50_p3), %s1902_s0, %s1430_s22 }
  0x12   : > { %v192_v0 = vld [vmem:[%s177_s26] sm:$0xff] (%p50_p3)  ;;  %v194_v1 = vld [vmem:[%s177_s26 + $0x6c] sm:$0xff] (%p50_p3)  ;;  %v196_v2 = vld [vmem:[%s177_s26 + $0xd8] sm:$0xff] (%p50_p3)  ;;  %s171_s27 = scalar_lea.vmem (%p50_p3), [#allocation3], %s1505_s23 }
  0x13   : > { %193 = vst [vmem:[%s171_s27] sm:$0xff] (%p50_p3), %v192_v0  ;;  %195 = vst [vmem:[%s171_s27 + $0xc] sm:$0xff] (%p50_p3), %v194_v1  ;;  %v198_v3 = vld [vmem:[%s177_s26 + $0x144] sm:$0xff] (%p50_p3)  ;;  %v1330_v5 = vld [vmem:[%s177_s26 + $0x74] sm:$0xf] (%p50_p3) }
  0x14   : > { %197 = vst [vmem:[%s171_s27 + $0x18] sm:$0xff] (%p50_p3), %v196_v2  ;;  %v1328_v4 = vld [vmem:[%s177_s26 + $0x8] sm:$0xf] (%p50_p3)  ;;  %199 = vst [vmem:[%s171_s27 + $0x24] sm:$0xff] (%p50_p3), %v198_v3  ;;  %v1332_v6 = vld [vmem:[%s177_s26 + $0xe0] sm:$0xf] (%p50_p3) }
  0x15   : > { %1329 = vst [vmem:[%s171_s27 + $0x8] sm:$0xf] %v1328_v4  ;;  %1331 = vst [vmem:[%s171_s27 + $0x14] sm:$0xf] %v1330_v5  ;;  %v1334_v7 = vld [vmem:[%s177_s26 + $0x14c] sm:$0xf] }
  0x16   : > { %1333 = vst [vmem:[%s171_s27 + $0x20] sm:$0xf] %v1332_v6  ;;  %1335 = vst [vmem:[%s171_s27 + $0x2c] sm:$0xf] %v1334_v7 }
  0x17 PF: > { %p1336_p6 = scmp.ge.s32.totalorder %s1692_s16, 1  ;;  %p234_p7 = scmp.lt.s32.totalorder %s1692_s16, 10 }
  0x19   : > { %p235_p8 = pnand %p1336_p6, %p234_p7 }
  0x1a   : > { %s241_s28 = sand.u32 (!%p235_p8), 1, %s1676_s12   ;;  %s285_s29 = smul.u32 (!%p235_p8), 48, %s1684_s14 }
  0x1b   : > { %238 = sbr.rel (%p235_p8) target bundleno = 374 (0x176), region = 54  ;;  %p1338_p10 = scmp.ne.s32.totalorder (!%p235_p8), %s1684_s14, 0 }
  0x1c   : > { %s1506_s30 = smul.u32 (!%p235_p8), 48, %s241_s28  ;;  %p287_p9 = scmp.lt.s32.totalorder (!%p235_p8), %s285_s29, 431 }
  0x1e   : > { %s1768_s8 = scalar_lea.vmem (!%p235_p8), [#allocation3], %s1506_s30 }
  0x22   : > { %s1913_s29 = smov (!%p287_p9, %s285_s29), 431  ;;  %318 = sbr.rel (%p1338_p10) target bundleno = 42 (0x2a), region = 62 }
  0x23   : > { %s1507_s4 = smul.u32 12, %s1913_s29  ;;  %v1694_v8 = vmov (!%p1338_p10), 0.0  }
  0x24   : > { %319 = vst [vmem:[#allocation2] sm:$0xff] (!%p1338_p10), %v1694_v8  ;;  %320 = vst [vmem:[#allocation2 + $0x8] sm:$0xff] (!%p1338_p10), %v1694_v8 }
  0x25   : > { %s1766_s7 = scalar_lea.vmem %s1903_s1, %s1507_s4  ;;  %321 = vst [vmem:[#allocation2 + $0x10] sm:$0xff] (!%p1338_p10), %v1694_v8  ;;  %322 = vst [vmem:[#allocation2 + $0x18] sm:$0xff] (!%p1338_p10), %v1694_v8 }
  0x26   : > { %323 = vst [vmem:[#allocation2 + $0x20] sm:$0xff] (!%p1338_p10), %v1694_v8  ;;  %324 = vst [vmem:[#allocation2 + $0x28] sm:$0xff] (!%p1338_p10), %v1694_v8 }
  0x27   : > { %325 = vst [vmem:[#allocation2 + $0x30] sm:$0xff] (!%p1338_p10), %v1694_v8  ;;  %326 = vst [vmem:[#allocation2 + $0x38] sm:$0xff] (!%p1338_p10), %v1694_v8 }
  0x28   : > { %327 = vst [vmem:[#allocation2 + $0x40] sm:$0xff] (!%p1338_p10), %v1694_v8  ;;  %328 = vst [vmem:[#allocation2 + $0x48] sm:$0xff] (!%p1338_p10), %v1694_v8 }
  0x29   : > { %329 = vst [vmem:[#allocation2 + $0x50] sm:$0xff] %v1694_v8  ;;  %330 = vst [vmem:[#allocation2 + $0x58] sm:$0xff] %v1694_v8 }
  0x2a PF: > { %v1550_v9 = vld [vmem:[%s1766_s7 + $0x4] ss:$12 sps:$4 sm:$0xff]   ;;  %v1695_v11 = vmov 0   ;;  %v1554_v12 = vld [vmem:[%s1766_s7] ss:$12 sps:$4 sm:$0xff]   ;;  %p1417_p11 = scmp.ne.s32.totalorder %s1684_s14, 8 }
  0x2b   : > { %v1552_v10 = vld [vmem:[%s1766_s7 + $0x184] ss:$12 sps:$4 sm:$0xff]   ;;  %948 = vmatprep.mubr.bf16.mxu1 %v1695_v11  ;;  %863 = vmatprep.subr.bf16.mxu0 %v1550_v9  ;;  %v1555_v13 = vld [vmem:[%s1766_s7 + $0x180] ss:$12 sps:$4 sm:$0xff]   ;;  %v1556_v14 = vld [vmem:[%s1766_s7 + $0x1c] ss:$12 sps:$4 sm:$0xff]  }
  0x2c   : > { %916 = vmatprep.subr.bf16.mxu1 %v1552_v10  ;;  %864 = vmatpush1.bf16.msra.mxu0 %v1554_v12  ;;  %v1558_v15 = vld [vmem:[%s1766_s7 + $0x19c] ss:$12 sps:$4 sm:$0xff]   ;;  %v1560_v16 = vld [vmem:[%s1766_s7 + $0x18] ss:$12 sps:$4 sm:$0xff]   ;;  %v1562_v18 = vld [vmem:[%s1766_s7 + $0x34] ss:$12 sps:$4 sm:$0xff]  }
  0x2d   : > { %917 = vmatpush1.bf16.msra.mxu1 %v1555_v13  ;;  %865 = vmatprep.subr.bf16.mxu0 %v1556_v14  ;;  %v1561_v17 = vld [vmem:[%s1766_s7 + $0x198] ss:$12 sps:$4 sm:$0xff]   ;;  %v1564_v19 = vld [vmem:[%s1766_s7 + $0x1b4] ss:$12 sps:$4 sm:$0xff]   ;;  %v1566_v20 = vld [vmem:[%s1766_s7 + $0x30] ss:$12 sps:$4 sm:$0xff]  }
  0x2e   : > { %918 = vmatprep.subr.bf16.mxu1 %v1558_v15  ;;  %v1567_v21 = vld [vmem:[%s1766_s7 + $0x1b0] ss:$12 sps:$4 sm:$0xff]   ;;  %v1568_v22 = vld [vmem:[%s1766_s7 + $0x4c] ss:$12 sps:$4 sm:$0xff]   ;;  %v1572_v24 = vld [vmem:[%s1766_s7 + $0x48] ss:$12 sps:$4 sm:$0xff]  }
  0x2f   : > { %v1570_v23 = vld [vmem:[%s1766_s7 + $0x1cc] ss:$12 sps:$4 sm:$0xff]   ;;  %v1573_v25 = vld [vmem:[%s1766_s7 + $0x1c8] ss:$12 sps:$4 sm:$0xff]   ;;  %v1574_v26 = vld [vmem:[%s1766_s7 + $0x64] ss:$12 sps:$4 sm:$0xff]  }
  0x30   : > { %866 = vmatpush1.bf16.msra.mxu0 %v1560_v16  ;;  %v1576_v27 = vld [vmem:[%s1766_s7 + $0x1e4] ss:$12 sps:$4 sm:$0xff]   ;;  %v1578_v28 = vld [vmem:[%s1766_s7 + $0x60] ss:$12 sps:$4 sm:$0xff]   ;;  %v1580_v30 = vld [vmem:[%s1766_s7 + $0x7c] ss:$12 sps:$4 sm:$0xff]  }
  0x31   : > { %919 = vmatpush1.bf16.msra.mxu1 %v1561_v17  ;;  %867 = vmatprep.subr.bf16.mxu0 %v1562_v18  ;;  %v1579_v29 = vld [vmem:[%s1766_s7 + $0x1e0] ss:$12 sps:$4 sm:$0xff]   ;;  %v1582_v31 = vld [vmem:[%s1766_s7 + $0x1fc] ss:$12 sps:$4 sm:$0xff]   ;;  %v1584_v32 = vld [vmem:[%s1766_s7 + $0x78] ss:$12 sps:$4 sm:$0xff]  }
  0x32   : > { %920 = vmatprep.subr.bf16.mxu1 %v1564_v19  ;;  %v1585_v33 = vld [vmem:[%s1766_s7 + $0x1f8] ss:$12 sps:$4 sm:$0xff]   ;;  %v1586_v34 = vld [vmem:[%s1766_s7 + $0x94] ss:$12 sps:$4 sm:$0xff]   ;;  %v1590_v36 = vld [vmem:[%s1766_s7 + $0x90] ss:$12 sps:$4 sm:$0xff]  }
  0x33   : > { %v1588_v35 = vld [vmem:[%s1766_s7 + $0x214] ss:$12 sps:$4 sm:$0xff]   ;;  %v1591_v37 = vld [vmem:[%s1766_s7 + $0x210] ss:$12 sps:$4 sm:$0xff]   ;;  %v1592_v38 = vld [vmem:[%s1766_s7 + $0xac] ss:$12 sps:$4 sm:$0xff]  }
  0x34   : > { %868 = vmatpush1.bf16.msra.mxu0 %v1566_v20  ;;  %v1594_v39 = vld [vmem:[%s1766_s7 + $0x22c] ss:$12 sps:$4 sm:$0xff]   ;;  %v1596_v40 = vld [vmem:[%s1766_s7 + $0xa8] ss:$12 sps:$4 sm:$0xff]   ;;  %v1598_v42 = vld [vmem:[%s1766_s7 + $0xc4] ss:$12 sps:$4 sm:$0xff]  }
  0x35   : > { %921 = vmatpush1.bf16.msra.mxu1 %v1567_v21  ;;  %869 = vmatprep.subr.bf16.mxu0 %v1568_v22  ;;  %v1597_v41 = vld [vmem:[%s1766_s7 + $0x228] ss:$12 sps:$4 sm:$0xff]   ;;  %v1602_v45 = vld [vmem:[%s1766_s7 + $0xc0] ss:$12 sps:$4 sm:$0xff]   ;;  %v1607_v49 = vld [vmem:[%s1766_s7 + $0xd8] ss:$12 sps:$4 sm:$0xff]  }
  0x36   : > { %922 = vmatprep.subr.bf16.mxu1 %v1570_v23  ;;  %v1806_v43 = vld [vmem:[%s1768_s8 + $0x8] ss:$12 sps:$4 sm:$0xff]   ;;  %v1606_v48 = vld [vmem:[%s1766_s7 + $0xe0] ss:$12 sps:$4 sm:$0xff]   ;;  %v1612_v53 = vld [vmem:[%s1766_s7 + $0xf0] ss:$12 sps:$4 sm:$0xff]  }
  0x37   : > { %v1601_v44 = vld [vmem:[%s1766_s7 + $0xc8] ss:$12 sps:$4 sm:$0xff]   ;;  %v1608_v50 = vld [vmem:[%s1766_s7 + $0x20] ss:$12 sps:$4 sm:$0xff]   ;;  %v1611_v52 = vld [vmem:[%s1766_s7 + $0xf8] ss:$12 sps:$4 sm:$0xff]  }
  0x38   : > { %870 = vmatpush1.bf16.msra.mxu0 %v1572_v24  ;;  %v1603_v46 = vld [vmem:[%s1766_s7 + $0x8] ss:$12 sps:$4 sm:$0xff]   ;;  %v1613_v54 = vld [vmem:[%s1766_s7 + $0x38] ss:$12 sps:$4 sm:$0xff]   ;;  %v1616_v56 = vld [vmem:[%s1766_s7 + $0x110] ss:$12 sps:$4 sm:$0xff]  }
  0x39   : > { %923 = vmatpush1.bf16.msra.mxu1 %v1573_v25  ;;  %871 = vmatprep.subr.bf16.mxu0 %v1574_v26  ;;  %v1604_v47 = vld [vmem:[%s1766_s7 + $0xdc] ss:$12 sps:$4 sm:$0xff]   ;;  %v1609_v51 = vld [vmem:[%s1766_s7 + $0xf4] ss:$12 sps:$4 sm:$0xff]   ;;  %v1614_v55 = vld [vmem:[%s1766_s7 + $0x10c] ss:$12 sps:$4 sm:$0xff]  }
  0x3a   : > { %924 = vmatprep.subr.bf16.mxu1 %v1576_v27  ;;  %v1617_v57 = vld [vmem:[%s1766_s7 + $0x108] ss:$12 sps:$4 sm:$0xff]   ;;  %v1825_v58 = vld [vmem:[%s1768_s8 + $0x20] ss:$12 sps:$4 sm:$0xff]   ;;  %v1627_v2 = vld [vmem:[%s1766_s7 + $0x138] ss:$12 sps:$4 sm:$0xff]  }
  0x3b   : > { %v1618_v59 = vld [vmem:[%s1766_s7 + $0x50] ss:$12 sps:$4 sm:$0xff]   ;;  %v1621_v61 = vld [vmem:[%s1766_s7 + $0x128] ss:$12 sps:$4 sm:$0xff]   ;;  %v1622_v62 = vld [vmem:[%s1766_s7 + $0x120] ss:$12 sps:$4 sm:$0xff]  }
  0x3c   : > { %872 = vmatpush1.bf16.msra.mxu0 %v1578_v28  ;;  %v1619_v60 = vld [vmem:[%s1766_s7 + $0x124] ss:$12 sps:$4 sm:$0xff]   ;;  %v1623_v63 = vld [vmem:[%s1766_s7 + $0x68] ss:$12 sps:$4 sm:$0xff]   ;;  %v1626_v1 = vld [vmem:[%s1766_s7 + $0x140] ss:$12 sps:$4 sm:$0xff]  }
  0x3d   : > { %925 = vmatpush1.bf16.msra.mxu1 %v1579_v29  ;;  %873 = vmatprep.subr.bf16.mxu0 %v1580_v30  ;;  %v1624_v0 = vld [vmem:[%s1766_s7 + $0x13c] ss:$12 sps:$4 sm:$0xff]   ;;  %v1628_v3 = vld [vmem:[%s1766_s7 + $0x80] ss:$12 sps:$4 sm:$0xff]   ;;  %v1632_v6 = vld [vmem:[%s1766_s7 + $0x158] ss:$12 sps:$4 sm:$0xff]  }
  0x3e   : > { %926 = vmatprep.subr.bf16.mxu1 %v1582_v31  ;;  %v1642_v4 = vld [vmem:[%s1768_s8 + $0x4] ss:$12 sps:$4 sm:$0xff]   ;;  %v1635_v9 = vld [vmem:[%s1766_s7 + $0x16c] ss:$12 sps:$4 sm:$0xff]  }
  0x3f   : > { %v1630_v5 = vld [vmem:[%s1766_s7 + $0x154] ss:$12 sps:$4 sm:$0xff]   ;;  %v1633_v7 = vld [vmem:[%s1766_s7 + $0x150] ss:$12 sps:$4 sm:$0xff]   ;;  %895 = vmatprep.mubr.bf16.mxu0 %v1642_v4  ;;  %v1634_v8 = vld [vmem:[%s1766_s7 + $0x98] ss:$12 sps:$4 sm:$0xff]  }
  0x40   : > { %874 = vmatpush1.bf16.msra.mxu0 %v1584_v32  ;;  %v1637_v10 = vld [vmem:[%s1766_s7 + $0x170] ss:$12 sps:$4 sm:$0xff]   ;;  %v1643_v13 = vld [vmem:[%s1766_s7 + $0x188] ss:$12 sps:$4 sm:$0xff]   ;;  %v1644_v16 = vld [vmem:[%s1766_s7 + $0x1a0] ss:$12 sps:$4 sm:$0xff]  }
  0x41   : > { %927 = vmatpush1.bf16.msra.mxu1 %v1585_v33  ;;  %875 = vmatprep.subr.bf16.mxu0 %v1586_v34  ;;  %v1639_v12 = vld [vmem:[%s1766_s7 + $0xb0] ss:$12 sps:$4 sm:$0xff]   ;;  %v1648_v17 = vld [vmem:[%s1766_s7 + $0x1b8] ss:$12 sps:$4 sm:$0xff]   ;;  %v1650_v20 = vld [vmem:[%s1766_s7 + $0x1e8] ss:$12 sps:$4 sm:$0xff]  }
  0x42   : > { %928 = vmatprep.subr.bf16.mxu1 %v1588_v35  ;;  %v1640_v14 = vld [vmem:[%s1768_s8] ss:$12 sps:$4 sm:$0xff]   ;;  %v1645_v15 = vld [vmem:[%s1768_s8 + $0x1c] ss:$12 sps:$4 sm:$0xff]   ;;  %v1647_v18 = vld [vmem:[%s1768_s8 + $0x18] ss:$12 sps:$4 sm:$0xff]  }
  0x43   : > { %v1649_v19 = vld [vmem:[%s1766_s7 + $0x1d0] ss:$12 sps:$4 sm:$0xff]   ;;  %v1651_v21 = vld [vmem:[%s1766_s7 + $0x200] ss:$12 sps:$4 sm:$0xff]   ;;  %v1652_v22 = vld [vmem:[%s1766_s7 + $0x218] ss:$12 sps:$4 sm:$0xff]  }
  0x44   : > { %876 = vmatpush1.bf16.msra.mxu0 %v1590_v36  ;;  %v1653_v23 = vld [vmem:[%s1766_s7 + $0x230] ss:$12 sps:$4 sm:$0xff]  }
  0x45   : > { %929 = vmatpush1.bf16.msra.mxu1 %v1591_v37  ;;  %877 = vmatprep.subr.bf16.mxu0 %v1592_v38  ;;  %v331_v32 = vld [vmem:[#allocation2] sm:$0xff]  ;;  %v332_v36 = vld [vmem:[#allocation2 + $0x8] sm:$0xff] }
  0x46   : > { %930 = vmatprep.subr.bf16.mxu1 %v1594_v39 }
  0x48   : > { %878 = vmatpush1.bf16.msra.mxu0 %v1596_v40 }
  0x49   : > { %931 = vmatpush1.bf16.msra.mxu1 %v1597_v41  ;;  %879 = vmatprep.subr.bf16.mxu0 %v1598_v42  ;;  %v334_v41 = vld [vmem:[#allocation2 + $0x18] sm:$0xff] }
  0x4a   : > { %1439 = vmatprep.subr.bf16.mxu1 %v1601_v44 }
  0x4c   : > { %949 = vmatmul.mubr.bf16.vlgmr.msra.gmra.mrb[0].mxu1 %v1806_v43  ;;  %880 = vmatpush1.bf16.msra.mxu0 %v1602_v45 }
  0x4d   : > { %1440 = vmatpush3.bf16.msra.mxu1 %v1603_v46  ;;  %881 = vmatprep.subr.bf16.mxu0 %v1604_v47  ;;  %v335_v46 = vld [vmem:[#allocation2 + $0x20] sm:$0xff] }
  0x4e   : > { %1441 = vmatprep.subr.bf16.mxu1 %v1606_v48  ;;  %958 = vmatprep.mubr.bf16.mxu1 %v1695_v11  ;;  %v1638_v11 = vld [vmem:[%s1766_s7 + $0x168] ss:$12 sps:$4 sm:$0xff]  }
  0x50   : > { %882 = vmatpush1.bf16.msra.mxu0 %v1607_v49 }
  0x51   : > { %1442 = vmatpush3.bf16.msra.mxu1 %v1608_v50  ;;  %883 = vmatprep.subr.bf16.mxu0 %v1609_v51 }
  0x52   : > { %1443 = vmatprep.subr.bf16.mxu1 %v1611_v52 }
  0x54   : > { %884 = vmatpush1.bf16.msra.mxu0 %v1612_v53  ;;  %959 = vmatmul.mubr.bf16.gmra.mrb[4].mxu1 %v1825_v58 }
  0x55   : > { %1444 = vmatpush3.bf16.msra.mxu1 %v1613_v54  ;;  %885 = vmatprep.subr.bf16.mxu0 %v1614_v55  ;;  %v337_v54 = vld [vmem:[#allocation2 + $0x30] sm:$0xff] }
  0x56   : > { %1445 = vmatprep.subr.bf16.mxu1 %v1616_v56  ;;  %1001 = vmatprep.mubr.bf16.mxu1 %v1642_v4  ;;  %v341_v4 = vld [vmem:[#allocation2 + $0x50] sm:$0xff] }
  0x58   : > { %886 = vmatpush1.bf16.msra.mxu0 %v1617_v57 }
  0x59   : > { %1446 = vmatpush3.bf16.msra.mxu1 %v1618_v59  ;;  %887 = vmatprep.subr.bf16.mxu0 %v1619_v60 }
  0x5a   : > { %1447 = vmatprep.subr.bf16.mxu1 %v1621_v61 }
  0x5c   : > { %888 = vmatpush1.bf16.msra.mxu0 %v1622_v62  ;;  %v340_v62 = vld [vmem:[#allocation2 + $0x48] sm:$0xff] }
  0x5d   : > { %1448 = vmatpush3.bf16.msra.mxu1 %v1623_v63  ;;  %889 = vmatprep.subr.bf16.mxu0 %v1624_v0 }
  0x5e   : > { %1449 = vmatprep.subr.bf16.mxu1 %v1626_v1 }
  0x60   : > { %890 = vmatpush1.bf16.msra.mxu0 %v1627_v2 }
  0x61   : > { %1450 = vmatpush3.bf16.msra.mxu1 %v1628_v3  ;;  %891 = vmatprep.subr.bf16.mxu0 %v1630_v5 }
  0x62   : > { %1451 = vmatprep.subr.bf16.mxu1 %v1632_v6 }
  0x64   : > { %892 = vmatpush1.bf16.msra.mxu0 %v1633_v7 }
  0x65   : > { %1452 = vmatpush3.bf16.msra.mxu1 %v1634_v8  ;;  %893 = vmatprep.subr.bf16.mxu0 %v1635_v9 }
  0x66   : > { %1453 = vmatprep.subr.bf16.mxu1 %v1637_v10 }
  0x68   : > { %894 = vmatpush1.bf16.msra.mxu0 %v1638_v11 }
  0x69   : > { %1454 = vmatpush3.bf16.msra.mxu1 %v1639_v12  ;;  %v339_v12 = vld [vmem:[#allocation2 + $0x40] sm:$0xff] }
  0x6a   : > { %1477 = vmatprep.subr.bf16.mxu1 %v1643_v13 }
  0x6b   : > { %896 = vmatmul.mubr.bf16.vlgmr.msra.gmra.mrb[0].mxu0 %v1640_v14 }
  0x6c   : > { %1002 = vmatmul.mubr.bf16.vlgmr.msra.gmra.mrb[8].mxu1 %v1640_v14  ;;  %905 = vmatprep.mubr.bf16.mxu0 %v1645_v15 }
  0x6d   : > { %1478 = vmatpush3.bf16.msra.mxu1 %v1643_v13  ;;  %1009 = vmatprep.mubr.bf16.mxu1 %v1645_v15  ;;  %v333_v15 = vld [vmem:[#allocation2 + $0x10] sm:$0xff] }
  0x6e   : > { %1479 = vmatprep.subr.bf16.mxu1 %v1644_v16 }
  0x71   : > { %1480 = vmatpush3.bf16.msra.mxu1 %v1644_v16 }
  0x72   : > { %1481 = vmatprep.subr.bf16.mxu1 %v1648_v17 }
  0x73   : > { %906 = vmatmul.mubr.bf16.gmra.mrb[4].mxu0 %v1647_v18 }
  0x74   : > { %1010 = vmatmul.mubr.bf16.gmra.mrb[12].mxu1 %v1647_v18  ;;  %v342_v18 = vld [vmem:[#allocation2 + $0x58] sm:$0xff] }
  0x75   : > { %1482 = vmatpush3.bf16.msra.mxu1 %v1648_v17  ;;  %1493 = vmatprep.mubr.bf16.mxu1 %v1806_v43 }
  0x76   : > { %1483 = vmatprep.subr.bf16.mxu1 %v1649_v19 }
  0x79   : > { %1484 = vmatpush3.bf16.msra.mxu1 %v1649_v19 }
  0x7a   : > { %1485 = vmatprep.subr.bf16.mxu1 %v1650_v20 }
  0x7d   : > { %1486 = vmatpush3.bf16.msra.mxu1 %v1650_v20 }
  0x7e   : > { %1487 = vmatprep.subr.bf16.mxu1 %v1651_v21 }
  0x81   : > { %1488 = vmatpush3.bf16.msra.mxu1 %v1651_v21 }
  0x82   : > { %1489 = vmatprep.subr.bf16.mxu1 %v1652_v22 }
  0x85   : > { %1490 = vmatpush3.bf16.msra.mxu1 %v1652_v22  ;;  %v336_v22 = vld [vmem:[#allocation2 + $0x28] sm:$0xff] }
  0x86   : > { %1491 = vmatprep.subr.bf16.mxu1 %v1653_v23 }
  0x89   : > { %1492 = vmatpush3.bf16.msra.mxu1 %v1653_v23 }
  0x8c   : > { %1494 = vmatmul.mubr.bf16.vlgmr.msra.gmra.mrb[16].mxu1 %v1825_v58  ;;  %v338_v58 = vld [vmem:[#allocation2 + $0x38] sm:$0xff] }
 0x11f   : > { %v950_v24 = vpop.f32.mrb[0].mxu1 }
 0x120   : > { %v952_v25 = vpop.f32.mrb[1].mxu1 }
 0x121   : > { %v954_v26 = vpop.f32.mrb[2].mxu1 }
 0x122   : > { %v956_v27 = vpop.f32.mrb[3].mxu1 }
 0x127   : > { %v960_v28 = vpop.f32.mrb[4].mxu1 }
 0x128   : > { %v962_v29 = vpop.f32.mrb[5].mxu1 }
 0x129   : > { %v964_v30 = vpop.f32.mrb[6].mxu1 }
 0x12a   : > { %v966_v31 = vpop.f32.mrb[7].mxu1 }
 0x13e   : > { %v897_v33 = vpop.f32.mrb[0].mxu0 }
 0x13f   : > { %v1455_v34 = vpop.f32.mrb[8].mxu1  ;;  %v951_v35 = vadd.f32 %v950_v24, %v897_v33  ;;  %v899_v37 = vpop.f32.mrb[1].mxu0 }
 0x140   : > { %v1456_v38 = vpop.f32.mrb[9].mxu1  ;;  %v953_v39 = vadd.f32 %v952_v25, %v899_v37  ;;  %v901_v42 = vpop.f32.mrb[2].mxu0 }
 0x141   : > { %v1457_v40 = vadd.f32 %v1456_v38, %v1455_v34  ;;  %v1458_v43 = vpop.f32.mrb[10].mxu1  ;;  %v1067_v44 = vadd.f32 %v951_v35, %v331_v32  ;;  %v955_v45 = vadd.f32 %v954_v26, %v901_v42  ;;  %v903_v47 = vpop.f32.mrb[3].mxu0 }
 0x142   : > { %v1459_v48 = vpop.f32.mrb[11].mxu1  ;;  %v1068_v49 = vadd.f32 %v953_v39, %v332_v36  ;;  %v957_v50 = vadd.f32 %v956_v27, %v903_v47 }
 0x143   : > { %v1460_v51 = vadd.f32 %v1459_v48, %v1458_v43  ;;  %1079 = vst [vmem:[#allocation2] sm:$0xff] %v1067_v44  ;;  %v1070_v52 = vadd.f32 %v955_v45, %v334_v41 }
 0x144   : > { %1080 = vst [vmem:[#allocation2 + $0x8] sm:$0xff] %v1068_v49  ;;  %v1071_v53 = vadd.f32 %v957_v50, %v335_v46 }
 0x145   : > { %1082 = vst [vmem:[#allocation2 + $0x18] sm:$0xff] %v1070_v52 }
 0x146   : > { %1083 = vst [vmem:[#allocation2 + $0x20] sm:$0xff] %v1071_v53  ;;  %v907_v55 = vpop.f32.mrb[4].mxu0 }
 0x147   : > { %v1461_v56 = vpop.f32.mrb[12].mxu1  ;;  %v961_v57 = vadd.f32 %v960_v28, %v907_v55  ;;  %v909_v59 = vpop.f32.mrb[5].mxu0  ;;  %v1109_v28 = vlaneseq (!%p1417_p11) }
 0x148   : > { %v1462_v60 = vpop.f32.mrb[13].mxu1  ;;  %v963_v61 = vadd.f32 %v962_v29, %v909_v59  ;;  %v911_v63 = vpop.f32.mrb[6].mxu0 }
 0x149   : > { %v1463_v0 = vadd.f32 %v1462_v60, %v1461_v56  ;;  %v1464_v1 = vpop.f32.mrb[14].mxu1  ;;  %v1073_v2 = vadd.f32 %v961_v57, %v337_v54  ;;  %v965_v3 = vadd.f32 %v964_v30, %v911_v63  ;;  %v913_v5 = vpop.f32.mrb[7].mxu0  ;;  %v1110_v29 = vshrl.u32 (!%p1417_p11), %v1109_v28, 7  ;;  %v1107_v30 = vld [vmem:[%s1904_s2] sm:$0x7] (!%p1417_p11) }
 0x14a   : > { %v1465_v6 = vpop.f32.mrb[15].mxu1  ;;  %v1074_v7 = vadd.f32 %v963_v61, %v338_v58  ;;  %v967_v8 = vadd.f32 %v966_v31, %v913_v5  ;;  %v1095_v31 = vld [vmem:[#allocation2] sm:$0xff] (!%p1417_p11) }
 0x14b   : > { %v1466_v9 = vadd.f32 %v1465_v6, %v1464_v1  ;;  %1085 = vst [vmem:[#allocation2 + $0x30] sm:$0xff] %v1073_v2  ;;  %v1076_v10 = vadd.f32 %v965_v3, %v340_v62  ;;  %v1096_v32 = vld [vmem:[#allocation2 + $0x8] sm:$0xff] (!%p1417_p11)  ;;  %v1111_v33 = vsub.s32 (!%p1417_p11), 0, %v1110_v29  ;;  %v1115_v34 = vsub.s32 (!%p1417_p11), 1, %v1110_v29 }
 0x14c   : > { %1086 = vst [vmem:[#allocation2 + $0x38] sm:$0xff] %v1074_v7  ;;  %v1077_v11 = vadd.f32 %v967_v8, %v341_v4  ;;  %v1119_v35 = vsub.s32 (!%p1417_p11), 2, %v1110_v29  ;;  %v1098_v37 = vld [vmem:[#allocation2 + $0x18] sm:$0xff] (!%p1417_p11) }
 0x14d   : > { %1088 = vst [vmem:[#allocation2 + $0x48] sm:$0xff] %v1076_v10  ;;  %v1099_v38 = vld [vmem:[#allocation2 + $0x20] sm:$0xff] (!%p1417_p11)  ;;  %v1112_v39 = vrot.slane (!%p1417_p11), %v1107_v30, %v1111_v33 }
 0x14e   : > { %1089 = vst [vmem:[#allocation2 + $0x50] sm:$0xff] %v1077_v11  ;;  %v1120_v41 = vrot.slane (!%p1417_p11), %v1107_v30, %v1119_v35 }
 0x14f   : > { %v1124_v45 = vadd.f32 (!%p1417_p11), %v1112_v39, %v1095_v31  ;;  %v1127_v48 = vadd.f32 (!%p1417_p11), %v1112_v39, %v1098_v37 }
 0x151   : > { %v1136_v55 = vmax.f32 (!%p1417_p11), %v1124_v45, 0.0  ;;  %v1139_v58 = vmax.f32 (!%p1417_p11), %v1127_v48, 0.0 }
 0x152   : > { %v1101_v43 = vld [vmem:[#allocation2 + $0x30] sm:$0xff] (!%p1417_p11) }
 0x153   : > { %v1102_v44 = vld [vmem:[#allocation2 + $0x38] sm:$0xff] (!%p1417_p11) }
 0x154   : > { %v1104_v54 = vld [vmem:[#allocation2 + $0x48] sm:$0xff] (!%p1417_p11) }
 0x155   : > { %v1105_v59 = vld [vmem:[#allocation2 + $0x50] sm:$0xff] (!%p1417_p11)  ;;  %v1133_v4 = vadd.f32 (!%p1417_p11), %v1112_v39, %v1104_v54 }
 0x157   : > { %v1145_v10 = vmax.f32 (!%p1417_p11), %v1133_v4, 0.0 }
 0x15f   : > { %v1495_v13 = vpop.f32.mrb[16].mxu1 }
 0x160   : > { %v1061_v14 = vadd.f32 %v1495_v13, %v1463_v0  ;;  %v1052_v16 = vpop.f32.mrb[17].mxu1 }
 0x161   : > { %v1053_v17 = vadd.f32 %v1457_v40, %v1052_v16  ;;  %v1496_v19 = vpop.f32.mrb[18].mxu1  ;;  %1094 = sbr.rel (%p1417_p11) target bundleno = 374 (0x176), region = 66  ;;  %v1116_v40 = vrot.slane (!%p1417_p11), %v1107_v30, %v1115_v34 }
 0x162   : > { %v1075_v20 = vadd.f32 %v1061_v14, %v339_v12  ;;  %v1064_v21 = vadd.f32 %v1496_v19, %v1466_v9  ;;  %v1055_v23 = vpop.f32.mrb[19].mxu1 }
 0x163   : > { %v1069_v24 = vadd.f32 %v1053_v17, %v333_v15  ;;  %v1056_v25 = vadd.f32 %v1460_v51, %v1055_v23  ;;  %v1125_v46 = vadd.f32 (!%p1417_p11), %v1116_v40, %v1096_v32  ;;  %v1128_v49 = vadd.f32 (!%p1417_p11), %v1116_v40, %v1099_v38 }
 0x164   : > { %1087 = vst [vmem:[#allocation2 + $0x40] sm:$0xff] %v1075_v20  ;;  %v1078_v26 = vadd.f32 %v1064_v21, %v342_v18  ;;  %v1130_v51 = vadd.f32 (!%p1417_p11), %v1112_v39, %v1101_v43  ;;  %v1131_v52 = vadd.f32 (!%p1417_p11), %v1116_v40, %v1102_v44  ;;  %v1134_v8 = vadd.f32 (!%p1417_p11), %v1116_v40, %v1105_v59 }
 0x165   : > { %1081 = vst [vmem:[#allocation2 + $0x10] sm:$0xff] %v1069_v24  ;;  %v1072_v27 = vadd.f32 %v1056_v25, %v336_v22  ;;  %v1137_v56 = vmax.f32 (!%p1417_p11), %v1125_v46, 0.0  ;;  %v1140_v60 = vmax.f32 (!%p1417_p11), %v1128_v49, 0.0 }
 0x166   : > { %1090 = vst [vmem:[#allocation2 + $0x58] sm:$0xff] %v1078_v26  ;;  %v1142_v62 = vmax.f32 (!%p1417_p11), %v1130_v51, 0.0  ;;  %v1143_v63 = vmax.f32 (!%p1417_p11), %v1131_v52, 0.0  ;;  %v1146_v12 = vmax.f32 (!%p1417_p11), %v1134_v8, 0.0 }
 0x167   : > { %1084 = vst [vmem:[#allocation2 + $0x28] sm:$0xff] %v1072_v27  ;;  %v1431_v1 = vpack.c.bf16 (!%p1417_p11), %v1137_v56, %v1136_v55  ;;  %v1433_v5 = vpack.c.bf16 (!%p1417_p11), %v1140_v60, %v1139_v58 }
 0x168   : > { %v1435_v7 = vpack.c.bf16 %v1143_v63, %v1142_v62  ;;  %v1437_v15 = vpack.c.bf16 %v1146_v12, %v1145_v10 }
 0x169   : > { %1188 = vst [vmem:[%s1905_s3] sm:$0xff] %v1431_v1  ;;  %1190 = vst [vmem:[%s1905_s3 + $0xc] sm:$0xff] %v1433_v5 }
 0x16a   : > { %1192 = vst [vmem:[%s1905_s3 + $0x18] sm:$0xff] %v1435_v7  ;;  %1194 = vst [vmem:[%s1905_s3 + $0x24] sm:$0xff] %v1437_v15 }
 0x16b   : > { %v1103_v53 = vld [vmem:[#allocation2 + $0x40] sm:$0xff] }
 0x16c   : > { %v1097_v36 = vld [vmem:[#allocation2 + $0x10] sm:$0xff]  ;;  %v1132_v3 = vadd.f32 %v1120_v41, %v1103_v53 }
 0x16d   : > { %v1126_v47 = vadd.f32 %v1120_v41, %v1097_v36  ;;  %v1106_v0 = vld [vmem:[#allocation2 + $0x58] sm:$0xff] }
 0x16e   : > { %v1100_v42 = vld [vmem:[#allocation2 + $0x28] sm:$0xff]  ;;  %v1144_v9 = vmax.f32 %v1132_v3, 0.0  ;;  %v1135_v11 = vadd.f32 %v1120_v41, %v1106_v0 }
 0x16f   : > { %v1129_v50 = vadd.f32 %v1120_v41, %v1100_v42  ;;  %v1138_v57 = vmax.f32 %v1126_v47, 0.0 }
 0x170   : > { %v1436_v13 = vpack.c.bf16 %v1144_v9, %v1144_v9  ;;  %v1147_v14 = vmax.f32 %v1135_v11, 0.0 }
 0x171   : > { %v1141_v61 = vmax.f32 %v1129_v50, 0.0  ;;  %v1432_v2 = vpack.c.bf16 %v1138_v57, %v1138_v57 }
 0x172   : > { %1193 = vst [vmem:[%s1905_s3 + $0x20] sm:$0xf] %v1436_v13  ;;  %v1438_v16 = vpack.c.bf16 %v1147_v14, %v1147_v14 }
 0x173   : > { %v1434_v6 = vpack.c.bf16 %v1141_v61, %v1141_v61  ;;  %1189 = vst [vmem:[%s1905_s3 + $0x8] sm:$0xf] %v1432_v2 }
 0x174   : > { %1195 = vst [vmem:[%s1905_s3 + $0x2c] sm:$0xf] %v1438_v16 }
 0x175   : > { %1191 = vst [vmem:[%s1905_s3 + $0x14] sm:$0xf] %v1434_v6 }
 0x176 PF: > { %s13_s16 = sadd.s32 1, %s1692_s16   ;;  %s1906_s12 = smov %s1680_s13 }
 0x177   : > { %p10_p12 = scmp.ge.s32.totalorder %s13_s16, 11   ;;  %s1907_s13 = smov %s1751_s20 }
 0x178   : > { %s1908_s14 = smov %s1688_s15  ;;  %s1909_s15 = smov %s1911_s17 }
 0x179   :  { %12 = sbr.rel (!%p10_p12) target bundleno = 3 (0x3), region = 113 }

// kernel: reduction_a_forward.5
= control target key start
LH: loop header
LB: loop body
LE: loop exit
PB: predicated region body
PF: predicated region fallthrough
CT: control target
= control target key end

     0   :  { %s864_s12 = smov 0   ;;  %s866_s13 = smov 0   ;;  %s1037_s0 = inlined_call_operand.vmem [shape: f32[2,9,4,384], index: 0, kind: input, shape index: {}]   ;;  %s1038_s1 = inlined_call_operand.vmem [shape: f32[2,9,4,384], index: 1, kind: input, shape index: {}]   ;;  %s1039_s2 = inlined_call_operand.vmem [shape: f32[2,9,4,384], index: 2, kind: input, shape index: {}]   ;;  %s1040_s3 = inlined_call_operand.vmem [shape: f32[2,4,4,384], index: 3, kind: output, shape index: {}]  }
   0x1   :  { %s868_s14 = smov 0   ;;  %s870_s15 = smov 0  }
   0x2   :  { %s872_s16 = smov 0   ;;  %s874_s17 = smov 0  }
   0x3   :  { %s876_s18 = smov 0  }
   0x4 LB: > { %s22_s19 = sadd.s32 1, %s834_s16  ;;  %s25_s20 = sadd.s32 1, %s838_s17  ;;  %s842_s18 = sphi %s876_s18, %s13_s18   ;;  %s838_s17 = sphi %s874_s17, %s1048_s17   ;;  %s834_s16 = sphi %s872_s16, %s1047_s16   ;;  %s830_s15 = sphi %s870_s15, %s1046_s15   ;;  %s826_s14 = sphi %s868_s14, %s1045_s14   ;;  %s822_s13 = sphi %s866_s13, %s1044_s13   ;;  %s818_s12 = sphi %s864_s12, %s1043_s12  }
   0x5   : > { %p23_p0 = scmp.ge.s32.totalorder %s22_s19, 3  ;;  %s699_s21 = sadd.s32 4294967295, %s842_s18  }
   0x6   : > { %p41_p1 = scmp.ne.s32.totalorder %s822_s13, %s818_s12  ;;  %p42_p2 = scmp.eq.s32.totalorder %s842_s18, 0 }
   0x7   : > { %s1050_s19 = smov (%p23_p0, %s22_s19), 0  ;;  %s1052_s20 = smov (!%p23_p0, %s25_s20), %s838_s17 }
   0x8   : > { %p27_p3 = scmp.ge.s32.totalorder %s1052_s20, 2  ;;  %p129_p4 = scmp.eq.s32.totalorder %s699_s21, 5 }
   0x9   : > { %s30_s22 = ssub.s32 %s834_s16, %s1050_s19  ;;  %p910_p5 = por %p42_p2, %p41_p1 }
   0xa   : > { %s1054_s20 = smov (%p27_p3, %s1052_s20), 0  ;;  %p916_p6 = por %p129_p4, %p41_p1 }
   0xb   : > { %s29_s25 = ssub.s32 %s838_s17, %s1054_s20  ;;  %s34_s27 = sadd.s32 1, %s822_s13 }
   0xc   : > { %s31_s26 = sor.u32 %s30_s22, %s29_s25  ;;  %p702_p8 = scmp.ge.s32.totalorder %s842_s18, 6 }
   0xd   : > { %p32_p7 = scmp.eq.s32.totalorder %s31_s26, 0 }
   0xe   : > { %151 = sbr.rel (%p702_p8) target bundleno = 60 (0x3c), region = 16 }
   0xf   : > { %s924_s28 = scalar_select %p32_p7, %s822_s13, %s34_s27  }
  0x15   : > { %154 = sbr.rel (!%p910_p5) target bundleno = 34 (0x22), region = 20  ;;  %s156_s29 = sand.u32 (%p910_p5), 1, %s822_s13  }
  0x16   : > { %s725_s30 = smul.u32 (%p910_p5), 27, %s838_s17 }
  0x17   : > { %s724_s4 = smul.u32 (%p910_p5), 36, %s156_s29 }
  0x18   : > { %s160_s5 = sadd.s32 (%p910_p5), %s834_s16, %s725_s30 }
  0x19   : > { %s703_s6 = sshll.u32 (%p910_p5), %s160_s5, 2  ;;  %s158_s10 = scalar_lea.vmem (%p910_p5), [#allocation2], %s724_s4 }
  0x1a   : > { %s162_s9 = scalar_lea.vmem (%p910_p5), %s1037_s0, %s703_s6 }
  0x1b   : > { %v178_v0 = vld [vmem:[%s162_s9] sm:$0xf] (%p910_p5)  ;;  %v180_v1 = vld [vmem:[%s162_s9 + $0xc] sm:$0xf] (%p910_p5)  ;;  %v182_v2 = vld [vmem:[%s162_s9 + $0x18] sm:$0xf] (%p910_p5) }
  0x1c   : > { %179 = vst [vmem:[%s158_s10] sm:$0xf] %v178_v0  ;;  %181 = vst [vmem:[%s158_s10 + $0x4] sm:$0xf] %v180_v1  ;;  %v184_v3 = vld [vmem:[%s162_s9 + $0x24] sm:$0xf] }
  0x1d   : > { %183 = vst [vmem:[%s158_s10 + $0x8] sm:$0xf] %v182_v2  ;;  %v186_v4 = vld [vmem:[%s162_s9 + $0x30] sm:$0xf]  ;;  %v188_v5 = vld [vmem:[%s162_s9 + $0x3c] sm:$0xf] }
  0x1e   : > { %185 = vst [vmem:[%s158_s10 + $0xc] sm:$0xf] %v184_v3  ;;  %187 = vst [vmem:[%s158_s10 + $0x10] sm:$0xf] %v186_v4  ;;  %v190_v6 = vld [vmem:[%s162_s9 + $0x48] sm:$0xf] }
  0x1f   : > { %189 = vst [vmem:[%s158_s10 + $0x14] sm:$0xf] %v188_v5  ;;  %v192_v7 = vld [vmem:[%s162_s9 + $0x54] sm:$0xf]  ;;  %v194_v8 = vld [vmem:[%s162_s9 + $0x60] sm:$0xf] }
  0x20   : > { %191 = vst [vmem:[%s158_s10 + $0x18] sm:$0xf] %v190_v6  ;;  %193 = vst [vmem:[%s158_s10 + $0x1c] sm:$0xf] %v192_v7 }
  0x21   : > { %195 = vst [vmem:[%s158_s10 + $0x20] sm:$0xf] %v194_v8 }
  0x22 PF: > { %236 = sbr.rel (!%p910_p5) target bundleno = 47 (0x2f), region = 61  ;;  %s238_s11 = sand.u32 (%p910_p5), 1, %s822_s13  }
  0x23   : > { %s727_s21 = smul.u32 (%p910_p5), 27, %s838_s17 }
  0x24   : > { %s726_s22 = smul.u32 (%p910_p5), 36, %s238_s11 }
  0x25   : > { %s242_s25 = sadd.s32 (%p910_p5), %s834_s16, %s727_s21 }
  0x26   : > { %s704_s26 = sshll.u32 (%p910_p5), %s242_s25, 2  ;;  %s240_s4 = scalar_lea.vmem (%p910_p5), [#allocation3], %s726_s22 }
  0x27   : > { %s244_s30 = scalar_lea.vmem (%p910_p5), %s1038_s1, %s704_s26 }
  0x28   : > { %v260_v9 = vld [vmem:[%s244_s30] sm:$0xf] (%p910_p5)  ;;  %v262_v10 = vld [vmem:[%s244_s30 + $0xc] sm:$0xf] (%p910_p5)  ;;  %v264_v11 = vld [vmem:[%s244_s30 + $0x18] sm:$0xf] (%p910_p5) }
  0x29   : > { %261 = vst [vmem:[%s240_s4] sm:$0xf] %v260_v9  ;;  %263 = vst [vmem:[%s240_s4 + $0x4] sm:$0xf] %v262_v10  ;;  %v266_v12 = vld [vmem:[%s244_s30 + $0x24] sm:$0xf] }
  0x2a   : > { %265 = vst [vmem:[%s240_s4 + $0x8] sm:$0xf] %v264_v11  ;;  %v268_v13 = vld [vmem:[%s244_s30 + $0x30] sm:$0xf]  ;;  %v270_v14 = vld [vmem:[%s244_s30 + $0x3c] sm:$0xf] }
  0x2b   : > { %267 = vst [vmem:[%s240_s4 + $0xc] sm:$0xf] %v266_v12  ;;  %269 = vst [vmem:[%s240_s4 + $0x10] sm:$0xf] %v268_v13  ;;  %v272_v15 = vld [vmem:[%s244_s30 + $0x48] sm:$0xf] }
  0x2c   : > { %271 = vst [vmem:[%s240_s4 + $0x14] sm:$0xf] %v270_v14  ;;  %v274_v16 = vld [vmem:[%s244_s30 + $0x54] sm:$0xf]  ;;  %v276_v17 = vld [vmem:[%s244_s30 + $0x60] sm:$0xf] }
  0x2d   : > { %273 = vst [vmem:[%s240_s4 + $0x18] sm:$0xf] %v272_v15  ;;  %275 = vst [vmem:[%s240_s4 + $0x1c] sm:$0xf] %v274_v16 }
  0x2e   : > { %277 = vst [vmem:[%s240_s4 + $0x20] sm:$0xf] %v276_v17 }
  0x2f PF: > { %318 = sbr.rel (!%p910_p5) target bundleno = 60 (0x3c), region = 102  ;;  %s320_s5 = sand.u32 (%p910_p5), 1, %s822_s13  }
  0x30   : > { %s729_s6 = smul.u32 (%p910_p5), 27, %s838_s17 }
  0x31   : > { %s728_s7 = smul.u32 (%p910_p5), 36, %s320_s5 }
  0x32   : > { %s324_s8 = sadd.s32 (%p910_p5), %s834_s16, %s729_s6 }
  0x33   : > { %s705_s9 = sshll.u32 (%p910_p5), %s324_s8, 2  ;;  %s322_s22 = scalar_lea.vmem (%p910_p5), [#allocation4], %s728_s7 }
  0x34   : > { %s326_s21 = scalar_lea.vmem (%p910_p5), %s1039_s2, %s705_s9 }
  0x35   : > { %v342_v18 = vld [vmem:[%s326_s21] sm:$0xf] (%p910_p5)  ;;  %v344_v19 = vld [vmem:[%s326_s21 + $0xc] sm:$0xf] (%p910_p5)  ;;  %v346_v20 = vld [vmem:[%s326_s21 + $0x18] sm:$0xf] (%p910_p5) }
  0x36   : > { %343 = vst [vmem:[%s322_s22] sm:$0xf] %v342_v18  ;;  %345 = vst [vmem:[%s322_s22 + $0x4] sm:$0xf] %v344_v19  ;;  %v348_v21 = vld [vmem:[%s326_s21 + $0x24] sm:$0xf] }
  0x37   : > { %347 = vst [vmem:[%s322_s22 + $0x8] sm:$0xf] %v346_v20  ;;  %v350_v22 = vld [vmem:[%s326_s21 + $0x30] sm:$0xf]  ;;  %v352_v23 = vld [vmem:[%s326_s21 + $0x3c] sm:$0xf] }
  0x38   : > { %349 = vst [vmem:[%s322_s22 + $0xc] sm:$0xf] %v348_v21  ;;  %351 = vst [vmem:[%s322_s22 + $0x10] sm:$0xf] %v350_v22  ;;  %v354_v24 = vld [vmem:[%s326_s21 + $0x48] sm:$0xf] }
  0x39   : > { %353 = vst [vmem:[%s322_s22 + $0x14] sm:$0xf] %v352_v23  ;;  %v356_v25 = vld [vmem:[%s326_s21 + $0x54] sm:$0xf]  ;;  %v358_v26 = vld [vmem:[%s326_s21 + $0x60] sm:$0xf] }
  0x3a   : > { %355 = vst [vmem:[%s322_s22 + $0x18] sm:$0xf] %v354_v24  ;;  %357 = vst [vmem:[%s322_s22 + $0x1c] sm:$0xf] %v356_v25 }
  0x3b   : > { %359 = vst [vmem:[%s322_s22 + $0x20] sm:$0xf] %v358_v26 }
  0x3c PF: > { %p706_p9 = scmp.ge.s32.totalorder %s842_s18, 1  ;;  %p399_p10 = scmp.lt.s32.totalorder %s842_s18, 7 }
  0x3e   : > { %p400_p11 = pnand %p706_p9, %p399_p10 }
  0x3f   : > { %s406_s23 = sand.u32 (!%p400_p11), 1, %s818_s12  }
  0x40   : > { %403 = sbr.rel (%p400_p11) target bundleno = 97 (0x61), region = 143  ;;  %s954_s26 = sshll.u32 (!%p400_p11), %s406_s23, 4 }
  0x41   : > { %s730_s25 = smul.u32 (!%p400_p11), 36, %s406_s23  ;;  %s992_s30 = scalar_lea.vmem (!%p400_p11), [#allocation5], %s954_s26 }
  0x43   : > { %s956_s27 = scalar_lea.vmem (!%p400_p11), [#allocation2], %s730_s25  ;;  %s961_s29 = scalar_lea.vmem (!%p400_p11), [#allocation3], %s730_s25 }
  0x44   : > { %v450_v27 = vld [vmem:[%s956_s27] sm:$0xf] (!%p400_p11)  ;;  %v451_v28 = vld [vmem:[%s956_s27 + $0x4] sm:$0xf] (!%p400_p11)  ;;  %v708_v29 = vld [vmem:[%s956_s27 + $0x8] sm:$0xf] (!%p400_p11) }
  0x45   : > { %v463_v30 = vmax.f32 (!%p400_p11), %v450_v27, %v451_v28  ;;  %v471_v31 = vld [vmem:[%s961_s29] sm:$0xf] (!%p400_p11)  ;;  %v472_v32 = vld [vmem:[%s961_s29 + $0x4] sm:$0xf] (!%p400_p11)  ;;  %v712_v33 = vld [vmem:[%s961_s29 + $0x8] sm:$0xf] (!%p400_p11) }
  0x46   : > { %v484_v34 = vmax.f32 (!%p400_p11), %v471_v31, %v472_v32  ;;  %s966_s12 = scalar_lea.vmem (!%p400_p11), [#allocation4], %s730_s25  ;;  %v452_v40 = vld [vmem:[%s956_s27 + $0x8] sm:$0xf] (!%p400_p11)  ;;  %v453_v41 = vld [vmem:[%s956_s27 + $0xc] sm:$0xf] (!%p400_p11) }
  0x47   : > { %v496_v35 = vld [vmem:[%s966_s12] sm:$0xf]  ;;  %v497_v36 = vld [vmem:[%s966_s12 + $0x4] sm:$0xf]  ;;  %v467_v37 = vmax.f32 %v463_v30, %v708_v29  ;;  %v716_v38 = vld [vmem:[%s966_s12 + $0x8] sm:$0xf]  ;;  %v464_v44 = vmax.f32 %v452_v40, %v453_v41 }
  0x48   : > { %v509_v39 = vmax.f32 %v496_v35, %v497_v36  ;;  %v488_v42 = vmax.f32 %v484_v34, %v712_v33  ;;  %v709_v43 = vld [vmem:[%s956_s27 + $0x10] sm:$0xf]  ;;  %v474_v46 = vld [vmem:[%s961_s29 + $0xc] sm:$0xf]  ;;  %v713_v48 = vld [vmem:[%s961_s29 + $0x10] sm:$0xf] }
  0x49   : > { %v473_v45 = vld [vmem:[%s961_s29 + $0x8] sm:$0xf]  ;;  %v498_v50 = vld [vmem:[%s966_s12 + $0x8] sm:$0xf]  ;;  %v499_v51 = vld [vmem:[%s966_s12 + $0xc] sm:$0xf]  ;;  %v468_v53 = vmax.f32 %v464_v44, %v709_v43 }
  0x4a   : > { %v513_v47 = vmax.f32 %v509_v39, %v716_v38  ;;  %v485_v49 = vmax.f32 %v473_v45, %v474_v46  ;;  %v492_v52 = vmax.f32 %v467_v37, %v488_v42  ;;  %v717_v54 = vld [vmem:[%s966_s12 + $0x10] sm:$0xf]  ;;  %v510_v55 = vmax.f32 %v498_v50, %v499_v51  ;;  %v454_v56 = vld [vmem:[%s956_s27 + $0x10] sm:$0xf]  ;;  %v455_v57 = vld [vmem:[%s956_s27 + $0x14] sm:$0xf] }
  0x4b   : > { %v710_v59 = vld [vmem:[%s956_s27 + $0x18] sm:$0xf]  ;;  %v465_v60 = vmax.f32 %v454_v56, %v455_v57  ;;  %v476_v62 = vld [vmem:[%s961_s29 + $0x14] sm:$0xf]  ;;  %v714_v1 = vld [vmem:[%s961_s29 + $0x18] sm:$0xf] }
  0x4c   : > { %v489_v58 = vmax.f32 %v485_v49, %v713_v48  ;;  %v475_v61 = vld [vmem:[%s961_s29 + $0x10] sm:$0xf]  ;;  %v517_v63 = vmax.f32 %v492_v52, %v513_v47  ;;  %v514_v0 = vmax.f32 %v510_v55, %v717_v54  ;;  %v500_v3 = vld [vmem:[%s966_s12 + $0x10] sm:$0xf]  ;;  %v501_v4 = vld [vmem:[%s966_s12 + $0x14] sm:$0xf] }
  0x4d   : > { %v486_v2 = vmax.f32 %v475_v61, %v476_v62  ;;  %v469_v6 = vmax.f32 %v465_v60, %v710_v59  ;;  %v718_v7 = vld [vmem:[%s966_s12 + $0x18] sm:$0xf]  ;;  %v511_v8 = vmax.f32 %v500_v3, %v501_v4  ;;  %v456_v9 = vld [vmem:[%s956_s27 + $0x18] sm:$0xf]  ;;  %v457_v10 = vld [vmem:[%s956_s27 + $0x1c] sm:$0xf] }
  0x4e   : > { %v493_v5 = vmax.f32 %v468_v53, %v489_v58  ;;  %521 = vst [vmem:[%s992_s30] sm:$0xf] %v517_v63  ;;  %v711_v12 = vld [vmem:[%s956_s27 + $0x20] sm:$0xf]  ;;  %v466_v13 = vmax.f32 %v456_v9, %v457_v10  ;;  %v478_v15 = vld [vmem:[%s961_s29 + $0x1c] sm:$0xf]  ;;  %s731_s4 = smul.u32 (%p916_p6), 12, %s830_s15 }
  0x4f   : > { %v490_v11 = vmax.f32 %v486_v2, %v714_v1  ;;  %v477_v14 = vld [vmem:[%s961_s29 + $0x18] sm:$0xf]  ;;  %v515_v17 = vmax.f32 %v511_v8, %v718_v7  ;;  %v715_v18 = vld [vmem:[%s961_s29 + $0x20] sm:$0xf]  ;;  %v503_v21 = vld [vmem:[%s966_s12 + $0x1c] sm:$0xf] }
  0x50   : > { %v518_v16 = vmax.f32 %v493_v5, %v514_v0  ;;  %v487_v19 = vmax.f32 %v477_v14, %v478_v15  ;;  %v502_v20 = vld [vmem:[%s966_s12 + $0x18] sm:$0xf]  ;;  %v470_v23 = vmax.f32 %v466_v13, %v711_v12  ;;  %v719_v24 = vld [vmem:[%s966_s12 + $0x20] sm:$0xf]  ;;  %s533_s5 = sadd.s32 (%p916_p6), %s826_s14, %s731_s4 }
  0x51   : > { %v494_v22 = vmax.f32 %v469_v6, %v490_v11  ;;  %v512_v25 = vmax.f32 %v502_v20, %v503_v21  ;;  %s721_s6 = sshll.u32 (%p916_p6), %s533_s5, 2 }
  0x52   : > { %522 = vst [vmem:[%s992_s30 + $0x4] sm:$0xf] %v518_v16  ;;  %v491_v26 = vmax.f32 %v487_v19, %v715_v18  ;;  %531 = sbr.rel (!%p916_p6) target bundleno = 97 (0x61), region = 159  ;;  %s535_s9 = scalar_lea.vmem (%p916_p6), %s1040_s3, %s721_s6 }
  0x53   : > { %v519_v27 = vmax.f32 %v494_v22, %v515_v17  ;;  %v516_v28 = vmax.f32 %v512_v25, %v719_v24 }
  0x54   : > { %v495_v29 = vmax.f32 %v470_v23, %v491_v26 }
  0x55   : > { %523 = vst [vmem:[%s992_s30 + $0x8] sm:$0xf] %v519_v27  ;;  %v551_v31 = vld [vmem:[%s992_s30] sm:$0xf] (%p916_p6) }
  0x56   : > { %v520_v30 = vmax.f32 %v495_v29, %v516_v28  ;;  %552 = vst [vmem:[%s535_s9] sm:$0xf] (%p916_p6), %v551_v31 }
  0x58   : > { %524 = vst [vmem:[%s992_s30 + $0xc] sm:$0xf] %v520_v30 }
  0x59   : > { %v553_v32 = vld [vmem:[%s992_s30 + $0x4] sm:$0xf] }
  0x5a   : > { %554 = vst [vmem:[%s535_s9 + $0xc] sm:$0xf] %v553_v32 }
  0x5c   : > { %v555_v33 = vld [vmem:[%s992_s30 + $0x8] sm:$0xf] }
  0x5d   : > { %556 = vst [vmem:[%s535_s9 + $0x18] sm:$0xf] %v555_v33 }
  0x5f   : > { %v557_v34 = vld [vmem:[%s992_s30 + $0xc] sm:$0xf] }
  0x60   : > { %558 = vst [vmem:[%s535_s9 + $0x24] sm:$0xf] %v557_v34 }
  0x61 PF: > { %s13_s18 = sadd.s32 1, %s842_s18   ;;  %s1043_s12 = smov %s822_s13 }
  0x62   : > { %p10_p12 = scmp.ge.s32.totalorder %s13_s18, 8   ;;  %s1044_s13 = smov %s924_s28 }
  0x63   : > { %s1045_s14 = smov %s834_s16  ;;  %s1046_s15 = smov %s838_s17 }
  0x64   : > { %s1047_s16 = smov %s1050_s19  ;;  %s1048_s17 = smov %s1054_s20 }
  0x65   :  { %12 = sbr.rel (!%p10_p12) target bundleno = 4 (0x4), region = 250 }

</bundles_post_ra>
